<compile_context>
chip_gen: v6e
topology: v6e:2x2x1
jax: 0.10.0
libtpu: 0.0.40
codegen_flags: <defaults>
</compile_context>

<pallas_src>
import functools
import math

import jax
import jax.numpy as jnp
from jax import lax
from jax.experimental import pallas as pl
from jax.experimental.pallas import tpu as pltpu


# --------------------------------------------------------------------------
# helpers / generation-aware defaults
# --------------------------------------------------------------------------

def _pick_tile(dim, target, mult):
    """Largest block size <= target that divides `dim` and is a multiple of
    `mult`; falls back to the full dim (always a legal block)."""
    if dim <= target:
        return dim
    t = (target // mult) * mult
    while t >= mult:
        if dim % t == 0:
            return t
        t -= mult
    return dim


def _round_up(x, m):
    return ((x + m - 1) // m) * m


def _max_bit(L):
    """Largest power of two <= max(L - 1, 1)."""
    b = 1
    while (b << 1) <= max(L - 1, 1):
        b <<= 1
    return b


def _rel_shift_pad_width(L):
    """Width the positional-score matrix must have so the in-kernel relative
    shift can use only static slices (>= 2L-1; == 2L-1 when L is a power of 2)."""
    if L <= 1:
        return 1
    return L + 2 * _max_bit(L) - 1


def _hw_defaults():
    """Tile targets / VMEM limit per TPU generation (best effort, safe fallback)."""
    kind = ""
    try:
        kind = jax.devices()[0].device_kind.lower()
    except Exception:
        pass
    vmem_phys = None
    try:
        vmem_phys = int(getattr(pltpu.get_tpu_info(), "vmem_capacity_bytes"))
    except Exception:
        vmem_phys = None
    if vmem_phys is None or vmem_phys <= 0:
        vmem_phys = 128 * 1024 * 1024
    is_v5e = ("v5 lite" in kind) or ("v5e" in kind) or ("v5lite" in kind)
    if is_v5e:
        # v5e: 128-wide MXU, single vst slot, lower HBM BW -> modest tiles.
        return dict(tm=256, tn=128, tk=512, vmem=min(vmem_phys // 2, 48 << 20))
    if vmem_phys <= (80 << 20):
        # v7x-class: 64 MiB physical VMEM per TensorCore -> bounded tiles.
        return dict(tm=256, tn=256, tk=512, vmem=min(vmem_phys // 2, 40 << 20))
    # v6e-class (128 MiB VMEM): big tiles amortize grid-step overhead and DMA.
    return dict(tm=512, tn=512, tk=1024, vmem=min(vmem_phys // 2, 80 << 20))


_HW = _hw_defaults()


# --------------------------------------------------------------------------
# generic fused (prologue -> matmul -> epilogue) kernel
# --------------------------------------------------------------------------

def _fused_linear_kernel(*refs, prologue, act, residual_scale, epilogue_ln, eps,
                         cache_prologue):
    it = iter(refs)
    x_ref = next(it)
    w_ref = next(it)
    b_ref = next(it)
    p1_ref = p2_ref = res_ref = eg_ref = eb_ref = None
    if prologue is not None:
        p1_ref = next(it)
        p2_ref = next(it)
    if residual_scale is not None:
        res_ref = next(it)
    if epilogue_ln:
        eg_ref = next(it)
        eb_ref = next(it)
    o_ref = next(it)
    acc_ref = next(it)
    xc_ref = next(it) if cache_prologue else None

    j = pl.program_id(1)
    k = pl.program_id(2)

    @pl.when(k == 0)
    def _():
        acc_ref[...] = jnp.zeros_like(acc_ref)

    if prologue is not None:
        def _compute_prologue():
            x = x_ref[...].astype(jnp.float32)
            if prologue == "ln":
                mu = jnp.mean(x, axis=-1, keepdims=True)
                var = jnp.mean((x - mu) ** 2, axis=-1, keepdims=True)
                x = (x - mu) * lax.rsqrt(var + eps) * p1_ref[...] + p2_ref[...]
            else:  # "scale_shift_silu"
                x = x * p1_ref[...] + p2_ref[...]
                x = x * jax.nn.sigmoid(x)
            return x.astype(jnp.bfloat16)

        if cache_prologue:
            # Compute LN / BN+SiLU on the (tm, K) row block once per i and reuse
            # it for every output-column block j (j axis is kept "arbitrary").
            @pl.when(j == 0)
            def _():
                xc_ref[...] = _compute_prologue()
            xq = xc_ref[...]
        else:
            xq = _compute_prologue()
    else:
        xq = x_ref[...].astype(jnp.bfloat16)

    acc_ref[...] += jnp.dot(xq, w_ref[...], preferred_element_type=jnp.float32)

    @pl.when(k == pl.num_programs(2) - 1)
    def _():
        y = acc_ref[...] + b_ref[...]
        if act == "silu":
            y = y * jax.nn.sigmoid(y)
        elif act == "glu":
            nh = y.shape[-1] // 2
            y = y[:, :nh] * jax.nn.sigmoid(y[:, nh:])
        if residual_scale is not None:
            y = res_ref[...] + residual_scale * y
        if epilogue_ln:
            mu = jnp.mean(y, axis=-1, keepdims=True)
            var = jnp.mean((y - mu) ** 2, axis=-1, keepdims=True)
            y = (y - mu) * lax.rsqrt(var + eps) * eg_ref[...] + eb_ref[...]
        o_ref[...] = y.astype(o_ref.dtype)


def fused_linear(x, w, b=None, *, prologue=None, p1=None, p2=None, act=None,
                 residual=None, residual_scale=None, epilogue_ln=None,
                 eps=1e-5, out_dtype=jnp.float32):
    """y = epilogue( act( prologue(x) @ w + b ) [+ residual] )

    2-D mode : x (M, K) f32/bf16, w (K, N) bf16 (pre-transposed).
    Grouped  : x (G, M, Kg), w (G, Kg, N) -> contraction over (G, Kg).  Used to
               consume the head-major attention context in out_proj without a
               transpose or any unaligned lane slicing.
    prologue : None | 'ln' | 'scale_shift_silu' (p1/p2 per-feature vectors),
               cached per row block in a bf16 VMEM scratch.
    act      : None | 'silu' | 'glu' (glu halves the output width).
    """
    grouped = (x.ndim == 3)
    if grouped:
        assert prologue is None and act != "glu"
        G, M, Kg = x.shape
        N = w.shape[2]
    else:
        M, K = x.shape
        N = w.shape[1]

    if b is None:
        b = jnp.zeros((N,), jnp.float32)
    if residual is None:
        residual_scale = None
    elif residual_scale is None:
        residual_scale = 1.0

    tm = _pick_tile(M, _HW["tm"], 8)
    if act == "glu" or epilogue_ln is not None:
        tn = N                               # epilogues need a single N block
    else:
        tn = _pick_tile(N, _HW["tn"], 128)
    n_out = N // 2 if act == "glu" else N
    tn_out = tn // 2 if act == "glu" else tn

    if grouped:
        gk = G
        in_specs = [pl.BlockSpec((None, tm, Kg), lambda i, j, k: (k, i, 0)),
                    pl.BlockSpec((None, Kg, tn), lambda i, j, k: (k, 0, j))]
    else:
        tk = K if prologue is not None else _pick_tile(K, _HW["tk"], 128)
        gk = K // tk
        in_specs = [pl.BlockSpec((tm, tk), lambda i, j, k: (i, k)),
                    pl.BlockSpec((tk, tn), lambda i, j, k: (k, j))]
    gm, gn = M // tm, N // tn

    in_specs.append(pl.BlockSpec((1, tn), lambda i, j, k: (0, j)))
    args = [x, w, b.reshape(1, N)]

    cache_prologue = (prologue is not None) and (gn > 1)

    if prologue is not None:
        in_specs += [pl.BlockSpec((1, K), lambda i, j, k: (0, k)),
                     pl.BlockSpec((1, K), lambda i, j, k: (0, k))]
        args += [jnp.asarray(p1, jnp.float32).reshape(1, K),
                 jnp.asarray(p2, jnp.float32).reshape(1, K)]
    if residual is not None:
        in_specs.append(pl.BlockSpec((tm, tn_out), lambda i, j, k: (i, j)))
        args.append(residual)
    if epilogue_ln is not None:
        in_specs += [pl.BlockSpec((1, tn_out), lambda i, j, k: (0, j)),
                     pl.BlockSpec((1, tn_out), lambda i, j, k: (0, j))]
        args += [epilogue_ln[0].reshape(1, n_out), epilogue_ln[1].reshape(1, n_out)]

    scratch = [pltpu.VMEM((tm, tn), jnp.float32)]
    if cache_prologue:
        scratch.append(pltpu.VMEM((tm, K), jnp.bfloat16))

    # When caching the prologue, the j axis must not be split across cores so
    # every core sees j == 0 for each of its i blocks.
    semantics = (("parallel", "arbitrary", "arbitrary") if cache_prologue
                 else ("parallel", "parallel", "arbitrary"))

    kernel = functools.partial(
        _fused_linear_kernel, prologue=prologue, act=act,
        residual_scale=residual_scale, epilogue_ln=(epilogue_ln is not None),
        eps=eps, cache_prologue=cache_prologue)

    return pl.pallas_call(
        kernel,
        grid=(gm, gn, gk),
        in_specs=in_specs,
        out_specs=pl.BlockSpec((tm, tn_out), lambda i, j, k: (i, j)),
        out_shape=jax.ShapeDtypeStruct((M, n_out), out_dtype),
        scratch_shapes=scratch,
        compiler_params=pltpu.CompilerParams(
            dimension_semantics=semantics, vmem_limit_bytes=_HW["vmem"]),
    )(*args)


# --------------------------------------------------------------------------
# head-grouped projection: out[h] = prologue(x) @ w3[h]   (QKV / linear_pos)
# --------------------------------------------------------------------------

def _headed_linear_kernel(*refs, prologue, eps):
    it = iter(refs)
    x_ref = next(it)
    w_ref = next(it)
    p1_ref = p2_ref = None
    if prologue is not None:
        p1_ref = next(it)
        p2_ref = next(it)
    o_ref = next(it)
    acc_ref = next(it)
    xc_ref = next(it) if prologue is not None else None

    h = pl.program_id(1)
    k = pl.program_id(2)

    @pl.when(k == 0)
    def _():
        acc_ref[...] = jnp.zeros_like(acc_ref)

    if prologue is not None:
        # LayerNorm computed once per row block (h == 0), reused for all heads.
        @pl.when(h == 0)
        def _():
            x = x_ref[...].astype(jnp.float32)
            mu = jnp.mean(x, axis=-1, keepdims=True)
            var = jnp.mean((x - mu) ** 2, axis=-1, keepdims=True)
            x = (x - mu) * lax.rsqrt(var + eps) * p1_ref[...] + p2_ref[...]
            xc_ref[...] = x.astype(jnp.bfloat16)
        xq = xc_ref[...]
    else:
        xq = x_ref[...].astype(jnp.bfloat16)

    acc_ref[...] += jnp.dot(xq, w_ref[...], preferred_element_type=jnp.float32)

    @pl.when(k == pl.num_programs(2) - 1)
    def _():
        o_ref[...] = acc_ref[...].astype(o_ref.dtype)


def headed_linear(x, w3, *, prologue=None, p1=None, p2=None, eps=1e-5,
                  out_dtype=jnp.bfloat16):
    """x: (M, K); w3: (H, K, G) bf16 -> out (H, M, G).
    Used for the per-head QKV projection (G = 3*head_dim, norm1 LN prologue)
    and for linear_pos (G = head_dim).  Both are bias-free in the reference."""
    M, K = x.shape
    H, _, G = w3.shape
    tm = _pick_tile(M, _HW["tm"], 8)
    tk = K if prologue is not None else _pick_tile(K, _HW["tk"], 128)
    gm, gk = M // tm, K // tk

    in_specs = [pl.BlockSpec((tm, tk), lambda i, h, k: (i, k)),
                pl.BlockSpec((None, tk, G), lambda i, h, k: (h, k, 0))]
    args = [x, w3]
    if prologue is not None:
        in_specs += [pl.BlockSpec((1, tk), lambda i, h, k: (0, k)),
                     pl.BlockSpec((1, tk), lambda i, h, k: (0, k))]
        args += [jnp.asarray(p1, jnp.float32).reshape(1, K),
                 jnp.asarray(p2, jnp.float32).reshape(1, K)]

    scratch = [pltpu.VMEM((tm, G), jnp.float32)]
    if prologue is not None:
        scratch.append(pltpu.VMEM((tm, K), jnp.bfloat16))
        semantics = ("parallel", "arbitrary", "arbitrary")
    else:
        semantics = ("parallel", "parallel", "arbitrary")

    return pl.pallas_call(
        functools.partial(_headed_linear_kernel, prologue=prologue, eps=eps),
        grid=(gm, H, gk),
        in_specs=in_specs,
        out_specs=pl.BlockSpec((None, tm, G), lambda i, h, k: (h, i, 0)),
        out_shape=jax.ShapeDtypeStruct((H, M, G), out_dtype),
        scratch_shapes=scratch,
        compiler_params=pltpu.CompilerParams(
            dimension_semantics=semantics, vmem_limit_bytes=_HW["vmem"]),
    )(*args)


# --------------------------------------------------------------------------
# fused relative-position multi-head attention (grid over batch x head)
# --------------------------------------------------------------------------

def _rel_shift_rows(c, L):
    """c: (L, W) with W >= L + 2*max_bit(L) - 1.
    out[r, j] = c[r, j + (L - 1 - r)]  (Transformer-XL rel-shift), built from
    log2(L) static slices + selects (no gathers, no rolls)."""
    if L == 1:
        return c[:, 0:1]
    shift = (L - 1) - lax.broadcasted_iota(jnp.int32, (L, 1), 0)
    y = c
    b = _max_bit(L)
    while b >= 1:
        w_after = L + b - 1
        take = (shift & b) != 0
        y = jnp.where(take, y[:, b:b + w_after], y[:, 0:w_after])
        b >>= 1
    return y


def _mha_kernel(proj_ref, pk_ref, bu_ref, bv_ref, ctx_ref, attn_ref, *,
                head_dim, scale):
    L = proj_ref.shape[0]
    prj = proj_ref[...]                                 # (L, 3*Dh) bf16
    # Per-head q/k/v split; these are cheap O(L*Dh) lane slices, vs the O(L^2*Dh)
    # matmuls below (head selection itself is done by the BlockSpec / grid).
    q = prj[:, 0:head_dim].astype(jnp.float32)
    k = prj[:, head_dim:2 * head_dim]                   # bf16
    v = prj[:, 2 * head_dim:3 * head_dim]               # bf16
    pk = pk_ref[...]                                    # (W0, Dh) bf16
    bu = bu_ref[...].astype(jnp.float32)                # (1, Dh)
    bv = bv_ref[...].astype(jnp.float32)

    dn = (((1,), (1,)), ((), ()))                       # contract the head dims
    qu = (q + bu).astype(jnp.bfloat16)
    qv = (q + bv).astype(jnp.bfloat16)

    ac = lax.dot_general(qu, k, dn, preferred_element_type=jnp.float32)   # (L, L)
    c = lax.dot_general(qv, pk, dn, preferred_element_type=jnp.float32)   # (L, W0)
    bd = _rel_shift_rows(c, L)                                            # (L, L)

    s = (ac + bd) * scale
    s = s - jnp.max(s, axis=-1, keepdims=True)
    e = jnp.exp(s)
    p = e * pl.reciprocal(jnp.sum(e, axis=-1, keepdims=True), approx=True)

    attn_ref[...] = p.astype(attn_ref.dtype)
    ctx = jnp.dot(p.astype(jnp.bfloat16), v, preferred_element_type=jnp.float32)
    ctx_ref[...] = ctx.astype(ctx_ref.dtype)


def rel_pos_mha_attention(proj, pk, bias_u, bias_v, B, L, nhead, head_dim, scale,
                          attn_dtype=jnp.bfloat16):
    """proj: (nhead, B, L, 3*Dh) bf16 (per-head [q|k|v]); pk: (nhead, W0, Dh) bf16
    (positional keys, zero-padded rows); bias_u/v: (nhead, 1, Dh) f32.
    Returns ctx (nhead, B, L, Dh) bf16 (head-major, consumed directly by the
    grouped out_proj matmul) and the attention weights (B, nhead, L, L)."""
    W0 = pk.shape[1]
    # TODO(synk): add a query-block grid axis (tq ~ 128-256) for very long L so
    #             the per-step (L, L)/(L, W0) score tiles stay bounded on v7x.
    return pl.pallas_call(
        functools.partial(_mha_kernel, head_dim=head_dim, scale=scale),
        grid=(B, nhead),
        in_specs=[pl.BlockSpec((None, None, L, 3 * head_dim),
                               lambda b, h: (h, b, 0, 0)),
                  pl.BlockSpec((None, W0, head_dim), lambda b, h: (h, 0, 0)),
                  pl.BlockSpec((None, 1, head_dim), lambda b, h: (h, 0, 0)),
                  pl.BlockSpec((None, 1, head_dim), lambda b, h: (h, 0, 0))],
        out_specs=(pl.BlockSpec((None, None, L, head_dim),
                                lambda b, h: (h, b, 0, 0)),
                   pl.BlockSpec((None, None, L, L), lambda b, h: (b, h, 0, 0))),
        out_shape=(jax.ShapeDtypeStruct((nhead, B, L, head_dim), jnp.bfloat16),
                   jax.ShapeDtypeStruct((B, nhead, L, L), attn_dtype)),
        compiler_params=pltpu.CompilerParams(
            dimension_semantics=("parallel", "parallel"),
            vmem_limit_bytes=_HW["vmem"]),
    )(proj, pk, bias_u, bias_v)


# --------------------------------------------------------------------------
# depthwise conv + per-batch BatchNorm partial statistics (one kernel)
# --------------------------------------------------------------------------

def _dwconv_stats_kernel(xp_ref, w_ref, b_ref, y_ref, s_ref, ss_ref, *,
                         ksize, t_out):
    w = w_ref[...].astype(jnp.float32)                       # (K, C)
    acc = jnp.zeros(y_ref.shape, jnp.float32)                # (T, C)
    # TODO(synk): on bf16-VALU parts (v6e/v7x) the tap MAC could run packed bf16.
    for k in range(ksize):
        acc = acc + xp_ref[k:k + t_out, :].astype(jnp.float32) * w[k:k + 1, :]
    y = acc + b_ref[...]
    y_ref[...] = y.astype(y_ref.dtype)
    s_ref[...] = jnp.sum(y, axis=0, keepdims=True)           # per-batch partials
    ss_ref[...] = jnp.sum(y * y, axis=0, keepdims=True)


def dwconv_bn_stats(x, w_kc, bias, ksize):
    """x: (B, T, C) bf16.  Depthwise conv (per-channel taps w_kc[k, c]) plus
    per-batch per-channel sum / sum-of-squares partials for the BatchNorm that
    follows (reduced over B outside the kernel)."""
    B, T, C = x.shape
    pad = (ksize - 1) // 2
    xp = jnp.pad(x, ((0, 0), (pad, pad), (0, 0)))
    # TODO(synk): tile T with a halo instead of XLA padding + one (T+2p, C) block
    #             once T is large enough to pressure VMEM.
    return pl.pallas_call(
        functools.partial(_dwconv_stats_kernel, ksize=ksize, t_out=T),
        grid=(B,),
        in_specs=[pl.BlockSpec((None, T + 2 * pad, C), lambda b: (b, 0, 0)),
                  pl.BlockSpec((ksize, C), lambda b: (0, 0)),
                  pl.BlockSpec((1, C), lambda b: (0, 0))],
        out_specs=(pl.BlockSpec((None, T, C), lambda b: (b, 0, 0)),
                   pl.BlockSpec((None, 1, C), lambda b: (b, 0, 0)),
                   pl.BlockSpec((None, 1, C), lambda b: (b, 0, 0))),
        out_shape=(jax.ShapeDtypeStruct((B, T, C), jnp.bfloat16),
                   jax.ShapeDtypeStruct((B, 1, C), jnp.float32),
                   jax.ShapeDtypeStruct((B, 1, C), jnp.float32)),
        compiler_params=pltpu.CompilerParams(
            dimension_semantics=("parallel",), vmem_limit_bytes=_HW["vmem"]),
    )(xp, w_kc, bias.reshape(1, C))


# --------------------------------------------------------------------------
# standalone LayerNorm (only the final encoder norm, eps=1e-6)
# --------------------------------------------------------------------------

def _layernorm_kernel(x_ref, g_ref, b_ref, o_ref, *, eps):
    x = x_ref[...].astype(jnp.float32)
    mu = jnp.mean(x, axis=-1, keepdims=True)
    var = jnp.mean((x - mu) ** 2, axis=-1, keepdims=True)
    o_ref[...] = ((x - mu) * lax.rsqrt(var + eps) * g_ref[...]
                  + b_ref[...]).astype(o_ref.dtype)


def layernorm(x, g, b, eps=1e-5):
    M, C = x.shape
    tm = _pick_tile(M, _HW["tm"], 8)
    return pl.pallas_call(
        functools.partial(_layernorm_kernel, eps=eps),
        grid=(M // tm,),
        in_specs=[pl.BlockSpec((tm, C), lambda i: (i, 0)),
                  pl.BlockSpec((1, C), lambda i: (0, 0)),
                  pl.BlockSpec((1, C), lambda i: (0, 0))],
        out_specs=pl.BlockSpec((tm, C), lambda i: (i, 0)),
        out_shape=jax.ShapeDtypeStruct((M, C), jnp.float32),
        compiler_params=pltpu.CompilerParams(
            dimension_semantics=("parallel",), vmem_limit_bytes=_HW["vmem"]),
    )(x, g.reshape(1, C), b.reshape(1, C))


# --------------------------------------------------------------------------
# Conformer layer / encoder forward (thin glue around the kernels)
# --------------------------------------------------------------------------

def conformer_layer(x2d, B, T, pos_pad, p, nhead, ksize,
                    attn_dtype=jnp.bfloat16):
    C = x2d.shape[1]
    Dh = C // nhead
    scale = 1.0 / math.sqrt(C)      # reference: RelPosMHAXL scale = 1/sqrt(embed_dim)

    # --- FFN module 1 (half-step residual); its LayerNorm is the W1 prologue.
    h = fused_linear(x2d, p["ffn1"]["w1"], p["ffn1"]["b1"],
                     prologue="ln", p1=p["ffn1"]["ln_g"], p2=p["ffn1"]["ln_b"],
                     act="silu", out_dtype=jnp.bfloat16)
    x1 = fused_linear(h, p["ffn1"]["w2"], p["ffn1"]["b2"],
                      residual=x2d, residual_scale=0.5)

    # --- Relative-position MHA; norm1 fused into the head-grouped QKV prologue.
    proj = headed_linear(x1, p["mha"]["w_qkv"], prologue="ln",
                         p1=p["norm1_g"], p2=p["norm1_b"])      # (H, B*T, 3*Dh) bf16
    pk = headed_linear(pos_pad, p["mha"]["w_pos"])              # (H, W0, Dh) bf16
    ctx, attn = rel_pos_mha_attention(
        proj.reshape(nhead, B, T, 3 * Dh), pk,
        p["mha"]["pos_bias_u"], p["mha"]["pos_bias_v"],
        B, T, nhead, Dh, scale, attn_dtype=attn_dtype)
    x2 = fused_linear(ctx.reshape(nhead, B * T, Dh), p["mha"]["w_out"],
                      p["mha"]["b_out"], residual=x1)

    # --- Convolution module: LN -> (C,2C) conv1 + GLU in one matmul call.
    cv = p["conv"]
    g = fused_linear(x2, cv["w_glu"], cv["b_glu"],
                     prologue="ln", p1=cv["ln_g"], p2=cv["ln_b"],
                     act="glu", out_dtype=jnp.bfloat16)
    y, psum, pssq = dwconv_bn_stats(g.reshape(B, T, C), cv["dw_w"], cv["dw_b"],
                                    ksize)
    n = float(B * T)
    mean = jnp.sum(psum, axis=0) / n                   # (1, C)
    var = jnp.maximum(jnp.sum(pssq, axis=0) / n - mean * mean, 0.0)
    bn_scale = cv["bn_g"].reshape(1, C) * lax.rsqrt(var + 1e-5)
    bn_shift = cv["bn_b"].reshape(1, C) - mean * bn_scale
    # BatchNorm (batch stats) + SiLU fused into the pointwise-conv prologue,
    # the conv-module residual fused into its epilogue.
    x3 = fused_linear(y.reshape(B * T, C), cv["pw_w"], cv["pw_b"],
                      prologue="scale_shift_silu", p1=bn_scale, p2=bn_shift,
                      residual=x2)

    # --- FFN module 2 (half-step residual) with norm2 fused into the epilogue.
    h = fused_linear(x3, p["ffn2"]["w1"], p["ffn2"]["b1"],
                     prologue="ln", p1=p["ffn2"]["ln_g"], p2=p["ffn2"]["ln_b"],
                     act="silu", out_dtype=jnp.bfloat16)
    x4 = fused_linear(h, p["ffn2"]["w2"], p["ffn2"]["b2"],
                      residual=x3, residual_scale=0.5,
                      epilogue_ln=(p["norm2_g"], p["norm2_b"]), eps=1e-5)
    return x4, attn


def conformer_encoder(src, pos_embs, params, nhead, ksize,
                      attn_dtype=jnp.bfloat16):
    B, T, C = src.shape
    # Pad the (2T-1) positional rows so the in-kernel relative shift uses only
    # static slices and the lane width is 128-aligned; the extra rows are zero
    # and linear_pos has no bias, so they are never selected by the shift.
    W0 = max(_round_up(_rel_shift_pad_width(T), 128), 2 * T - 1)
    pos = pos_embs.reshape(pos_embs.shape[1], C)
    pos_pad = jnp.pad(pos, ((0, W0 - pos.shape[0]), (0, 0)))

    out = src.reshape(B * T, C)
    attn_lst = []
    for lp in params["layers"]:
        out, attn = conformer_layer(out, B, T, pos_pad, lp, nhead, ksize,
                                    attn_dtype=attn_dtype)
        attn_lst.append(attn)
    out = layernorm(out, params["norm_g"], params["norm_b"], eps=1e-6)
    return out.reshape(B, T, C), attn_lst


# --------------------------------------------------------------------------
# deterministic synthetic parameters (pre-transposed / head-grouped bf16 weights)
# --------------------------------------------------------------------------

def init_params(key, num_layers, d_model, d_ffn, nhead, ksize):
    state = {"key": key}

    def nxt():
        state["key"], sub = jax.random.split(state["key"])
        return sub

    def wmat(k_in, n_out, scale=0.05):
        # Stored transposed to (K, N) bf16 (bf16 MXU operands, f32 accumulation).
        return (scale * jax.random.normal(nxt(), (k_in, n_out))).astype(jnp.bfloat16)

    def wmat3(h, k_in, g, scale=0.05):
        return (scale * jax.random.normal(nxt(), (h, k_in, g))).astype(jnp.bfloat16)

    def randf(shape, scale=0.05):
        return (scale * jax.random.normal(nxt(), shape)).astype(jnp.float32)

    ones = lambda s: jnp.ones(s, jnp.float32)
    zeros = lambda s: jnp.zeros(s, jnp.float32)
    Dh = d_model // nhead

    def ffn_params():
        return dict(ln_g=ones((d_model,)), ln_b=zeros((d_model,)),
                    w1=wmat(d_model, d_ffn), b1=randf((d_ffn,)),
                    w2=wmat(d_ffn, d_model), b2=randf((d_model,)))

    layers = []
    for _ in range(num_layers):
        layers.append(dict(
            ffn1=ffn_params(),
            ffn2=ffn_params(),
            mha=dict(
                # w_qkv[h, c, s*Dh+d] == torch in_proj_weight[h*3*Dh + s*Dh + d, c]
                # (matches view(B,L,H,3*Dh).chunk(3,-1) per-head [q|k|v] layout).
                w_qkv=wmat3(nhead, d_model, 3 * Dh),
                # w_pos[h, c, d] == torch linear_pos.weight[h*Dh + d, c] (bias=False)
                w_pos=wmat3(nhead, d_model, Dh),
                # w_out[h, d, n] == torch out_proj.weight[n, h*Dh + d]
                w_out=wmat3(nhead, Dh, d_model), b_out=randf((d_model,)),
                # pos_bias_{u,v} stored directly in the "viewed" (H, 1, Dh) form
                pos_bias_u=randf((nhead, 1, Dh)), pos_bias_v=randf((nhead, 1, Dh))),
            conv=dict(
                ln_g=ones((d_model,)), ln_b=zeros((d_model,)),
                # w_glu[c, j] == torch bottleneck conv1 weight[j, c, 0];
                # columns [0:C] = GLU value half, [C:2C] = gate half.
                w_glu=wmat(d_model, 2 * d_model), b_glu=randf((2 * d_model,)),
                dw_w=randf((ksize, d_model)),   # dw_w[k, c] == torch weight[c, 0, k]
                dw_b=randf((d_model,)),
                bn_g=ones((d_model,)), bn_b=zeros((d_model,)),
                pw_w=wmat(d_model, d_model), pw_b=randf((d_model,))),
            norm1_g=ones((d_model,)), norm1_b=zeros((d_model,)),
            norm2_g=ones((d_model,)), norm2_b=zeros((d_model,)),
        ))
    return dict(layers=layers, norm_g=ones((d_model,)), norm_b=zeros((d_model,)))


# --------------------------------------------------------------------------

if __name__ == "__main__":
    B, T, d_model, d_ffn, nhead, ksize, num_layers = 2, 16, 32, 64, 4, 7, 2

    key = jax.random.PRNGKey(0)
    k_x, k_pos, k_par = jax.random.split(key, 3)
    src = jax.random.normal(k_x, (B, T, d_model), jnp.float32)
    pos_embs = jax.random.normal(k_pos, (1, 2 * T - 1, d_model), jnp.float32)
    params = init_params(k_par, num_layers, d_model, d_ffn, nhead, ksize)

    fwd = jax.jit(functools.partial(conformer_encoder, nhead=nhead, ksize=ksize))
    out, attn_lst = fwd(src, pos_embs, params)
    jax.block_until_ready((out, attn_lst))

    assert out.shape == (B, T, d_model)
    assert len(attn_lst) == num_layers
    assert attn_lst[0].shape == (B, nhead, T, T)
    print("KERNEL_OK")
</pallas_src>

<mosaic_0001>
module attributes {stable_mosaic.version = 11 : i64} {
  func.func @_fused_linear_kernel(%arg0: i32, %arg1: i32, %arg2: i32, %arg3: memref<32x32xf32, #tpu.memory_space<vmem>>, %arg4: memref<32x64xbf16, #tpu.memory_space<vmem>>, %arg5: memref<1x64xf32, #tpu.memory_space<vmem>>, %arg6: memref<1x32xf32, #tpu.memory_space<vmem>>, %arg7: memref<1x32xf32, #tpu.memory_space<vmem>>, %arg8: memref<32x64xbf16, #tpu.memory_space<vmem>>, %arg9: memref<32x64xf32, #tpu.memory_space<vmem>>) attributes {dimension_semantics = [#tpu.dimension_semantics<parallel>, #tpu.dimension_semantics<parallel>, #tpu.dimension_semantics<arbitrary>], iteration_bounds = array<i64: 1, 1, 1>, scalar_prefetch = 0 : i64, scratch_operands = 1 : i64, tpu.core_type = #tpu.core_type<tc>, window_params = [{transform_indices = @transform_0, window_bounds = array<i64: 32, 32>}, {transform_indices = @transform_1, window_bounds = array<i64: 32, 64>}, {transform_indices = @transform_2, window_bounds = array<i64: 1, 64>}, {transform_indices = @transform_3, window_bounds = array<i64: 1, 32>}, {transform_indices = @transform_4, window_bounds = array<i64: 1, 32>}, {transform_indices = @transform_5, window_bounds = array<i64: 32, 64>}]} {
    %c0_i32 = arith.constant 0 : i32
    %0 = arith.cmpi eq, %arg2, %c0_i32 : i32
    %1 = arith.extui %0 : i1 to i32
    %c0_i32_0 = arith.constant 0 : i32
    %2 = arith.cmpi ne, %1, %c0_i32_0 : i32
    scf.if %2 {
      %cst_19 = arith.constant 0.000000e+00 : f32
      %37 = vector.broadcast %cst_19 : f32 to vector<32x64xf32>
      %c0_20 = arith.constant 0 : index
      %c0_21 = arith.constant 0 : index
      %38 = vector.load %arg9[%c0_20, %c0_21] : memref<32x64xf32, #tpu.memory_space<vmem>>, vector<32x64xf32>
      tpu.vector_store %arg9[%c0_20, %c0_21], %37 {strides = array<i32>} : memref<32x64xf32, #tpu.memory_space<vmem>>, vector<32x64xf32>,
    } else {
    }
    %c0 = arith.constant 0 : index
    %c0_1 = arith.constant 0 : index
    %3 = vector.load %arg3[%c0, %c0_1] : memref<32x32xf32, #tpu.memory_space<vmem>>, vector<32x32xf32>
    %cst = arith.constant dense<0.000000e+00> : vector<32xf32>
    %4 = vector.multi_reduction <add>, %3, %cst [1] : vector<32x32xf32> to vector<32xf32>
    %5 = vector.shape_cast %4 : vector<32xf32> to vector<32x1xf32>
    %cst_2 = arith.constant 3.200000e+01 : f32
    %6 = vector.broadcast %cst_2 : f32 to vector<32x1xf32>
    %7 = arith.divf %5, %6 : vector<32x1xf32>
    %8 = vector.broadcast %7 : vector<32x1xf32> to vector<32x32xf32>
    %9 = arith.subf %3, %8 : vector<32x32xf32>
    %10 = arith.mulf %9, %9 : vector<32x32xf32>
    %cst_3 = arith.constant dense<0.000000e+00> : vector<32xf32>
    %11 = vector.multi_reduction <add>, %10, %cst_3 [1] : vector<32x32xf32> to vector<32xf32>
    %12 = vector.shape_cast %11 : vector<32xf32> to vector<32x1xf32>
    %cst_4 = arith.constant 3.200000e+01 : f32
    %13 = vector.broadcast %cst_4 : f32 to vector<32x1xf32>
    %14 = arith.divf %12, %13 : vector<32x1xf32>
    %15 = vector.broadcast %7 : vector<32x1xf32> to vector<32x32xf32>
    %16 = arith.subf %3, %15 : vector<32x32xf32>
    %cst_5 = arith.constant 9.99999974E-6 : f32
    %17 = vector.broadcast %cst_5 : f32 to vector<32x1xf32>
    %18 = arith.addf %14, %17 : vector<32x1xf32>
    %19 = math.rsqrt %18 : vector<32x1xf32>
    %20 = vector.broadcast %19 : vector<32x1xf32> to vector<32x32xf32>
    %21 = arith.mulf %16, %20 : vector<32x32xf32>
    %c0_6 = arith.constant 0 : index
    %c0_7 = arith.constant 0 : index
    %22 = vector.load %arg6[%c0_6, %c0_7] : memref<1x32xf32, #tpu.memory_space<vmem>>, vector<1x32xf32>
    %23 = vector.broadcast %22 : vector<1x32xf32> to vector<32x32xf32>
    %24 = arith.mulf %21, %23 : vector<32x32xf32>
    %c0_8 = arith.constant 0 : index
    %c0_9 = arith.constant 0 : index
    %25 = vector.load %arg7[%c0_8, %c0_9] : memref<1x32xf32, #tpu.memory_space<vmem>>, vector<1x32xf32>
    %26 = vector.broadcast %25 : vector<1x32xf32> to vector<32x32xf32>
    %27 = arith.addf %24, %26 : vector<32x32xf32>
    %28 = arith.truncf %27 : vector<32x32xf32> to vector<32x32xbf16>
    %c0_10 = arith.constant 0 : index
    %c0_11 = arith.constant 0 : index
    %29 = vector.load %arg9[%c0_10, %c0_11] : memref<32x64xf32, #tpu.memory_space<vmem>>, vector<32x64xf32>
    %c0_12 = arith.constant 0 : index
    %c0_13 = arith.constant 0 : index
    %30 = vector.load %arg4[%c0_12, %c0_13] : memref<32x64xbf16, #tpu.memory_space<vmem>>, vector<32x64xbf16>
    %cst_14 = arith.constant dense<0.000000e+00> : vector<32x64xf32>
    %31 = tpu.matmul %28, %30, %cst_14 {dimension_numbers = #tpu.dot_dimension_numbers<[1], [0], [0], [1], [0, 0, 1, 1], [], []>} : vector<32x32xbf16>, vector<32x64xbf16>, vector<32x64xf32> -> vector<32x64xf32>
    %32 = arith.addf %29, %31 : vector<32x64xf32>
    %c0_15 = arith.constant 0 : index
    %c0_16 = arith.constant 0 : index
    %33 = vector.load %arg9[%c0_15, %c0_16] : memref<32x64xf32, #tpu.memory_space<vmem>>, vector<32x64xf32>
    tpu.vector_store %arg9[%c0_15, %c0_16], %32 {strides = array<i32>} : memref<32x64xf32, #tpu.memory_space<vmem>>, vector<32x64xf32>,
    %c0_i32_17 = arith.constant 0 : i32
    %34 = arith.cmpi eq, %arg2, %c0_i32_17 : i32
    %35 = arith.extui %34 : i1 to i32
    %c0_i32_18 = arith.constant 0 : i32
    %36 = arith.cmpi ne, %35, %c0_i32_18 : i32
    scf.if %36 {
      %c0_19 = arith.constant 0 : index
      %c0_20 = arith.constant 0 : index
      %37 = vector.load %arg9[%c0_19, %c0_20] : memref<32x64xf32, #tpu.memory_space<vmem>>, vector<32x64xf32>
      %c0_21 = arith.constant 0 : index
      %c0_22 = arith.constant 0 : index
      %38 = vector.load %arg5[%c0_21, %c0_22] : memref<1x64xf32, #tpu.memory_space<vmem>>, vector<1x64xf32>
      %39 = vector.broadcast %38 : vector<1x64xf32> to vector<32x64xf32>
      %40 = arith.addf %37, %39 : vector<32x64xf32>
      %41 = arith.negf %40 : vector<32x64xf32>
      %42 = math.exp %41 : vector<32x64xf32>
      %cst_23 = arith.constant 1.000000e+00 : f32
      %43 = vector.broadcast %cst_23 : f32 to vector<32x64xf32>
      %44 = arith.addf %43, %42 : vector<32x64xf32>
      %45 = arith.divf %43, %44 : vector<32x64xf32>
      %46 = arith.mulf %40, %45 : vector<32x64xf32>
      %47 = arith.truncf %46 : vector<32x64xf32> to vector<32x64xbf16>
      %c0_24 = arith.constant 0 : index
      %c0_25 = arith.constant 0 : index
      %48 = vector.load %arg8[%c0_24, %c0_25] : memref<32x64xbf16, #tpu.memory_space<vmem>>, vector<32x64xbf16>
      tpu.vector_store %arg8[%c0_24, %c0_25], %47 {strides = array<i32>} : memref<32x64xbf16, #tpu.memory_space<vmem>>, vector<32x64xbf16>,
    } else {
    }
    return
  }
  func.func @transform_0(%arg0: i32, %arg1: i32, %arg2: i32) -> (i32, i32) {
    %c0_i32 = arith.constant 0 : i32
    return %arg0, %arg2 : i32, i32
  }
  func.func @transform_1(%arg0: i32, %arg1: i32, %arg2: i32) -> (i32, i32) {
    %c0_i32 = arith.constant 0 : i32
    return %arg2, %arg1 : i32, i32
  }
  func.func @transform_2(%arg0: i32, %arg1: i32, %arg2: i32) -> (i32, i32) {
    %c0_i32 = arith.constant 0 : i32
    %c0_i32_0 = arith.constant 0 : i32
    return %c0_i32, %arg1 : i32, i32
  }
  func.func @transform_3(%arg0: i32, %arg1: i32, %arg2: i32) -> (i32, i32) {
    %c0_i32 = arith.constant 0 : i32
    %c0_i32_0 = arith.constant 0 : i32
    return %c0_i32, %arg2 : i32, i32
  }
  func.func @transform_4(%arg0: i32, %arg1: i32, %arg2: i32) -> (i32, i32) {
    %c0_i32 = arith.constant 0 : i32
    %c0_i32_0 = arith.constant 0 : i32
    return %c0_i32, %arg2 : i32, i32
  }
  func.func @transform_5(%arg0: i32, %arg1: i32, %arg2: i32) -> (i32, i32) {
    %c0_i32 = arith.constant 0 : i32
    return %arg0, %arg1 : i32, i32
  }
}

module attributes {stable_mosaic.version = 11 : i64} {
  func.func @_fused_linear_kernel(%arg0: i32, %arg1: i32, %arg2: i32, %arg3: memref<32x64xbf16, #tpu.memory_space<vmem>>, %arg4: memref<64x32xbf16, #tpu.memory_space<vmem>>, %arg5: memref<1x32xf32, #tpu.memory_space<vmem>>, %arg6: memref<32x32xf32, #tpu.memory_space<vmem>>, %arg7: memref<32x32xf32, #tpu.memory_space<vmem>>, %arg8: memref<32x32xf32, #tpu.memory_space<vmem>>) attributes {dimension_semantics = [#tpu.dimension_semantics<parallel>, #tpu.dimension_semantics<parallel>, #tpu.dimension_semantics<arbitrary>], iteration_bounds = array<i64: 1, 1, 1>, scalar_prefetch = 0 : i64, scratch_operands = 1 : i64, tpu.core_type = #tpu.core_type<tc>, window_params = [{transform_indices = @transform_0, window_bounds = array<i64: 32, 64>}, {transform_indices = @transform_1, window_bounds = array<i64: 64, 32>}, {transform_indices = @transform_2, window_bounds = array<i64: 1, 32>}, {transform_indices = @transform_3, window_bounds = array<i64: 32, 32>}, {transform_indices = @transform_4, window_bounds = array<i64: 32, 32>}]} {
    %c0_i32 = arith.constant 0 : i32
    %0 = arith.cmpi eq, %arg2, %c0_i32 : i32
    %1 = arith.extui %0 : i1 to i32
    %c0_i32_0 = arith.constant 0 : i32
    %2 = arith.cmpi ne, %1, %c0_i32_0 : i32
    scf.if %2 {
      %cst_10 = arith.constant 0.000000e+00 : f32
      %12 = vector.broadcast %cst_10 : f32 to vector<32x32xf32>
      %c0_11 = arith.constant 0 : index
      %c0_12 = arith.constant 0 : index
      %13 = vector.load %arg8[%c0_11, %c0_12] : memref<32x32xf32, #tpu.memory_space<vmem>>, vector<32x32xf32>
      tpu.vector_store %arg8[%c0_11, %c0_12], %12 {strides = array<i32>} : memref<32x32xf32, #tpu.memory_space<vmem>>, vector<32x32xf32>,
    } else {
    }
    %c0 = arith.constant 0 : index
    %c0_1 = arith.constant 0 : index
    %3 = vector.load %arg3[%c0, %c0_1] : memref<32x64xbf16, #tpu.memory_space<vmem>>, vector<32x64xbf16>
    %c0_2 = arith.constant 0 : index
    %c0_3 = arith.constant 0 : index
    %4 = vector.load %arg8[%c0_2, %c0_3] : memref<32x32xf32, #tpu.memory_space<vmem>>, vector<32x32xf32>
    %c0_4 = arith.constant 0 : index
    %c0_5 = arith.constant 0 : index
    %5 = vector.load %arg4[%c0_4, %c0_5] : memref<64x32xbf16, #tpu.memory_space<vmem>>, vector<64x32xbf16>
    %cst = arith.constant dense<0.000000e+00> : vector<32x32xf32>
    %6 = tpu.matmul %3, %5, %cst {dimension_numbers = #tpu.dot_dimension_numbers<[1], [0], [0], [1], [0, 0, 1, 1], [], []>} : vector<32x64xbf16>, vector<64x32xbf16>, vector<32x32xf32> -> vector<32x32xf32>
    %7 = arith.addf %4, %6 : vector<32x32xf32>
    %c0_6 = arith.constant 0 : index
    %c0_7 = arith.constant 0 : index
    %8 = vector.load %arg8[%c0_6, %c0_7] : memref<32x32xf32, #tpu.memory_space<vmem>>, vector<32x32xf32>
    tpu.vector_store %arg8[%c0_6, %c0_7], %7 {strides = array<i32>} : memref<32x32xf32, #tpu.memory_space<vmem>>, vector<32x32xf32>,
    %c0_i32_8 = arith.constant 0 : i32
    %9 = arith.cmpi eq, %arg2, %c0_i32_8 : i32
    %10 = arith.extui %9 : i1 to i32
    %c0_i32_9 = arith.constant 0 : i32
    %11 = arith.cmpi ne, %10, %c0_i32_9 : i32
    scf.if %11 {
      %c0_10 = arith.constant 0 : index
      %c0_11 = arith.constant 0 : index
      %12 = vector.load %arg8[%c0_10, %c0_11] : memref<32x32xf32, #tpu.memory_space<vmem>>, vector<32x32xf32>
      %c0_12 = arith.constant 0 : index
      %c0_13 = arith.constant 0 : index
      %13 = vector.load %arg5[%c0_12, %c0_13] : memref<1x32xf32, #tpu.memory_space<vmem>>, vector<1x32xf32>
      %14 = vector.broadcast %13 : vector<1x32xf32> to vector<32x32xf32>
      %15 = arith.addf %12, %14 : vector<32x32xf32>
      %c0_14 = arith.constant 0 : index
      %c0_15 = arith.constant 0 : index
      %16 = vector.load %arg6[%c0_14, %c0_15] : memref<32x32xf32, #tpu.memory_space<vmem>>, vector<32x32xf32>
      %cst_16 = arith.constant 5.000000e-01 : f32
      %17 = vector.broadcast %cst_16 : f32 to vector<32x32xf32>
      %18 = arith.mulf %17, %15 : vector<32x32xf32>
      %19 = arith.addf %16, %18 : vector<32x32xf32>
      %c0_17 = arith.constant 0 : index
      %c0_18 = arith.constant 0 : index
      %20 = vector.load %arg7[%c0_17, %c0_18] : memref<32x32xf32, #tpu.memory_space<vmem>>, vector<32x32xf32>
      tpu.vector_store %arg7[%c0_17, %c0_18], %19 {strides = array<i32>} : memref<32x32xf32, #tpu.memory_space<vmem>>, vector<32x32xf32>,
    } else {
    }
    return
  }
  func.func @transform_0(%arg0: i32, %arg1: i32, %arg2: i32) -> (i32, i32) {
    %c0_i32 = arith.constant 0 : i32
    return %arg0, %arg2 : i32, i32
  }
  func.func @transform_1(%arg0: i32, %arg1: i32, %arg2: i32) -> (i32, i32) {
    %c0_i32 = arith.constant 0 : i32
    return %arg2, %arg1 : i32, i32
  }
  func.func @transform_2(%arg0: i32, %arg1: i32, %arg2: i32) -> (i32, i32) {
    %c0_i32 = arith.constant 0 : i32
    %c0_i32_0 = arith.constant 0 : i32
    return %c0_i32, %arg1 : i32, i32
  }
  func.func @transform_3(%arg0: i32, %arg1: i32, %arg2: i32) -> (i32, i32) {
    %c0_i32 = arith.constant 0 : i32
    return %arg0, %arg1 : i32, i32
  }
  func.func @transform_4(%arg0: i32, %arg1: i32, %arg2: i32) -> (i32, i32) {
    %c0_i32 = arith.constant 0 : i32
    return %arg0, %arg1 : i32, i32
  }
}

module attributes {stable_mosaic.version = 11 : i64} {
  func.func @_headed_linear_kernel(%arg0: i32, %arg1: i32, %arg2: i32, %arg3: memref<32x32xf32, #tpu.memory_space<vmem>>, %arg4: memref<1x32x24xbf16, #tpu.memory_space<vmem>>, %arg5: memref<1x32xf32, #tpu.memory_space<vmem>>, %arg6: memref<1x32xf32, #tpu.memory_space<vmem>>, %arg7: memref<1x32x24xbf16, #tpu.memory_space<vmem>>, %arg8: memref<32x24xf32, #tpu.memory_space<vmem>>, %arg9: memref<32x32xbf16, #tpu.memory_space<vmem>>) attributes {dimension_semantics = [#tpu.dimension_semantics<parallel>, #tpu.dimension_semantics<arbitrary>, #tpu.dimension_semantics<arbitrary>], iteration_bounds = array<i64: 1, 4, 1>, scalar_prefetch = 0 : i64, scratch_operands = 2 : i64, tpu.core_type = #tpu.core_type<tc>, window_params = [{transform_indices = @transform_0, window_bounds = array<i64: 32, 32>}, {transform_indices = @transform_1, window_bounds = array<i64: 1, 32, 24>}, {transform_indices = @transform_2, window_bounds = array<i64: 1, 32>}, {transform_indices = @transform_3, window_bounds = array<i64: 1, 32>}, {transform_indices = @transform_4, window_bounds = array<i64: 1, 32, 24>}]} {
    %c0_i32 = arith.constant 0 : i32
    %0 = arith.cmpi eq, %arg2, %c0_i32 : i32
    %1 = arith.extui %0 : i1 to i32
    %c0_i32_0 = arith.constant 0 : i32
    %2 = arith.cmpi ne, %1, %c0_i32_0 : i32
    scf.if %2 {
      %cst_13 = arith.constant 0.000000e+00 : f32
      %16 = vector.broadcast %cst_13 : f32 to vector<32x24xf32>
      %c0_14 = arith.constant 0 : index
      %c0_15 = arith.constant 0 : index
      %17 = vector.load %arg8[%c0_14, %c0_15] : memref<32x24xf32, #tpu.memory_space<vmem>>, vector<32x24xf32>
      tpu.vector_store %arg8[%c0_14, %c0_15], %16 {strides = array<i32>} : memref<32x24xf32, #tpu.memory_space<vmem>>, vector<32x24xf32>,
    } else {
    }
    %c0_i32_1 = arith.constant 0 : i32
    %3 = arith.cmpi eq, %arg1, %c0_i32_1 : i32
    %4 = arith.extui %3 : i1 to i32
    %c0_i32_2 = arith.constant 0 : i32
    %5 = arith.cmpi ne, %4, %c0_i32_2 : i32
    scf.if %5 {
      %c0_13 = arith.constant 0 : index
      %c0_14 = arith.constant 0 : index
      %16 = vector.load %arg3[%c0_13, %c0_14] : memref<32x32xf32, #tpu.memory_space<vmem>>, vector<32x32xf32>
      %cst_15 = arith.constant dense<0.000000e+00> : vector<32xf32>
      %17 = vector.multi_reduction <add>, %16, %cst_15 [1] : vector<32x32xf32> to vector<32xf32>
      %18 = vector.shape_cast %17 : vector<32xf32> to vector<32x1xf32>
      %cst_16 = arith.constant 3.200000e+01 : f32
      %19 = vector.broadcast %cst_16 : f32 to vector<32x1xf32>
      %20 = arith.divf %18, %19 : vector<32x1xf32>
      %21 = vector.broadcast %20 : vector<32x1xf32> to vector<32x32xf32>
      %22 = arith.subf %16, %21 : vector<32x32xf32>
      %23 = arith.mulf %22, %22 : vector<32x32xf32>
      %cst_17 = arith.constant dense<0.000000e+00> : vector<32xf32>
      %24 = vector.multi_reduction <add>, %23, %cst_17 [1] : vector<32x32xf32> to vector<32xf32>
      %25 = vector.shape_cast %24 : vector<32xf32> to vector<32x1xf32>
      %cst_18 = arith.constant 3.200000e+01 : f32
      %26 = vector.broadcast %cst_18 : f32 to vector<32x1xf32>
      %27 = arith.divf %25, %26 : vector<32x1xf32>
      %28 = vector.broadcast %20 : vector<32x1xf32> to vector<32x32xf32>
      %29 = arith.subf %16, %28 : vector<32x32xf32>
      %cst_19 = arith.constant 9.99999974E-6 : f32
      %30 = vector.broadcast %cst_19 : f32 to vector<32x1xf32>
      %31 = arith.addf %27, %30 : vector<32x1xf32>
      %32 = math.rsqrt %31 : vector<32x1xf32>
      %33 = vector.broadcast %32 : vector<32x1xf32> to vector<32x32xf32>
      %34 = arith.mulf %29, %33 : vector<32x32xf32>
      %c0_20 = arith.constant 0 : index
      %c0_21 = arith.constant 0 : index
      %35 = vector.load %arg5[%c0_20, %c0_21] : memref<1x32xf32, #tpu.memory_space<vmem>>, vector<1x32xf32>
      %36 = vector.broadcast %35 : vector<1x32xf32> to vector<32x32xf32>
      %37 = arith.mulf %34, %36 : vector<32x32xf32>
      %c0_22 = arith.constant 0 : index
      %c0_23 = arith.constant 0 : index
      %38 = vector.load %arg6[%c0_22, %c0_23] : memref<1x32xf32, #tpu.memory_space<vmem>>, vector<1x32xf32>
      %39 = vector.broadcast %38 : vector<1x32xf32> to vector<32x32xf32>
      %40 = arith.addf %37, %39 : vector<32x32xf32>
      %41 = arith.truncf %40 : vector<32x32xf32> to vector<32x32xbf16>
      %c0_24 = arith.constant 0 : index
      %c0_25 = arith.constant 0 : index
      %42 = vector.load %arg9[%c0_24, %c0_25] : memref<32x32xbf16, #tpu.memory_space<vmem>>, vector<32x32xbf16>
      tpu.vector_store %arg9[%c0_24, %c0_25], %41 {strides = array<i32>} : memref<32x32xbf16, #tpu.memory_space<vmem>>, vector<32x32xbf16>,
    } else {
    }
    %c0 = arith.constant 0 : index
    %c0_3 = arith.constant 0 : index
    %6 = vector.load %arg9[%c0, %c0_3] : memref<32x32xbf16, #tpu.memory_space<vmem>>, vector<32x32xbf16>
    %c0_4 = arith.constant 0 : index
    %c0_5 = arith.constant 0 : index
    %7 = vector.load %arg8[%c0_4, %c0_5] : memref<32x24xf32, #tpu.memory_space<vmem>>, vector<32x24xf32>
    %c0_6 = arith.constant 0 : index
    %c0_7 = arith.constant 0 : index
    %c0_8 = arith.constant 0 : index
    %8 = vector.load %arg4[%c0_6, %c0_7, %c0_8] : memref<1x32x24xbf16, #tpu.memory_space<vmem>>, vector<1x32x24xbf16>
    %9 = vector.shape_cast %8 : vector<1x32x24xbf16> to vector<32x24xbf16>
    %cst = arith.constant dense<0.000000e+00> : vector<32x24xf32>
    %10 = tpu.matmul %6, %9, %cst {dimension_numbers = #tpu.dot_dimension_numbers<[1], [0], [0], [1], [0, 0, 1, 1], [], []>} : vector<32x32xbf16>, vector<32x24xbf16>, vector<32x24xf32> -> vector<32x24xf32>
    %11 = arith.addf %7, %10 : vector<32x24xf32>
    %c0_9 = arith.constant 0 : index
    %c0_10 = arith.constant 0 : index
    %12 = vector.load %arg8[%c0_9, %c0_10] : memref<32x24xf32, #tpu.memory_space<vmem>>, vector<32x24xf32>
    tpu.vector_store %arg8[%c0_9, %c0_10], %11 {strides = array<i32>} : memref<32x24xf32, #tpu.memory_space<vmem>>, vector<32x24xf32>,
    %c0_i32_11 = arith.constant 0 : i32
    %13 = arith.cmpi eq, %arg2, %c0_i32_11 : i32
    %14 = arith.extui %13 : i1 to i32
    %c0_i32_12 = arith.constant 0 : i32
    %15 = arith.cmpi ne, %14, %c0_i32_12 : i32
    scf.if %15 {
      %c0_13 = arith.constant 0 : index
      %c0_14 = arith.constant 0 : index
      %16 = vector.load %arg8[%c0_13, %c0_14] : memref<32x24xf32, #tpu.memory_space<vmem>>, vector<32x24xf32>
      %17 = arith.truncf %16 : vector<32x24xf32> to vector<32x24xbf16>
      %c0_15 = arith.constant 0 : index
      %c0_16 = arith.constant 0 : index
      %c0_17 = arith.constant 0 : index
      %18 = vector.load %arg7[%c0_15, %c0_16, %c0_17] : memref<1x32x24xbf16, #tpu.memory_space<vmem>>, vector<1x32x24xbf16>
      %19 = vector.shape_cast %18 : vector<1x32x24xbf16> to vector<32x24xbf16>
      %20 = vector.shape_cast %17 : vector<32x24xbf16> to vector<1x32x24xbf16>
      tpu.vector_store %arg7[%c0_15, %c0_16, %c0_17], %20 {strides = array<i32>} : memref<1x32x24xbf16, #tpu.memory_space<vmem>>, vector<1x32x24xbf16>,
    } else {
    }
    return
  }
  func.func @transform_0(%arg0: i32, %arg1: i32, %arg2: i32) -> (i32, i32) {
    %c0_i32 = arith.constant 0 : i32
    return %arg0, %arg2 : i32, i32
  }
  func.func @transform_1(%arg0: i32, %arg1: i32, %arg2: i32) -> (i32, i32, i32) {
    %c0_i32 = arith.constant 0 : i32
    %c0_i32_0 = arith.constant 0 : i32
    return %arg1, %arg2, %c0_i32 : i32, i32, i32
  }
  func.func @transform_2(%arg0: i32, %arg1: i32, %arg2: i32) -> (i32, i32) {
    %c0_i32 = arith.constant 0 : i32
    %c0_i32_0 = arith.constant 0 : i32
    return %c0_i32, %arg2 : i32, i32
  }
  func.func @transform_3(%arg0: i32, %arg1: i32, %arg2: i32) -> (i32, i32) {
    %c0_i32 = arith.constant 0 : i32
    %c0_i32_0 = arith.constant 0 : i32
    return %c0_i32, %arg2 : i32, i32
  }
  func.func @transform_4(%arg0: i32, %arg1: i32, %arg2: i32) -> (i32, i32, i32) {
    %c0_i32 = arith.constant 0 : i32
    %c0_i32_0 = arith.constant 0 : i32
    return %arg1, %arg0, %c0_i32 : i32, i32, i32
  }
}

module attributes {stable_mosaic.version = 11 : i64} {
  func.func @_headed_linear_kernel(%arg0: i32, %arg1: i32, %arg2: i32, %arg3: memref<128x32xf32, #tpu.memory_space<vmem>>, %arg4: memref<1x32x8xbf16, #tpu.memory_space<vmem>>, %arg5: memref<1x128x8xbf16, #tpu.memory_space<vmem>>, %arg6: memref<128x8xf32, #tpu.memory_space<vmem>>) attributes {dimension_semantics = [#tpu.dimension_semantics<parallel>, #tpu.dimension_semantics<parallel>, #tpu.dimension_semantics<arbitrary>], iteration_bounds = array<i64: 1, 4, 1>, scalar_prefetch = 0 : i64, scratch_operands = 1 : i64, tpu.core_type = #tpu.core_type<tc>, window_params = [{transform_indices = @transform_0, window_bounds = array<i64: 128, 32>}, {transform_indices = @transform_1, window_bounds = array<i64: 1, 32, 8>}, {transform_indices = @transform_2, window_bounds = array<i64: 1, 128, 8>}]} {
    %c0_i32 = arith.constant 0 : i32
    %0 = arith.cmpi eq, %arg2, %c0_i32 : i32
    %1 = arith.extui %0 : i1 to i32
    %c0_i32_0 = arith.constant 0 : i32
    %2 = arith.cmpi ne, %1, %c0_i32_0 : i32
    scf.if %2 {
      %cst_11 = arith.constant 0.000000e+00 : f32
      %14 = vector.broadcast %cst_11 : f32 to vector<128x8xf32>
      %c0_12 = arith.constant 0 : index
      %c0_13 = arith.constant 0 : index
      %15 = vector.load %arg6[%c0_12, %c0_13] : memref<128x8xf32, #tpu.memory_space<vmem>>, vector<128x8xf32>
      tpu.vector_store %arg6[%c0_12, %c0_13], %14 {strides = array<i32>} : memref<128x8xf32, #tpu.memory_space<vmem>>, vector<128x8xf32>,
    } else {
    }
    %c0 = arith.constant 0 : index
    %c0_1 = arith.constant 0 : index
    %3 = vector.load %arg3[%c0, %c0_1] : memref<128x32xf32, #tpu.memory_space<vmem>>, vector<128x32xf32>
    %4 = arith.truncf %3 : vector<128x32xf32> to vector<128x32xbf16>
    %c0_2 = arith.constant 0 : index
    %c0_3 = arith.constant 0 : index
    %5 = vector.load %arg6[%c0_2, %c0_3] : memref<128x8xf32, #tpu.memory_space<vmem>>, vector<128x8xf32>
    %c0_4 = arith.constant 0 : index
    %c0_5 = arith.constant 0 : index
    %c0_6 = arith.constant 0 : index
    %6 = vector.load %arg4[%c0_4, %c0_5, %c0_6] : memref<1x32x8xbf16, #tpu.memory_space<vmem>>, vector<1x32x8xbf16>
    %7 = vector.shape_cast %6 : vector<1x32x8xbf16> to vector<32x8xbf16>
    %cst = arith.constant dense<0.000000e+00> : vector<128x8xf32>
    %8 = tpu.matmul %4, %7, %cst {dimension_numbers = #tpu.dot_dimension_numbers<[1], [0], [0], [1], [0, 0, 1, 1], [], []>} : vector<128x32xbf16>, vector<32x8xbf16>, vector<128x8xf32> -> vector<128x8xf32>
    %9 = arith.addf %5, %8 : vector<128x8xf32>
    %c0_7 = arith.constant 0 : index
    %c0_8 = arith.constant 0 : index
    %10 = vector.load %arg6[%c0_7, %c0_8] : memref<128x8xf32, #tpu.memory_space<vmem>>, vector<128x8xf32>
    tpu.vector_store %arg6[%c0_7, %c0_8], %9 {strides = array<i32>} : memref<128x8xf32, #tpu.memory_space<vmem>>, vector<128x8xf32>,
    %c0_i32_9 = arith.constant 0 : i32
    %11 = arith.cmpi eq, %arg2, %c0_i32_9 : i32
    %12 = arith.extui %11 : i1 to i32
    %c0_i32_10 = arith.constant 0 : i32
    %13 = arith.cmpi ne, %12, %c0_i32_10 : i32
    scf.if %13 {
      %c0_11 = arith.constant 0 : index
      %c0_12 = arith.constant 0 : index
      %14 = vector.load %arg6[%c0_11, %c0_12] : memref<128x8xf32, #tpu.memory_space<vmem>>, vector<128x8xf32>
      %15 = arith.truncf %14 : vector<128x8xf32> to vector<128x8xbf16>
      %c0_13 = arith.constant 0 : index
      %c0_14 = arith.constant 0 : index
      %c0_15 = arith.constant 0 : index
      %16 = vector.load %arg5[%c0_13, %c0_14, %c0_15] : memref<1x128x8xbf16, #tpu.memory_space<vmem>>, vector<1x128x8xbf16>
      %17 = vector.shape_cast %16 : vector<1x128x8xbf16> to vector<128x8xbf16>
      %18 = vector.shape_cast %15 : vector<128x8xbf16> to vector<1x128x8xbf16>
      tpu.vector_store %arg5[%c0_13, %c0_14, %c0_15], %18 {strides = array<i32>} : memref<1x128x8xbf16, #tpu.memory_space<vmem>>, vector<1x128x8xbf16>,
    } else {
    }
    return
  }
  func.func @transform_0(%arg0: i32, %arg1: i32, %arg2: i32) -> (i32, i32) {
    %c0_i32 = arith.constant 0 : i32
    return %arg0, %arg2 : i32, i32
  }
  func.func @transform_1(%arg0: i32, %arg1: i32, %arg2: i32) -> (i32, i32, i32) {
    %c0_i32 = arith.constant 0 : i32
    %c0_i32_0 = arith.constant 0 : i32
    return %arg1, %arg2, %c0_i32 : i32, i32, i32
  }
  func.func @transform_2(%arg0: i32, %arg1: i32, %arg2: i32) -> (i32, i32, i32) {
    %c0_i32 = arith.constant 0 : i32
    %c0_i32_0 = arith.constant 0 : i32
    return %arg1, %arg0, %c0_i32 : i32, i32, i32
  }
}

module attributes {stable_mosaic.version = 11 : i64} {
  func.func @_fused_linear_kernel(%arg0: i32, %arg1: i32, %arg2: i32, %arg3: memref<1x32x8xbf16, #tpu.memory_space<vmem>>, %arg4: memref<1x8x32xbf16, #tpu.memory_space<vmem>>, %arg5: memref<1x32xf32, #tpu.memory_space<vmem>>, %arg6: memref<32x32xf32, #tpu.memory_space<vmem>>, %arg7: memref<32x32xf32, #tpu.memory_space<vmem>>, %arg8: memref<32x32xf32, #tpu.memory_space<vmem>>) attributes {dimension_semantics = [#tpu.dimension_semantics<parallel>, #tpu.dimension_semantics<parallel>, #tpu.dimension_semantics<arbitrary>], iteration_bounds = array<i64: 1, 1, 4>, scalar_prefetch = 0 : i64, scratch_operands = 1 : i64, tpu.core_type = #tpu.core_type<tc>, window_params = [{transform_indices = @transform_0, window_bounds = array<i64: 1, 32, 8>}, {transform_indices = @transform_1, window_bounds = array<i64: 1, 8, 32>}, {transform_indices = @transform_2, window_bounds = array<i64: 1, 32>}, {transform_indices = @transform_3, window_bounds = array<i64: 32, 32>}, {transform_indices = @transform_4, window_bounds = array<i64: 32, 32>}]} {
    %c0_i32 = arith.constant 0 : i32
    %0 = arith.cmpi eq, %arg2, %c0_i32 : i32
    %1 = arith.extui %0 : i1 to i32
    %c0_i32_0 = arith.constant 0 : i32
    %2 = arith.cmpi ne, %1, %c0_i32_0 : i32
    scf.if %2 {
      %cst_11 = arith.constant 0.000000e+00 : f32
      %14 = vector.broadcast %cst_11 : f32 to vector<32x32xf32>
      %c0_12 = arith.constant 0 : index
      %c0_13 = arith.constant 0 : index
      %15 = vector.load %arg8[%c0_12, %c0_13] : memref<32x32xf32, #tpu.memory_space<vmem>>, vector<32x32xf32>
      tpu.vector_store %arg8[%c0_12, %c0_13], %14 {strides = array<i32>} : memref<32x32xf32, #tpu.memory_space<vmem>>, vector<32x32xf32>,
    } else {
    }
    %c0 = arith.constant 0 : index
    %c0_1 = arith.constant 0 : index
    %c0_2 = arith.constant 0 : index
    %3 = vector.load %arg3[%c0, %c0_1, %c0_2] : memref<1x32x8xbf16, #tpu.memory_space<vmem>>, vector<1x32x8xbf16>
    %4 = vector.shape_cast %3 : vector<1x32x8xbf16> to vector<32x8xbf16>
    %c0_3 = arith.constant 0 : index
    %c0_4 = arith.constant 0 : index
    %5 = vector.load %arg8[%c0_3, %c0_4] : memref<32x32xf32, #tpu.memory_space<vmem>>, vector<32x32xf32>
    %c0_5 = arith.constant 0 : index
    %c0_6 = arith.constant 0 : index
    %c0_7 = arith.constant 0 : index
    %6 = vector.load %arg4[%c0_5, %c0_6, %c0_7] : memref<1x8x32xbf16, #tpu.memory_space<vmem>>, vector<1x8x32xbf16>
    %7 = vector.shape_cast %6 : vector<1x8x32xbf16> to vector<8x32xbf16>
    %cst = arith.constant dense<0.000000e+00> : vector<32x32xf32>
    %8 = tpu.matmul %4, %7, %cst {dimension_numbers = #tpu.dot_dimension_numbers<[1], [0], [0], [1], [0, 0, 1, 1], [], []>} : vector<32x8xbf16>, vector<8x32xbf16>, vector<32x32xf32> -> vector<32x32xf32>
    %9 = arith.addf %5, %8 : vector<32x32xf32>
    %c0_8 = arith.constant 0 : index
    %c0_9 = arith.constant 0 : index
    %10 = vector.load %arg8[%c0_8, %c0_9] : memref<32x32xf32, #tpu.memory_space<vmem>>, vector<32x32xf32>
    tpu.vector_store %arg8[%c0_8, %c0_9], %9 {strides = array<i32>} : memref<32x32xf32, #tpu.memory_space<vmem>>, vector<32x32xf32>,
    %c3_i32 = arith.constant 3 : i32
    %11 = arith.cmpi eq, %arg2, %c3_i32 : i32
    %12 = arith.extui %11 : i1 to i32
    %c0_i32_10 = arith.constant 0 : i32
    %13 = arith.cmpi ne, %12, %c0_i32_10 : i32
    scf.if %13 {
      %c0_11 = arith.constant 0 : index
      %c0_12 = arith.constant 0 : index
      %14 = vector.load %arg8[%c0_11, %c0_12] : memref<32x32xf32, #tpu.memory_space<vmem>>, vector<32x32xf32>
      %c0_13 = arith.constant 0 : index
      %c0_14 = arith.constant 0 : index
      %15 = vector.load %arg5[%c0_13, %c0_14] : memref<1x32xf32, #tpu.memory_space<vmem>>, vector<1x32xf32>
      %16 = vector.broadcast %15 : vector<1x32xf32> to vector<32x32xf32>
      %17 = arith.addf %14, %16 : vector<32x32xf32>
      %c0_15 = arith.constant 0 : index
      %c0_16 = arith.constant 0 : index
      %18 = vector.load %arg6[%c0_15, %c0_16] : memref<32x32xf32, #tpu.memory_space<vmem>>, vector<32x32xf32>
      %cst_17 = arith.constant 1.000000e+00 : f32
      %19 = vector.broadcast %cst_17 : f32 to vector<32x32xf32>
      %20 = arith.mulf %19, %17 : vector<32x32xf32>
      %21 = arith.addf %18, %20 : vector<32x32xf32>
      %c0_18 = arith.constant 0 : index
      %c0_19 = arith.constant 0 : index
      %22 = vector.load %arg7[%c0_18, %c0_19] : memref<32x32xf32, #tpu.memory_space<vmem>>, vector<32x32xf32>
      tpu.vector_store %arg7[%c0_18, %c0_19], %21 {strides = array<i32>} : memref<32x32xf32, #tpu.memory_space<vmem>>, vector<32x32xf32>,
    } else {
    }
    return
  }
  func.func @transform_0(%arg0: i32, %arg1: i32, %arg2: i32) -> (i32, i32, i32) {
    %c0_i32 = arith.constant 0 : i32
    %c0_i32_0 = arith.constant 0 : i32
    return %arg2, %arg0, %c0_i32 : i32, i32, i32
  }
  func.func @transform_1(%arg0: i32, %arg1: i32, %arg2: i32) -> (i32, i32, i32) {
    %c0_i32 = arith.constant 0 : i32
    %c0_i32_0 = arith.constant 0 : i32
    return %arg2, %c0_i32, %arg1 : i32, i32, i32
  }
  func.func @transform_2(%arg0: i32, %arg1: i32, %arg2: i32) -> (i32, i32) {
    %c0_i32 = arith.constant 0 : i32
    %c0_i32_0 = arith.constant 0 : i32
    return %c0_i32, %arg1 : i32, i32
  }
  func.func @transform_3(%arg0: i32, %arg1: i32, %arg2: i32) -> (i32, i32) {
    %c0_i32 = arith.constant 0 : i32
    return %arg0, %arg1 : i32, i32
  }
  func.func @transform_4(%arg0: i32, %arg1: i32, %arg2: i32) -> (i32, i32) {
    %c0_i32 = arith.constant 0 : i32
    return %arg0, %arg1 : i32, i32
  }
}

module attributes {stable_mosaic.version = 11 : i64} {
  func.func @_fused_linear_kernel(%arg0: i32, %arg1: i32, %arg2: i32, %arg3: memref<32x32xf32, #tpu.memory_space<vmem>>, %arg4: memref<32x64xbf16, #tpu.memory_space<vmem>>, %arg5: memref<1x64xf32, #tpu.memory_space<vmem>>, %arg6: memref<1x32xf32, #tpu.memory_space<vmem>>, %arg7: memref<1x32xf32, #tpu.memory_space<vmem>>, %arg8: memref<32x32xbf16, #tpu.memory_space<vmem>>, %arg9: memref<32x64xf32, #tpu.memory_space<vmem>>) attributes {dimension_semantics = [#tpu.dimension_semantics<parallel>, #tpu.dimension_semantics<parallel>, #tpu.dimension_semantics<arbitrary>], iteration_bounds = array<i64: 1, 1, 1>, scalar_prefetch = 0 : i64, scratch_operands = 1 : i64, tpu.core_type = #tpu.core_type<tc>, window_params = [{transform_indices = @transform_0, window_bounds = array<i64: 32, 32>}, {transform_indices = @transform_1, window_bounds = array<i64: 32, 64>}, {transform_indices = @transform_2, window_bounds = array<i64: 1, 64>}, {transform_indices = @transform_3, window_bounds = array<i64: 1, 32>}, {transform_indices = @transform_4, window_bounds = array<i64: 1, 32>}, {transform_indices = @transform_5, window_bounds = array<i64: 32, 32>}]} {
    %c0_i32 = arith.constant 0 : i32
    %0 = arith.cmpi eq, %arg2, %c0_i32 : i32
    %1 = arith.extui %0 : i1 to i32
    %c0_i32_0 = arith.constant 0 : i32
    %2 = arith.cmpi ne, %1, %c0_i32_0 : i32
    scf.if %2 {
      %cst_19 = arith.constant 0.000000e+00 : f32
      %37 = vector.broadcast %cst_19 : f32 to vector<32x64xf32>
      %c0_20 = arith.constant 0 : index
      %c0_21 = arith.constant 0 : index
      %38 = vector.load %arg9[%c0_20, %c0_21] : memref<32x64xf32, #tpu.memory_space<vmem>>, vector<32x64xf32>
      tpu.vector_store %arg9[%c0_20, %c0_21], %37 {strides = array<i32>} : memref<32x64xf32, #tpu.memory_space<vmem>>, vector<32x64xf32>,
    } else {
    }
    %c0 = arith.constant 0 : index
    %c0_1 = arith.constant 0 : index
    %3 = vector.load %arg3[%c0, %c0_1] : memref<32x32xf32, #tpu.memory_space<vmem>>, vector<32x32xf32>
    %cst = arith.constant dense<0.000000e+00> : vector<32xf32>
    %4 = vector.multi_reduction <add>, %3, %cst [1] : vector<32x32xf32> to vector<32xf32>
    %5 = vector.shape_cast %4 : vector<32xf32> to vector<32x1xf32>
    %cst_2 = arith.constant 3.200000e+01 : f32
    %6 = vector.broadcast %cst_2 : f32 to vector<32x1xf32>
    %7 = arith.divf %5, %6 : vector<32x1xf32>
    %8 = vector.broadcast %7 : vector<32x1xf32> to vector<32x32xf32>
    %9 = arith.subf %3, %8 : vector<32x32xf32>
    %10 = arith.mulf %9, %9 : vector<32x32xf32>
    %cst_3 = arith.constant dense<0.000000e+00> : vector<32xf32>
    %11 = vector.multi_reduction <add>, %10, %cst_3 [1] : vector<32x32xf32> to vector<32xf32>
    %12 = vector.shape_cast %11 : vector<32xf32> to vector<32x1xf32>
    %cst_4 = arith.constant 3.200000e+01 : f32
    %13 = vector.broadcast %cst_4 : f32 to vector<32x1xf32>
    %14 = arith.divf %12, %13 : vector<32x1xf32>
    %15 = vector.broadcast %7 : vector<32x1xf32> to vector<32x32xf32>
    %16 = arith.subf %3, %15 : vector<32x32xf32>
    %cst_5 = arith.constant 9.99999974E-6 : f32
    %17 = vector.broadcast %cst_5 : f32 to vector<32x1xf32>
    %18 = arith.addf %14, %17 : vector<32x1xf32>
    %19 = math.rsqrt %18 : vector<32x1xf32>
    %20 = vector.broadcast %19 : vector<32x1xf32> to vector<32x32xf32>
    %21 = arith.mulf %16, %20 : vector<32x32xf32>
    %c0_6 = arith.constant 0 : index
    %c0_7 = arith.constant 0 : index
    %22 = vector.load %arg6[%c0_6, %c0_7] : memref<1x32xf32, #tpu.memory_space<vmem>>, vector<1x32xf32>
    %23 = vector.broadcast %22 : vector<1x32xf32> to vector<32x32xf32>
    %24 = arith.mulf %21, %23 : vector<32x32xf32>
    %c0_8 = arith.constant 0 : index
    %c0_9 = arith.constant 0 : index
    %25 = vector.load %arg7[%c0_8, %c0_9] : memref<1x32xf32, #tpu.memory_space<vmem>>, vector<1x32xf32>
    %26 = vector.broadcast %25 : vector<1x32xf32> to vector<32x32xf32>
    %27 = arith.addf %24, %26 : vector<32x32xf32>
    %28 = arith.truncf %27 : vector<32x32xf32> to vector<32x32xbf16>
    %c0_10 = arith.constant 0 : index
    %c0_11 = arith.constant 0 : index
    %29 = vector.load %arg9[%c0_10, %c0_11] : memref<32x64xf32, #tpu.memory_space<vmem>>, vector<32x64xf32>
    %c0_12 = arith.constant 0 : index
    %c0_13 = arith.constant 0 : index
    %30 = vector.load %arg4[%c0_12, %c0_13] : memref<32x64xbf16, #tpu.memory_space<vmem>>, vector<32x64xbf16>
    %cst_14 = arith.constant dense<0.000000e+00> : vector<32x64xf32>
    %31 = tpu.matmul %28, %30, %cst_14 {dimension_numbers = #tpu.dot_dimension_numbers<[1], [0], [0], [1], [0, 0, 1, 1], [], []>} : vector<32x32xbf16>, vector<32x64xbf16>, vector<32x64xf32> -> vector<32x64xf32>
    %32 = arith.addf %29, %31 : vector<32x64xf32>
    %c0_15 = arith.constant 0 : index
    %c0_16 = arith.constant 0 : index
    %33 = vector.load %arg9[%c0_15, %c0_16] : memref<32x64xf32, #tpu.memory_space<vmem>>, vector<32x64xf32>
    tpu.vector_store %arg9[%c0_15, %c0_16], %32 {strides = array<i32>} : memref<32x64xf32, #tpu.memory_space<vmem>>, vector<32x64xf32>,
    %c0_i32_17 = arith.constant 0 : i32
    %34 = arith.cmpi eq, %arg2, %c0_i32_17 : i32
    %35 = arith.extui %34 : i1 to i32
    %c0_i32_18 = arith.constant 0 : i32
    %36 = arith.cmpi ne, %35, %c0_i32_18 : i32
    scf.if %36 {
      %c0_19 = arith.constant 0 : index
      %c0_20 = arith.constant 0 : index
      %37 = vector.load %arg9[%c0_19, %c0_20] : memref<32x64xf32, #tpu.memory_space<vmem>>, vector<32x64xf32>
      %c0_21 = arith.constant 0 : index
      %c0_22 = arith.constant 0 : index
      %38 = vector.load %arg5[%c0_21, %c0_22] : memref<1x64xf32, #tpu.memory_space<vmem>>, vector<1x64xf32>
      %39 = vector.broadcast %38 : vector<1x64xf32> to vector<32x64xf32>
      %40 = arith.addf %37, %39 : vector<32x64xf32>
      %41 = vector.extract_strided_slice %40 {offsets = [0, 0], sizes = [32, 32], strides = [1, 1]} : vector<32x64xf32> to vector<32x32xf32>
      %42 = vector.extract_strided_slice %40 {offsets = [0, 32], sizes = [32, 32], strides = [1, 1]} : vector<32x64xf32> to vector<32x32xf32>
      %43 = arith.negf %42 : vector<32x32xf32>
      %44 = math.exp %43 : vector<32x32xf32>
      %cst_23 = arith.constant 1.000000e+00 : f32
      %45 = vector.broadcast %cst_23 : f32 to vector<32x32xf32>
      %46 = arith.addf %45, %44 : vector<32x32xf32>
      %47 = arith.divf %45, %46 : vector<32x32xf32>
      %48 = arith.mulf %41, %47 : vector<32x32xf32>
      %49 = arith.truncf %48 : vector<32x32xf32> to vector<32x32xbf16>
      %c0_24 = arith.constant 0 : index
      %c0_25 = arith.constant 0 : index
      %50 = vector.load %arg8[%c0_24, %c0_25] : memref<32x32xbf16, #tpu.memory_space<vmem>>, vector<32x32xbf16>
      tpu.vector_store %arg8[%c0_24, %c0_25], %49 {strides = array<i32>} : memref<32x32xbf16, #tpu.memory_space<vmem>>, vector<32x32xbf16>,
    } else {
    }
    return
  }
  func.func @transform_0(%arg0: i32, %arg1: i32, %arg2: i32) -> (i32, i32) {
    %c0_i32 = arith.constant 0 : i32
    return %arg0, %arg2 : i32, i32
  }
  func.func @transform_1(%arg0: i32, %arg1: i32, %arg2: i32) -> (i32, i32) {
    %c0_i32 = arith.constant 0 : i32
    return %arg2, %arg1 : i32, i32
  }
  func.func @transform_2(%arg0: i32, %arg1: i32, %arg2: i32) -> (i32, i32) {
    %c0_i32 = arith.constant 0 : i32
    %c0_i32_0 = arith.constant 0 : i32
    return %c0_i32, %arg1 : i32, i32
  }
  func.func @transform_3(%arg0: i32, %arg1: i32, %arg2: i32) -> (i32, i32) {
    %c0_i32 = arith.constant 0 : i32
    %c0_i32_0 = arith.constant 0 : i32
    return %c0_i32, %arg2 : i32, i32
  }
  func.func @transform_4(%arg0: i32, %arg1: i32, %arg2: i32) -> (i32, i32) {
    %c0_i32 = arith.constant 0 : i32
    %c0_i32_0 = arith.constant 0 : i32
    return %c0_i32, %arg2 : i32, i32
  }
  func.func @transform_5(%arg0: i32, %arg1: i32, %arg2: i32) -> (i32, i32) {
    %c0_i32 = arith.constant 0 : i32
    return %arg0, %arg1 : i32, i32
  }
}

module attributes {stable_mosaic.version = 11 : i64} {
  func.func @_mha_kernel(%arg0: i32, %arg1: i32, %arg2: memref<1x1x16x24xbf16, #tpu.memory_space<vmem>>, %arg3: memref<1x128x8xbf16, #tpu.memory_space<vmem>>, %arg4: memref<1x1x8xf32, #tpu.memory_space<vmem>>, %arg5: memref<1x1x8xf32, #tpu.memory_space<vmem>>, %arg6: memref<1x1x16x8xbf16, #tpu.memory_space<vmem>>, %arg7: memref<1x1x16x16xbf16, #tpu.memory_space<vmem>>) attributes {dimension_semantics = [#tpu.dimension_semantics<parallel>, #tpu.dimension_semantics<parallel>], iteration_bounds = array<i64: 2, 4>, scalar_prefetch = 0 : i64, scratch_operands = 0 : i64, tpu.core_type = #tpu.core_type<tc>, window_params = [{transform_indices = @transform_0, window_bounds = array<i64: 1, 1, 16, 24>}, {transform_indices = @transform_1, window_bounds = array<i64: 1, 128, 8>}, {transform_indices = @transform_2, window_bounds = array<i64: 1, 1, 8>}, {transform_indices = @transform_3, window_bounds = array<i64: 1, 1, 8>}, {transform_indices = @transform_4, window_bounds = array<i64: 1, 1, 16, 8>}, {transform_indices = @transform_5, window_bounds = array<i64: 1, 1, 16, 16>}]} {
    %c0 = arith.constant 0 : index
    %c0_0 = arith.constant 0 : index
    %c0_1 = arith.constant 0 : index
    %c0_2 = arith.constant 0 : index
    %0 = vector.load %arg2[%c0, %c0_0, %c0_1, %c0_2] : memref<1x1x16x24xbf16, #tpu.memory_space<vmem>>, vector<1x1x16x24xbf16>
    %1 = vector.shape_cast %0 : vector<1x1x16x24xbf16> to vector<16x24xbf16>
    %2 = vector.extract_strided_slice %1 {offsets = [0, 0], sizes = [16, 8], strides = [1, 1]} : vector<16x24xbf16> to vector<16x8xbf16>
    %3 = arith.extf %2 : vector<16x8xbf16> to vector<16x8xf32>
    %4 = vector.extract_strided_slice %1 {offsets = [0, 8], sizes = [16, 8], strides = [1, 1]} : vector<16x24xbf16> to vector<16x8xbf16>
    %5 = vector.extract_strided_slice %1 {offsets = [0, 16], sizes = [16, 8], strides = [1, 1]} : vector<16x24xbf16> to vector<16x8xbf16>
    %c0_3 = arith.constant 0 : index
    %c0_4 = arith.constant 0 : index
    %c0_5 = arith.constant 0 : index
    %6 = vector.load %arg3[%c0_3, %c0_4, %c0_5] : memref<1x128x8xbf16, #tpu.memory_space<vmem>>, vector<1x128x8xbf16>
    %7 = vector.shape_cast %6 : vector<1x128x8xbf16> to vector<128x8xbf16>
    %c0_6 = arith.constant 0 : index
    %c0_7 = arith.constant 0 : index
    %c0_8 = arith.constant 0 : index
    %8 = vector.load %arg4[%c0_6, %c0_7, %c0_8] : memref<1x1x8xf32, #tpu.memory_space<vmem>>, vector<1x1x8xf32>
    %9 = vector.shape_cast %8 : vector<1x1x8xf32> to vector<1x8xf32>
    %c0_9 = arith.constant 0 : index
    %c0_10 = arith.constant 0 : index
    %c0_11 = arith.constant 0 : index
    %10 = vector.load %arg5[%c0_9, %c0_10, %c0_11] : memref<1x1x8xf32, #tpu.memory_space<vmem>>, vector<1x1x8xf32>
    %11 = vector.shape_cast %10 : vector<1x1x8xf32> to vector<1x8xf32>
    %12 = vector.broadcast %9 : vector<1x8xf32> to vector<16x8xf32>
    %13 = arith.addf %3, %12 : vector<16x8xf32>
    %14 = arith.truncf %13 : vector<16x8xf32> to vector<16x8xbf16>
    %15 = vector.broadcast %11 : vector<1x8xf32> to vector<16x8xf32>
    %16 = arith.addf %3, %15 : vector<16x8xf32>
    %17 = arith.truncf %16 : vector<16x8xf32> to vector<16x8xbf16>
    %cst = arith.constant dense<0.000000e+00> : vector<16x16xf32>
    %18 = tpu.matmul %14, %4, %cst {dimension_numbers = #tpu.dot_dimension_numbers<[1], [1], [0], [0], [0, 0, 1, 0], [], []>} : vector<16x8xbf16>, vector<16x8xbf16>, vector<16x16xf32> -> vector<16x16xf32>
    %cst_12 = arith.constant dense<0.000000e+00> : vector<16x128xf32>
    %19 = tpu.matmul %17, %7, %cst_12 {dimension_numbers = #tpu.dot_dimension_numbers<[1], [1], [0], [0], [0, 0, 1, 0], [], []>} : vector<16x8xbf16>, vector<128x8xbf16>, vector<16x128xf32> -> vector<16x128xf32>
    %20 = tpu.iota {dimensions = array<i32: 0>} : vector<16x1xi32>
    %c15_i32 = arith.constant 15 : i32
    %21 = vector.broadcast %c15_i32 : i32 to vector<16x1xi32>
    %22 = arith.subi %21, %20 : vector<16x1xi32>
    %c8_i32 = arith.constant 8 : i32
    %23 = vector.broadcast %c8_i32 : i32 to vector<16x1xi32>
    %24 = arith.andi %22, %23 : vector<16x1xi32>
    %c0_i32 = arith.constant 0 : i32
    %25 = vector.broadcast %c0_i32 : i32 to vector<16x1xi32>
    %26 = arith.cmpi ne, %24, %25 : vector<16x1xi32>
    %27 = vector.extract_strided_slice %19 {offsets = [0, 8], sizes = [16, 23], strides = [1, 1]} : vector<16x128xf32> to vector<16x23xf32>
    %28 = vector.extract_strided_slice %19 {offsets = [0, 0], sizes = [16, 23], strides = [1, 1]} : vector<16x128xf32> to vector<16x23xf32>
    %29 = vector.shape_cast %26 : vector<16x1xi1> to vector<16x1xi1>
    %30 = vector.broadcast %29 : vector<16x1xi1> to vector<16x23xi1>
    %31 = arith.select %30, %27, %28 : vector<16x23xi1>, vector<16x23xf32>
    %c4_i32 = arith.constant 4 : i32
    %32 = vector.broadcast %c4_i32 : i32 to vector<16x1xi32>
    %33 = arith.andi %22, %32 : vector<16x1xi32>
    %c0_i32_13 = arith.constant 0 : i32
    %34 = vector.broadcast %c0_i32_13 : i32 to vector<16x1xi32>
    %35 = arith.cmpi ne, %33, %34 : vector<16x1xi32>
    %36 = vector.extract_strided_slice %31 {offsets = [0, 4], sizes = [16, 19], strides = [1, 1]} : vector<16x23xf32> to vector<16x19xf32>
    %37 = vector.extract_strided_slice %31 {offsets = [0, 0], sizes = [16, 19], strides = [1, 1]} : vector<16x23xf32> to vector<16x19xf32>
    %38 = vector.shape_cast %35 : vector<16x1xi1> to vector<16x1xi1>
    %39 = vector.broadcast %38 : vector<16x1xi1> to vector<16x19xi1>
    %40 = arith.select %39, %36, %37 : vector<16x19xi1>, vector<16x19xf32>
    %c2_i32 = arith.constant 2 : i32
    %41 = vector.broadcast %c2_i32 : i32 to vector<16x1xi32>
    %42 = arith.andi %22, %41 : vector<16x1xi32>
    %c0_i32_14 = arith.constant 0 : i32
    %43 = vector.broadcast %c0_i32_14 : i32 to vector<16x1xi32>
    %44 = arith.cmpi ne, %42, %43 : vector<16x1xi32>
    %45 = vector.extract_strided_slice %40 {offsets = [0, 2], sizes = [16, 17], strides = [1, 1]} : vector<16x19xf32> to vector<16x17xf32>
    %46 = vector.extract_strided_slice %40 {offsets = [0, 0], sizes = [16, 17], strides = [1, 1]} : vector<16x19xf32> to vector<16x17xf32>
    %47 = vector.shape_cast %44 : vector<16x1xi1> to vector<16x1xi1>
    %48 = vector.broadcast %47 : vector<16x1xi1> to vector<16x17xi1>
    %49 = arith.select %48, %45, %46 : vector<16x17xi1>, vector<16x17xf32>
    %c1_i32 = arith.constant 1 : i32
    %50 = vector.broadcast %c1_i32 : i32 to vector<16x1xi32>
    %51 = arith.andi %22, %50 : vector<16x1xi32>
    %c0_i32_15 = arith.constant 0 : i32
    %52 = vector.broadcast %c0_i32_15 : i32 to vector<16x1xi32>
    %53 = arith.cmpi ne, %51, %52 : vector<16x1xi32>
    %54 = vector.extract_strided_slice %49 {offsets = [0, 1], sizes = [16, 16], strides = [1, 1]} : vector<16x17xf32> to vector<16x16xf32>
    %55 = vector.extract_strided_slice %49 {offsets = [0, 0], sizes = [16, 16], strides = [1, 1]} : vector<16x17xf32> to vector<16x16xf32>
    %56 = vector.shape_cast %53 : vector<16x1xi1> to vector<16x1xi1>
    %57 = vector.broadcast %56 : vector<16x1xi1> to vector<16x16xi1>
    %58 = arith.select %57, %54, %55 : vector<16x16xi1>, vector<16x16xf32>
    %59 = arith.addf %18, %58 : vector<16x16xf32>
    %cst_16 = arith.constant 0.176776692 : f32
    %60 = vector.broadcast %cst_16 : f32 to vector<16x16xf32>
    %61 = arith.mulf %59, %60 : vector<16x16xf32>
    %cst_17 = arith.constant dense<0xFF800000> : vector<16xf32>
    %62 = vector.multi_reduction <maximumf>, %61, %cst_17 [1] : vector<16x16xf32> to vector<16xf32>
    %63 = vector.shape_cast %62 : vector<16xf32> to vector<16x1xf32>
    %64 = vector.broadcast %63 : vector<16x1xf32> to vector<16x16xf32>
    %65 = arith.subf %61, %64 : vector<16x16xf32>
    %66 = math.exp %65 : vector<16x16xf32>
    %cst_18 = arith.constant dense<0.000000e+00> : vector<16xf32>
    %67 = vector.multi_reduction <add>, %66, %cst_18 [1] : vector<16x16xf32> to vector<16xf32>
    %68 = vector.shape_cast %67 : vector<16xf32> to vector<16x1xf32>
    %69 = tpu.reciprocal %68 {approx = true} : vector<16x1xf32> -> vector<16x1xf32>
    %70 = vector.broadcast %69 : vector<16x1xf32> to vector<16x16xf32>
    %71 = arith.mulf %66, %70 : vector<16x16xf32>
    %72 = arith.truncf %71 : vector<16x16xf32> to vector<16x16xbf16>
    %c0_19 = arith.constant 0 : index
    %c0_20 = arith.constant 0 : index
    %c0_21 = arith.constant 0 : index
    %c0_22 = arith.constant 0 : index
    %73 = vector.load %arg7[%c0_19, %c0_20, %c0_21, %c0_22] : memref<1x1x16x16xbf16, #tpu.memory_space<vmem>>, vector<1x1x16x16xbf16>
    %74 = vector.shape_cast %73 : vector<1x1x16x16xbf16> to vector<16x16xbf16>
    %75 = vector.shape_cast %72 : vector<16x16xbf16> to vector<1x1x16x16xbf16>
    tpu.vector_store %arg7[%c0_19, %c0_20, %c0_21, %c0_22], %75 {strides = array<i32>} : memref<1x1x16x16xbf16, #tpu.memory_space<vmem>>, vector<1x1x16x16xbf16>,
    %76 = arith.truncf %71 : vector<16x16xf32> to vector<16x16xbf16>
    %cst_23 = arith.constant dense<0.000000e+00> : vector<16x8xf32>
    %77 = tpu.matmul %76, %5, %cst_23 {dimension_numbers = #tpu.dot_dimension_numbers<[1], [0], [0], [1], [0, 0, 1, 1], [], []>} : vector<16x16xbf16>, vector<16x8xbf16>, vector<16x8xf32> -> vector<16x8xf32>
    %78 = arith.truncf %77 : vector<16x8xf32> to vector<16x8xbf16>
    %c0_24 = arith.constant 0 : index
    %c0_25 = arith.constant 0 : index
    %c0_26 = arith.constant 0 : index
    %c0_27 = arith.constant 0 : index
    %79 = vector.load %arg6[%c0_24, %c0_25, %c0_26, %c0_27] : memref<1x1x16x8xbf16, #tpu.memory_space<vmem>>, vector<1x1x16x8xbf16>
    %80 = vector.shape_cast %79 : vector<1x1x16x8xbf16> to vector<16x8xbf16>
    %81 = vector.shape_cast %78 : vector<16x8xbf16> to vector<1x1x16x8xbf16>
    tpu.vector_store %arg6[%c0_24, %c0_25, %c0_26, %c0_27], %81 {strides = array<i32>} : memref<1x1x16x8xbf16, #tpu.memory_space<vmem>>, vector<1x1x16x8xbf16>,
    return
  }
  func.func @transform_0(%arg0: i32, %arg1: i32) -> (i32, i32, i32, i32) {
    %c0_i32 = arith.constant 0 : i32
    %c0_i32_0 = arith.constant 0 : i32
    %c0_i32_1 = arith.constant 0 : i32
    return %arg1, %arg0, %c0_i32, %c0_i32_0 : i32, i32, i32, i32
  }
  func.func @transform_1(%arg0: i32, %arg1: i32) -> (i32, i32, i32) {
    %c0_i32 = arith.constant 0 : i32
    %c0_i32_0 = arith.constant 0 : i32
    %c0_i32_1 = arith.constant 0 : i32
    return %arg1, %c0_i32, %c0_i32_0 : i32, i32, i32
  }
  func.func @transform_2(%arg0: i32, %arg1: i32) -> (i32, i32, i32) {
    %c0_i32 = arith.constant 0 : i32
    %c0_i32_0 = arith.constant 0 : i32
    %c0_i32_1 = arith.constant 0 : i32
    return %arg1, %c0_i32, %c0_i32_0 : i32, i32, i32
  }
  func.func @transform_3(%arg0: i32, %arg1: i32) -> (i32, i32, i32) {
    %c0_i32 = arith.constant 0 : i32
    %c0_i32_0 = arith.constant 0 : i32
    %c0_i32_1 = arith.constant 0 : i32
    return %arg1, %c0_i32, %c0_i32_0 : i32, i32, i32
  }
  func.func @transform_4(%arg0: i32, %arg1: i32) -> (i32, i32, i32, i32) {
    %c0_i32 = arith.constant 0 : i32
    %c0_i32_0 = arith.constant 0 : i32
    %c0_i32_1 = arith.constant 0 : i32
    return %arg1, %arg0, %c0_i32, %c0_i32_0 : i32, i32, i32, i32
  }
  func.func @transform_5(%arg0: i32, %arg1: i32) -> (i32, i32, i32, i32) {
    %c0_i32 = arith.constant 0 : i32
    %c0_i32_0 = arith.constant 0 : i32
    %c0_i32_1 = arith.constant 0 : i32
    return %arg0, %arg1, %c0_i32, %c0_i32_0 : i32, i32, i32, i32
  }
}

module attributes {stable_mosaic.version = 11 : i64} {
  func.func @_dwconv_stats_kernel(%arg0: i32, %arg1: memref<1x22x32xbf16, #tpu.memory_space<vmem>>, %arg2: memref<7x32xf32, #tpu.memory_space<vmem>>, %arg3: memref<1x32xf32, #tpu.memory_space<vmem>>, %arg4: memref<1x16x32xbf16, #tpu.memory_space<vmem>>, %arg5: memref<1x1x32xf32, #tpu.memory_space<vmem>>, %arg6: memref<1x1x32xf32, #tpu.memory_space<vmem>>) attributes {dimension_semantics = [#tpu.dimension_semantics<parallel>], iteration_bounds = array<i64: 2>, scalar_prefetch = 0 : i64, scratch_operands = 0 : i64, tpu.core_type = #tpu.core_type<tc>, window_params = [{transform_indices = @transform_0, window_bounds = array<i64: 1, 22, 32>}, {pipeline_mode = #tpu.pipeline_mode<synchronous>, transform_indices = @transform_1, window_bounds = array<i64: 7, 32>}, {pipeline_mode = #tpu.pipeline_mode<synchronous>, transform_indices = @transform_2, window_bounds = array<i64: 1, 32>}, {transform_indices = @transform_3, window_bounds = array<i64: 1, 16, 32>}, {transform_indices = @transform_4, window_bounds = array<i64: 1, 1, 32>}, {transform_indices = @transform_5, window_bounds = array<i64: 1, 1, 32>}]} {
    %c0 = arith.constant 0 : index
    %c0_0 = arith.constant 0 : index
    %0 = vector.load %arg2[%c0, %c0_0] : memref<7x32xf32, #tpu.memory_space<vmem>>, vector<7x32xf32>
    %cst = arith.constant 0.000000e+00 : f32
    %1 = vector.broadcast %cst : f32 to vector<16x32xf32>
    %c0_1 = arith.constant 0 : index
    %c0_2 = arith.constant 0 : index
    %c0_3 = arith.constant 0 : index
    %2 = vector.load %arg1[%c0_1, %c0_2, %c0_3] : memref<1x22x32xbf16, #tpu.memory_space<vmem>>, vector<1x16x32xbf16>
    %3 = vector.shape_cast %2 : vector<1x16x32xbf16> to vector<16x32xbf16>
    %4 = arith.extf %3 : vector<16x32xbf16> to vector<16x32xf32>
    %5 = vector.extract_strided_slice %0 {offsets = [0, 0], sizes = [1, 32], strides = [1, 1]} : vector<7x32xf32> to vector<1x32xf32>
    %6 = vector.broadcast %5 : vector<1x32xf32> to vector<16x32xf32>
    %7 = arith.mulf %4, %6 : vector<16x32xf32>
    %8 = arith.addf %1, %7 : vector<16x32xf32>
    %c0_4 = arith.constant 0 : index
    %c1 = arith.constant 1 : index
    %c0_5 = arith.constant 0 : index
    %9 = vector.load %arg1[%c0_4, %c1, %c0_5] : memref<1x22x32xbf16, #tpu.memory_space<vmem>>, vector<1x16x32xbf16>
    %10 = vector.shape_cast %9 : vector<1x16x32xbf16> to vector<16x32xbf16>
    %11 = arith.extf %10 : vector<16x32xbf16> to vector<16x32xf32>
    %12 = vector.extract_strided_slice %0 {offsets = [1, 0], sizes = [1, 32], strides = [1, 1]} : vector<7x32xf32> to vector<1x32xf32>
    %13 = vector.broadcast %12 : vector<1x32xf32> to vector<16x32xf32>
    %14 = arith.mulf %11, %13 : vector<16x32xf32>
    %15 = arith.addf %8, %14 : vector<16x32xf32>
    %c0_6 = arith.constant 0 : index
    %c2 = arith.constant 2 : index
    %c0_7 = arith.constant 0 : index
    %16 = vector.load %arg1[%c0_6, %c2, %c0_7] : memref<1x22x32xbf16, #tpu.memory_space<vmem>>, vector<1x16x32xbf16>
    %17 = vector.shape_cast %16 : vector<1x16x32xbf16> to vector<16x32xbf16>
    %18 = arith.extf %17 : vector<16x32xbf16> to vector<16x32xf32>
    %19 = vector.extract_strided_slice %0 {offsets = [2, 0], sizes = [1, 32], strides = [1, 1]} : vector<7x32xf32> to vector<1x32xf32>
    %20 = vector.broadcast %19 : vector<1x32xf32> to vector<16x32xf32>
    %21 = arith.mulf %18, %20 : vector<16x32xf32>
    %22 = arith.addf %15, %21 : vector<16x32xf32>
    %c0_8 = arith.constant 0 : index
    %c3 = arith.constant 3 : index
    %c0_9 = arith.constant 0 : index
    %23 = vector.load %arg1[%c0_8, %c3, %c0_9] : memref<1x22x32xbf16, #tpu.memory_space<vmem>>, vector<1x16x32xbf16>
    %24 = vector.shape_cast %23 : vector<1x16x32xbf16> to vector<16x32xbf16>
    %25 = arith.extf %24 : vector<16x32xbf16> to vector<16x32xf32>
    %26 = vector.extract_strided_slice %0 {offsets = [3, 0], sizes = [1, 32], strides = [1, 1]} : vector<7x32xf32> to vector<1x32xf32>
    %27 = vector.broadcast %26 : vector<1x32xf32> to vector<16x32xf32>
    %28 = arith.mulf %25, %27 : vector<16x32xf32>
    %29 = arith.addf %22, %28 : vector<16x32xf32>
    %c0_10 = arith.constant 0 : index
    %c4 = arith.constant 4 : index
    %c0_11 = arith.constant 0 : index
    %30 = vector.load %arg1[%c0_10, %c4, %c0_11] : memref<1x22x32xbf16, #tpu.memory_space<vmem>>, vector<1x16x32xbf16>
    %31 = vector.shape_cast %30 : vector<1x16x32xbf16> to vector<16x32xbf16>
    %32 = arith.extf %31 : vector<16x32xbf16> to vector<16x32xf32>
    %33 = vector.extract_strided_slice %0 {offsets = [4, 0], sizes = [1, 32], strides = [1, 1]} : vector<7x32xf32> to vector<1x32xf32>
    %34 = vector.broadcast %33 : vector<1x32xf32> to vector<16x32xf32>
    %35 = arith.mulf %32, %34 : vector<16x32xf32>
    %36 = arith.addf %29, %35 : vector<16x32xf32>
    %c0_12 = arith.constant 0 : index
    %c5 = arith.constant 5 : index
    %c0_13 = arith.constant 0 : index
    %37 = vector.load %arg1[%c0_12, %c5, %c0_13] : memref<1x22x32xbf16, #tpu.memory_space<vmem>>, vector<1x16x32xbf16>
    %38 = vector.shape_cast %37 : vector<1x16x32xbf16> to vector<16x32xbf16>
    %39 = arith.extf %38 : vector<16x32xbf16> to vector<16x32xf32>
    %40 = vector.extract_strided_slice %0 {offsets = [5, 0], sizes = [1, 32], strides = [1, 1]} : vector<7x32xf32> to vector<1x32xf32>
    %41 = vector.broadcast %40 : vector<1x32xf32> to vector<16x32xf32>
    %42 = arith.mulf %39, %41 : vector<16x32xf32>
    %43 = arith.addf %36, %42 : vector<16x32xf32>
    %c0_14 = arith.constant 0 : index
    %c6 = arith.constant 6 : index
    %c0_15 = arith.constant 0 : index
    %44 = vector.load %arg1[%c0_14, %c6, %c0_15] : memref<1x22x32xbf16, #tpu.memory_space<vmem>>, vector<1x16x32xbf16>
    %45 = vector.shape_cast %44 : vector<1x16x32xbf16> to vector<16x32xbf16>
    %46 = arith.extf %45 : vector<16x32xbf16> to vector<16x32xf32>
    %47 = vector.extract_strided_slice %0 {offsets = [6, 0], sizes = [1, 32], strides = [1, 1]} : vector<7x32xf32> to vector<1x32xf32>
    %48 = vector.broadcast %47 : vector<1x32xf32> to vector<16x32xf32>
    %49 = arith.mulf %46, %48 : vector<16x32xf32>
    %50 = arith.addf %43, %49 : vector<16x32xf32>
    %c0_16 = arith.constant 0 : index
    %c0_17 = arith.constant 0 : index
    %51 = vector.load %arg3[%c0_16, %c0_17] : memref<1x32xf32, #tpu.memory_space<vmem>>, vector<1x32xf32>
    %52 = vector.broadcast %51 : vector<1x32xf32> to vector<16x32xf32>
    %53 = arith.addf %50, %52 : vector<16x32xf32>
    %54 = arith.truncf %53 : vector<16x32xf32> to vector<16x32xbf16>
    %c0_18 = arith.constant 0 : index
    %c0_19 = arith.constant 0 : index
    %c0_20 = arith.constant 0 : index
    %55 = vector.load %arg4[%c0_18, %c0_19, %c0_20] : memref<1x16x32xbf16, #tpu.memory_space<vmem>>, vector<1x16x32xbf16>
    %56 = vector.shape_cast %55 : vector<1x16x32xbf16> to vector<16x32xbf16>
    %57 = vector.shape_cast %54 : vector<16x32xbf16> to vector<1x16x32xbf16>
    tpu.vector_store %arg4[%c0_18, %c0_19, %c0_20], %57 {strides = array<i32>} : memref<1x16x32xbf16, #tpu.memory_space<vmem>>, vector<1x16x32xbf16>,
    %cst_21 = arith.constant dense<0.000000e+00> : vector<32xf32>
    %58 = vector.multi_reduction <add>, %53, %cst_21 [0] : vector<16x32xf32> to vector<32xf32>
    %59 = vector.shape_cast %58 : vector<32xf32> to vector<1x32xf32>
    %c0_22 = arith.constant 0 : index
    %c0_23 = arith.constant 0 : index
    %c0_24 = arith.constant 0 : index
    %60 = vector.load %arg5[%c0_22, %c0_23, %c0_24] : memref<1x1x32xf32, #tpu.memory_space<vmem>>, vector<1x1x32xf32>
    %61 = vector.shape_cast %60 : vector<1x1x32xf32> to vector<1x32xf32>
    %62 = vector.shape_cast %59 : vector<1x32xf32> to vector<1x1x32xf32>
    tpu.vector_store %arg5[%c0_22, %c0_23, %c0_24], %62 {strides = array<i32>} : memref<1x1x32xf32, #tpu.memory_space<vmem>>, vector<1x1x32xf32>,
    %63 = arith.mulf %53, %53 : vector<16x32xf32>
    %cst_25 = arith.constant dense<0.000000e+00> : vector<32xf32>
    %64 = vector.multi_reduction <add>, %63, %cst_25 [0] : vector<16x32xf32> to vector<32xf32>
    %65 = vector.shape_cast %64 : vector<32xf32> to vector<1x32xf32>
    %c0_26 = arith.constant 0 : index
    %c0_27 = arith.constant 0 : index
    %c0_28 = arith.constant 0 : index
    %66 = vector.load %arg6[%c0_26, %c0_27, %c0_28] : memref<1x1x32xf32, #tpu.memory_space<vmem>>, vector<1x1x32xf32>
    %67 = vector.shape_cast %66 : vector<1x1x32xf32> to vector<1x32xf32>
    %68 = vector.shape_cast %65 : vector<1x32xf32> to vector<1x1x32xf32>
    tpu.vector_store %arg6[%c0_26, %c0_27, %c0_28], %68 {strides = array<i32>} : memref<1x1x32xf32, #tpu.memory_space<vmem>>, vector<1x1x32xf32>,
    return
  }
  func.func @transform_0(%arg0: i32) -> (i32, i32, i32) {
    %c0_i32 = arith.constant 0 : i32
    %c0_i32_0 = arith.constant 0 : i32
    %c0_i32_1 = arith.constant 0 : i32
    return %arg0, %c0_i32, %c0_i32_0 : i32, i32, i32
  }
  func.func @transform_1(%arg0: i32) -> (i32, i32) {
    %c0_i32 = arith.constant 0 : i32
    %c0_i32_0 = arith.constant 0 : i32
    %c0_i32_1 = arith.constant 0 : i32
    return %c0_i32, %c0_i32_0 : i32, i32
  }
  func.func @transform_2(%arg0: i32) -> (i32, i32) {
    %c0_i32 = arith.constant 0 : i32
    %c0_i32_0 = arith.constant 0 : i32
    %c0_i32_1 = arith.constant 0 : i32
    return %c0_i32, %c0_i32_0 : i32, i32
  }
  func.func @transform_3(%arg0: i32) -> (i32, i32, i32) {
    %c0_i32 = arith.constant 0 : i32
    %c0_i32_0 = arith.constant 0 : i32
    %c0_i32_1 = arith.constant 0 : i32
    return %arg0, %c0_i32, %c0_i32_0 : i32, i32, i32
  }
  func.func @transform_4(%arg0: i32) -> (i32, i32, i32) {
    %c0_i32 = arith.constant 0 : i32
    %c0_i32_0 = arith.constant 0 : i32
    %c0_i32_1 = arith.constant 0 : i32
    return %arg0, %c0_i32, %c0_i32_0 : i32, i32, i32
  }
  func.func @transform_5(%arg0: i32) -> (i32, i32, i32) {
    %c0_i32 = arith.constant 0 : i32
    %c0_i32_0 = arith.constant 0 : i32
    %c0_i32_1 = arith.constant 0 : i32
    return %arg0, %c0_i32, %c0_i32_0 : i32, i32, i32
  }
}

module attributes {stable_mosaic.version = 11 : i64} {
  func.func @_fused_linear_kernel(%arg0: i32, %arg1: i32, %arg2: i32, %arg3: memref<32x32xbf16, #tpu.memory_space<vmem>>, %arg4: memref<32x32xbf16, #tpu.memory_space<vmem>>, %arg5: memref<1x32xf32, #tpu.memory_space<vmem>>, %arg6: memref<1x32xf32, #tpu.memory_space<vmem>>, %arg7: memref<1x32xf32, #tpu.memory_space<vmem>>, %arg8: memref<32x32xf32, #tpu.memory_space<vmem>>, %arg9: memref<32x32xf32, #tpu.memory_space<vmem>>, %arg10: memref<32x32xf32, #tpu.memory_space<vmem>>) attributes {dimension_semantics = [#tpu.dimension_semantics<parallel>, #tpu.dimension_semantics<parallel>, #tpu.dimension_semantics<arbitrary>], iteration_bounds = array<i64: 1, 1, 1>, scalar_prefetch = 0 : i64, scratch_operands = 1 : i64, tpu.core_type = #tpu.core_type<tc>, window_params = [{transform_indices = @transform_0, window_bounds = array<i64: 32, 32>}, {transform_indices = @transform_1, window_bounds = array<i64: 32, 32>}, {transform_indices = @transform_2, window_bounds = array<i64: 1, 32>}, {transform_indices = @transform_3, window_bounds = array<i64: 1, 32>}, {transform_indices = @transform_4, window_bounds = array<i64: 1, 32>}, {transform_indices = @transform_5, window_bounds = array<i64: 32, 32>}, {transform_indices = @transform_6, window_bounds = array<i64: 32, 32>}]} {
    %c0_i32 = arith.constant 0 : i32
    %0 = arith.cmpi eq, %arg2, %c0_i32 : i32
    %1 = arith.extui %0 : i1 to i32
    %c0_i32_0 = arith.constant 0 : i32
    %2 = arith.cmpi ne, %1, %c0_i32_0 : i32
    scf.if %2 {
      %cst_15 = arith.constant 0.000000e+00 : f32
      %26 = vector.broadcast %cst_15 : f32 to vector<32x32xf32>
      %c0_16 = arith.constant 0 : index
      %c0_17 = arith.constant 0 : index
      %27 = vector.load %arg10[%c0_16, %c0_17] : memref<32x32xf32, #tpu.memory_space<vmem>>, vector<32x32xf32>
      tpu.vector_store %arg10[%c0_16, %c0_17], %26 {strides = array<i32>} : memref<32x32xf32, #tpu.memory_space<vmem>>, vector<32x32xf32>,
    } else {
    }
    %c0 = arith.constant 0 : index
    %c0_1 = arith.constant 0 : index
    %3 = vector.load %arg3[%c0, %c0_1] : memref<32x32xbf16, #tpu.memory_space<vmem>>, vector<32x32xbf16>
    %4 = arith.extf %3 : vector<32x32xbf16> to vector<32x32xf32>
    %c0_2 = arith.constant 0 : index
    %c0_3 = arith.constant 0 : index
    %5 = vector.load %arg6[%c0_2, %c0_3] : memref<1x32xf32, #tpu.memory_space<vmem>>, vector<1x32xf32>
    %6 = vector.broadcast %5 : vector<1x32xf32> to vector<32x32xf32>
    %7 = arith.mulf %4, %6 : vector<32x32xf32>
    %c0_4 = arith.constant 0 : index
    %c0_5 = arith.constant 0 : index
    %8 = vector.load %arg7[%c0_4, %c0_5] : memref<1x32xf32, #tpu.memory_space<vmem>>, vector<1x32xf32>
    %9 = vector.broadcast %8 : vector<1x32xf32> to vector<32x32xf32>
    %10 = arith.addf %7, %9 : vector<32x32xf32>
    %11 = arith.negf %10 : vector<32x32xf32>
    %12 = math.exp %11 : vector<32x32xf32>
    %cst = arith.constant 1.000000e+00 : f32
    %13 = vector.broadcast %cst : f32 to vector<32x32xf32>
    %14 = arith.addf %13, %12 : vector<32x32xf32>
    %15 = arith.divf %13, %14 : vector<32x32xf32>
    %16 = arith.mulf %10, %15 : vector<32x32xf32>
    %17 = arith.truncf %16 : vector<32x32xf32> to vector<32x32xbf16>
    %c0_6 = arith.constant 0 : index
    %c0_7 = arith.constant 0 : index
    %18 = vector.load %arg10[%c0_6, %c0_7] : memref<32x32xf32, #tpu.memory_space<vmem>>, vector<32x32xf32>
    %c0_8 = arith.constant 0 : index
    %c0_9 = arith.constant 0 : index
    %19 = vector.load %arg4[%c0_8, %c0_9] : memref<32x32xbf16, #tpu.memory_space<vmem>>, vector<32x32xbf16>
    %cst_10 = arith.constant dense<0.000000e+00> : vector<32x32xf32>
    %20 = tpu.matmul %17, %19, %cst_10 {dimension_numbers = #tpu.dot_dimension_numbers<[1], [0], [0], [1], [0, 0, 1, 1], [], []>} : vector<32x32xbf16>, vector<32x32xbf16>, vector<32x32xf32> -> vector<32x32xf32>
    %21 = arith.addf %18, %20 : vector<32x32xf32>
    %c0_11 = arith.constant 0 : index
    %c0_12 = arith.constant 0 : index
    %22 = vector.load %arg10[%c0_11, %c0_12] : memref<32x32xf32, #tpu.memory_space<vmem>>, vector<32x32xf32>
    tpu.vector_store %arg10[%c0_11, %c0_12], %21 {strides = array<i32>} : memref<32x32xf32, #tpu.memory_space<vmem>>, vector<32x32xf32>,
    %c0_i32_13 = arith.constant 0 : i32
    %23 = arith.cmpi eq, %arg2, %c0_i32_13 : i32
    %24 = arith.extui %23 : i1 to i32
    %c0_i32_14 = arith.constant 0 : i32
    %25 = arith.cmpi ne, %24, %c0_i32_14 : i32
    scf.if %25 {
      %c0_15 = arith.constant 0 : index
      %c0_16 = arith.constant 0 : index
      %26 = vector.load %arg10[%c0_15, %c0_16] : memref<32x32xf32, #tpu.memory_space<vmem>>, vector<32x32xf32>
      %c0_17 = arith.constant 0 : index
      %c0_18 = arith.constant 0 : index
      %27 = vector.load %arg5[%c0_17, %c0_18] : memref<1x32xf32, #tpu.memory_space<vmem>>, vector<1x32xf32>
      %28 = vector.broadcast %27 : vector<1x32xf32> to vector<32x32xf32>
      %29 = arith.addf %26, %28 : vector<32x32xf32>
      %c0_19 = arith.constant 0 : index
      %c0_20 = arith.constant 0 : index
      %30 = vector.load %arg8[%c0_19, %c0_20] : memref<32x32xf32, #tpu.memory_space<vmem>>, vector<32x32xf32>
      %cst_21 = arith.constant 1.000000e+00 : f32
      %31 = vector.broadcast %cst_21 : f32 to vector<32x32xf32>
      %32 = arith.mulf %31, %29 : vector<32x32xf32>
      %33 = arith.addf %30, %32 : vector<32x32xf32>
      %c0_22 = arith.constant 0 : index
      %c0_23 = arith.constant 0 : index
      %34 = vector.load %arg9[%c0_22, %c0_23] : memref<32x32xf32, #tpu.memory_space<vmem>>, vector<32x32xf32>
      tpu.vector_store %arg9[%c0_22, %c0_23], %33 {strides = array<i32>} : memref<32x32xf32, #tpu.memory_space<vmem>>, vector<32x32xf32>,
    } else {
    }
    return
  }
  func.func @transform_0(%arg0: i32, %arg1: i32, %arg2: i32) -> (i32, i32) {
    %c0_i32 = arith.constant 0 : i32
    return %arg0, %arg2 : i32, i32
  }
  func.func @transform_1(%arg0: i32, %arg1: i32, %arg2: i32) -> (i32, i32) {
    %c0_i32 = arith.constant 0 : i32
    return %arg2, %arg1 : i32, i32
  }
  func.func @transform_2(%arg0: i32, %arg1: i32, %arg2: i32) -> (i32, i32) {
    %c0_i32 = arith.constant 0 : i32
    %c0_i32_0 = arith.constant 0 : i32
    return %c0_i32, %arg1 : i32, i32
  }
  func.func @transform_3(%arg0: i32, %arg1: i32, %arg2: i32) -> (i32, i32) {
    %c0_i32 = arith.constant 0 : i32
    %c0_i32_0 = arith.constant 0 : i32
    return %c0_i32, %arg2 : i32, i32
  }
  func.func @transform_4(%arg0: i32, %arg1: i32, %arg2: i32) -> (i32, i32) {
    %c0_i32 = arith.constant 0 : i32
    %c0_i32_0 = arith.constant 0 : i32
    return %c0_i32, %arg2 : i32, i32
  }
  func.func @transform_5(%arg0: i32, %arg1: i32, %arg2: i32) -> (i32, i32) {
    %c0_i32 = arith.constant 0 : i32
    return %arg0, %arg1 : i32, i32
  }
  func.func @transform_6(%arg0: i32, %arg1: i32, %arg2: i32) -> (i32, i32) {
    %c0_i32 = arith.constant 0 : i32
    return %arg0, %arg1 : i32, i32
  }
}

module attributes {stable_mosaic.version = 11 : i64} {
  func.func @_fused_linear_kernel(%arg0: i32, %arg1: i32, %arg2: i32, %arg3: memref<32x64xbf16, #tpu.memory_space<vmem>>, %arg4: memref<64x32xbf16, #tpu.memory_space<vmem>>, %arg5: memref<1x32xf32, #tpu.memory_space<vmem>>, %arg6: memref<32x32xf32, #tpu.memory_space<vmem>>, %arg7: memref<1x32xf32, #tpu.memory_space<vmem>>, %arg8: memref<1x32xf32, #tpu.memory_space<vmem>>, %arg9: memref<32x32xf32, #tpu.memory_space<vmem>>, %arg10: memref<32x32xf32, #tpu.memory_space<vmem>>) attributes {dimension_semantics = [#tpu.dimension_semantics<parallel>, #tpu.dimension_semantics<parallel>, #tpu.dimension_semantics<arbitrary>], iteration_bounds = array<i64: 1, 1, 1>, scalar_prefetch = 0 : i64, scratch_operands = 1 : i64, tpu.core_type = #tpu.core_type<tc>, window_params = [{transform_indices = @transform_0, window_bounds = array<i64: 32, 64>}, {transform_indices = @transform_1, window_bounds = array<i64: 64, 32>}, {transform_indices = @transform_2, window_bounds = array<i64: 1, 32>}, {transform_indices = @transform_3, window_bounds = array<i64: 32, 32>}, {transform_indices = @transform_4, window_bounds = array<i64: 1, 32>}, {transform_indices = @transform_5, window_bounds = array<i64: 1, 32>}, {transform_indices = @transform_6, window_bounds = array<i64: 32, 32>}]} {
    %c0_i32 = arith.constant 0 : i32
    %0 = arith.cmpi eq, %arg2, %c0_i32 : i32
    %1 = arith.extui %0 : i1 to i32
    %c0_i32_0 = arith.constant 0 : i32
    %2 = arith.cmpi ne, %1, %c0_i32_0 : i32
    scf.if %2 {
      %cst_10 = arith.constant 0.000000e+00 : f32
      %12 = vector.broadcast %cst_10 : f32 to vector<32x32xf32>
      %c0_11 = arith.constant 0 : index
      %c0_12 = arith.constant 0 : index
      %13 = vector.load %arg10[%c0_11, %c0_12] : memref<32x32xf32, #tpu.memory_space<vmem>>, vector<32x32xf32>
      tpu.vector_store %arg10[%c0_11, %c0_12], %12 {strides = array<i32>} : memref<32x32xf32, #tpu.memory_space<vmem>>, vector<32x32xf32>,
    } else {
    }
    %c0 = arith.constant 0 : index
    %c0_1 = arith.constant 0 : index
    %3 = vector.load %arg3[%c0, %c0_1] : memref<32x64xbf16, #tpu.memory_space<vmem>>, vector<32x64xbf16>
    %c0_2 = arith.constant 0 : index
    %c0_3 = arith.constant 0 : index
    %4 = vector.load %arg10[%c0_2, %c0_3] : memref<32x32xf32, #tpu.memory_space<vmem>>, vector<32x32xf32>
    %c0_4 = arith.constant 0 : index
    %c0_5 = arith.constant 0 : index
    %5 = vector.load %arg4[%c0_4, %c0_5] : memref<64x32xbf16, #tpu.memory_space<vmem>>, vector<64x32xbf16>
    %cst = arith.constant dense<0.000000e+00> : vector<32x32xf32>
    %6 = tpu.matmul %3, %5, %cst {dimension_numbers = #tpu.dot_dimension_numbers<[1], [0], [0], [1], [0, 0, 1, 1], [], []>} : vector<32x64xbf16>, vector<64x32xbf16>, vector<32x32xf32> -> vector<32x32xf32>
    %7 = arith.addf %4, %6 : vector<32x32xf32>
    %c0_6 = arith.constant 0 : index
    %c0_7 = arith.constant 0 : index
    %8 = vector.load %arg10[%c0_6, %c0_7] : memref<32x32xf32, #tpu.memory_space<vmem>>, vector<32x32xf32>
    tpu.vector_store %arg10[%c0_6, %c0_7], %7 {strides = array<i32>} : memref<32x32xf32, #tpu.memory_space<vmem>>, vector<32x32xf32>,
    %c0_i32_8 = arith.constant 0 : i32
    %9 = arith.cmpi eq, %arg2, %c0_i32_8 : i32
    %10 = arith.extui %9 : i1 to i32
    %c0_i32_9 = arith.constant 0 : i32
    %11 = arith.cmpi ne, %10, %c0_i32_9 : i32
    scf.if %11 {
      %c0_10 = arith.constant 0 : index
      %c0_11 = arith.constant 0 : index
      %12 = vector.load %arg10[%c0_10, %c0_11] : memref<32x32xf32, #tpu.memory_space<vmem>>, vector<32x32xf32>
      %c0_12 = arith.constant 0 : index
      %c0_13 = arith.constant 0 : index
      %13 = vector.load %arg5[%c0_12, %c0_13] : memref<1x32xf32, #tpu.memory_space<vmem>>, vector<1x32xf32>
      %14 = vector.broadcast %13 : vector<1x32xf32> to vector<32x32xf32>
      %15 = arith.addf %12, %14 : vector<32x32xf32>
      %c0_14 = arith.constant 0 : index
      %c0_15 = arith.constant 0 : index
      %16 = vector.load %arg6[%c0_14, %c0_15] : memref<32x32xf32, #tpu.memory_space<vmem>>, vector<32x32xf32>
      %cst_16 = arith.constant 5.000000e-01 : f32
      %17 = vector.broadcast %cst_16 : f32 to vector<32x32xf32>
      %18 = arith.mulf %17, %15 : vector<32x32xf32>
      %19 = arith.addf %16, %18 : vector<32x32xf32>
      %cst_17 = arith.constant dense<0.000000e+00> : vector<32xf32>
      %20 = vector.multi_reduction <add>, %19, %cst_17 [1] : vector<32x32xf32> to vector<32xf32>
      %21 = vector.shape_cast %20 : vector<32xf32> to vector<32x1xf32>
      %cst_18 = arith.constant 3.200000e+01 : f32
      %22 = vector.broadcast %cst_18 : f32 to vector<32x1xf32>
      %23 = arith.divf %21, %22 : vector<32x1xf32>
      %24 = vector.broadcast %23 : vector<32x1xf32> to vector<32x32xf32>
      %25 = arith.subf %19, %24 : vector<32x32xf32>
      %26 = arith.mulf %25, %25 : vector<32x32xf32>
      %cst_19 = arith.constant dense<0.000000e+00> : vector<32xf32>
      %27 = vector.multi_reduction <add>, %26, %cst_19 [1] : vector<32x32xf32> to vector<32xf32>
      %28 = vector.shape_cast %27 : vector<32xf32> to vector<32x1xf32>
      %cst_20 = arith.constant 3.200000e+01 : f32
      %29 = vector.broadcast %cst_20 : f32 to vector<32x1xf32>
      %30 = arith.divf %28, %29 : vector<32x1xf32>
      %31 = vector.broadcast %23 : vector<32x1xf32> to vector<32x32xf32>
      %32 = arith.subf %19, %31 : vector<32x32xf32>
      %cst_21 = arith.constant 9.99999974E-6 : f32
      %33 = vector.broadcast %cst_21 : f32 to vector<32x1xf32>
      %34 = arith.addf %30, %33 : vector<32x1xf32>
      %35 = math.rsqrt %34 : vector<32x1xf32>
      %36 = vector.broadcast %35 : vector<32x1xf32> to vector<32x32xf32>
      %37 = arith.mulf %32, %36 : vector<32x32xf32>
      %c0_22 = arith.constant 0 : index
      %c0_23 = arith.constant 0 : index
      %38 = vector.load %arg7[%c0_22, %c0_23] : memref<1x32xf32, #tpu.memory_space<vmem>>, vector<1x32xf32>
      %39 = vector.broadcast %38 : vector<1x32xf32> to vector<32x32xf32>
      %40 = arith.mulf %37, %39 : vector<32x32xf32>
      %c0_24 = arith.constant 0 : index
      %c0_25 = arith.constant 0 : index
      %41 = vector.load %arg8[%c0_24, %c0_25] : memref<1x32xf32, #tpu.memory_space<vmem>>, vector<1x32xf32>
      %42 = vector.broadcast %41 : vector<1x32xf32> to vector<32x32xf32>
      %43 = arith.addf %40, %42 : vector<32x32xf32>
      %c0_26 = arith.constant 0 : index
      %c0_27 = arith.constant 0 : index
      %44 = vector.load %arg9[%c0_26, %c0_27] : memref<32x32xf32, #tpu.memory_space<vmem>>, vector<32x32xf32>
      tpu.vector_store %arg9[%c0_26, %c0_27], %43 {strides = array<i32>} : memref<32x32xf32, #tpu.memory_space<vmem>>, vector<32x32xf32>,
    } else {
    }
    return
  }
  func.func @transform_0(%arg0: i32, %arg1: i32, %arg2: i32) -> (i32, i32) {
    %c0_i32 = arith.constant 0 : i32
    return %arg0, %arg2 : i32, i32
  }
  func.func @transform_1(%arg0: i32, %arg1: i32, %arg2: i32) -> (i32, i32) {
    %c0_i32 = arith.constant 0 : i32
    return %arg2, %arg1 : i32, i32
  }
  func.func @transform_2(%arg0: i32, %arg1: i32, %arg2: i32) -> (i32, i32) {
    %c0_i32 = arith.constant 0 : i32
    %c0_i32_0 = arith.constant 0 : i32
    return %c0_i32, %arg1 : i32, i32
  }
  func.func @transform_3(%arg0: i32, %arg1: i32, %arg2: i32) -> (i32, i32) {
    %c0_i32 = arith.constant 0 : i32
    return %arg0, %arg1 : i32, i32
  }
  func.func @transform_4(%arg0: i32, %arg1: i32, %arg2: i32) -> (i32, i32) {
    %c0_i32 = arith.constant 0 : i32
    %c0_i32_0 = arith.constant 0 : i32
    return %c0_i32, %arg1 : i32, i32
  }
  func.func @transform_5(%arg0: i32, %arg1: i32, %arg2: i32) -> (i32, i32) {
    %c0_i32 = arith.constant 0 : i32
    %c0_i32_0 = arith.constant 0 : i32
    return %c0_i32, %arg1 : i32, i32
  }
  func.func @transform_6(%arg0: i32, %arg1: i32, %arg2: i32) -> (i32, i32) {
    %c0_i32 = arith.constant 0 : i32
    return %arg0, %arg1 : i32, i32
  }
}

module attributes {stable_mosaic.version = 11 : i64} {
  func.func @_layernorm_kernel(%arg0: i32, %arg1: memref<32x32xf32, #tpu.memory_space<vmem>>, %arg2: memref<1x32xf32, #tpu.memory_space<vmem>>, %arg3: memref<1x32xf32, #tpu.memory_space<vmem>>, %arg4: memref<32x32xf32, #tpu.memory_space<vmem>>) attributes {dimension_semantics = [#tpu.dimension_semantics<parallel>], iteration_bounds = array<i64: 1>, scalar_prefetch = 0 : i64, scratch_operands = 0 : i64, tpu.core_type = #tpu.core_type<tc>, window_params = [{transform_indices = @transform_0, window_bounds = array<i64: 32, 32>}, {pipeline_mode = #tpu.pipeline_mode<synchronous>, transform_indices = @transform_1, window_bounds = array<i64: 1, 32>}, {pipeline_mode = #tpu.pipeline_mode<synchronous>, transform_indices = @transform_2, window_bounds = array<i64: 1, 32>}, {transform_indices = @transform_3, window_bounds = array<i64: 32, 32>}]} {
    %c0 = arith.constant 0 : index
    %c0_0 = arith.constant 0 : index
    %0 = vector.load %arg1[%c0, %c0_0] : memref<32x32xf32, #tpu.memory_space<vmem>>, vector<32x32xf32>
    %cst = arith.constant dense<0.000000e+00> : vector<32xf32>
    %1 = vector.multi_reduction <add>, %0, %cst [1] : vector<32x32xf32> to vector<32xf32>
    %2 = vector.shape_cast %1 : vector<32xf32> to vector<32x1xf32>
    %cst_1 = arith.constant 3.200000e+01 : f32
    %3 = vector.broadcast %cst_1 : f32 to vector<32x1xf32>
    %4 = arith.divf %2, %3 : vector<32x1xf32>
    %5 = vector.broadcast %4 : vector<32x1xf32> to vector<32x32xf32>
    %6 = arith.subf %0, %5 : vector<32x32xf32>
    %7 = arith.mulf %6, %6 : vector<32x32xf32>
    %cst_2 = arith.constant dense<0.000000e+00> : vector<32xf32>
    %8 = vector.multi_reduction <add>, %7, %cst_2 [1] : vector<32x32xf32> to vector<32xf32>
    %9 = vector.shape_cast %8 : vector<32xf32> to vector<32x1xf32>
    %cst_3 = arith.constant 3.200000e+01 : f32
    %10 = vector.broadcast %cst_3 : f32 to vector<32x1xf32>
    %11 = arith.divf %9, %10 : vector<32x1xf32>
    %12 = vector.broadcast %4 : vector<32x1xf32> to vector<32x32xf32>
    %13 = arith.subf %0, %12 : vector<32x32xf32>
    %cst_4 = arith.constant 9.99999997E-7 : f32
    %14 = vector.broadcast %cst_4 : f32 to vector<32x1xf32>
    %15 = arith.addf %11, %14 : vector<32x1xf32>
    %16 = math.rsqrt %15 : vector<32x1xf32>
    %17 = vector.broadcast %16 : vector<32x1xf32> to vector<32x32xf32>
    %18 = arith.mulf %13, %17 : vector<32x32xf32>
    %c0_5 = arith.constant 0 : index
    %c0_6 = arith.constant 0 : index
    %19 = vector.load %arg2[%c0_5, %c0_6] : memref<1x32xf32, #tpu.memory_space<vmem>>, vector<1x32xf32>
    %20 = vector.broadcast %19 : vector<1x32xf32> to vector<32x32xf32>
    %21 = arith.mulf %18, %20 : vector<32x32xf32>
    %c0_7 = arith.constant 0 : index
    %c0_8 = arith.constant 0 : index
    %22 = vector.load %arg3[%c0_7, %c0_8] : memref<1x32xf32, #tpu.memory_space<vmem>>, vector<1x32xf32>
    %23 = vector.broadcast %22 : vector<1x32xf32> to vector<32x32xf32>
    %24 = arith.addf %21, %23 : vector<32x32xf32>
    %c0_9 = arith.constant 0 : index
    %c0_10 = arith.constant 0 : index
    %25 = vector.load %arg4[%c0_9, %c0_10] : memref<32x32xf32, #tpu.memory_space<vmem>>, vector<32x32xf32>
    tpu.vector_store %arg4[%c0_9, %c0_10], %24 {strides = array<i32>} : memref<32x32xf32, #tpu.memory_space<vmem>>, vector<32x32xf32>,
    return
  }
  func.func @transform_0(%arg0: i32) -> (i32, i32) {
    %c0_i32 = arith.constant 0 : i32
    %c0_i32_0 = arith.constant 0 : i32
    return %arg0, %c0_i32 : i32, i32
  }
  func.func @transform_1(%arg0: i32) -> (i32, i32) {
    %c0_i32 = arith.constant 0 : i32
    %c0_i32_0 = arith.constant 0 : i32
    %c0_i32_1 = arith.constant 0 : i32
    return %c0_i32, %c0_i32_0 : i32, i32
  }
  func.func @transform_2(%arg0: i32) -> (i32, i32) {
    %c0_i32 = arith.constant 0 : i32
    %c0_i32_0 = arith.constant 0 : i32
    %c0_i32_1 = arith.constant 0 : i32
    return %c0_i32, %c0_i32_0 : i32, i32
  }
  func.func @transform_3(%arg0: i32) -> (i32, i32) {
    %c0_i32 = arith.constant 0 : i32
    %c0_i32_0 = arith.constant 0 : i32
    return %arg0, %c0_i32 : i32, i32
  }
}

</mosaic_0001>

<bundles_post_ra>
// kernel: conformer_encoder.24
= control target key start
LH: loop header
LB: loop body
LE: loop exit
PB: predicated region body
PF: predicated region fallthrough
CT: control target
= control target key end

     0   :  { %vm22_vm0 = vcmask 261120   ;;  %v214_v1 = vmov 0.0   ;;  %vm77_vm1 = vcmask 523264   ;;  %s297_s1 = inlined_call_operand.vmem [shape: bf16[64,32], index: 1, kind: input, shape index: {}]   ;;  %s298_s0 = inlined_call_operand.vmem [shape: bf16[32,64], index: 0, kind: input, shape index: {}]   ;;  %s299_s2 = inlined_call_operand.vmem [shape: f32[1,32], index: 2, kind: input, shape index: {}]   ;;  %s300_s3 = inlined_call_operand.vmem [shape: f32[32,32], index: 3, kind: input, shape index: {}]   ;;  %s301_s4 = inlined_call_operand.vmem [shape: f32[32,32], index: 4, kind: output, shape index: {}]  }
   0x1   :  { %v208_v0 = vld [vmem:[%s297_s1 + $0x18] sm:$0xff]   ;;  %25 = vst.msk [vmem:[#allocation2 + $0x10] sm:$0xff] %vm22_vm0, %v214_v1  ;;  %23 = vst.msk [vmem:[#allocation2] sm:$0xff] %vm22_vm0, %v214_v1  ;;  %v209_v2 = vld [vmem:[%s297_s1 + $0x10] sm:$0xff]  }
   0x2   :  { %24 = vst.msk [vmem:[#allocation2 + $0x8] sm:$0xff] %vm22_vm0, %v214_v1  ;;  %26 = vst.msk [vmem:[#allocation2 + $0x18] sm:$0xff] %vm22_vm0, %v214_v1  ;;  %195 = vmatprep.subr.bf16.mxu0 %v208_v0  ;;  %v210_v3 = vld [vmem:[%s297_s1 + $0x8] sm:$0xff]   ;;  %v212_v4 = vld [vmem:[%s298_s0] sm:$0xff]  }
   0x3   :  { %196 = vmatpush3.bf16.msra.mxu0 %v208_v0  ;;  %203 = vmatprep.mubr.msk.bf16.mxu0 %vm77_vm1, %v212_v4  ;;  %v211_v5 = vld [vmem:[%s297_s1] sm:$0xff]   ;;  %v213_v6 = vld [vmem:[%s298_s0 + $0x8] sm:$0xff]   ;;  %v162_v22 = vld [vmem:[%s300_s3 + $0x10] sm:$0xff] }
   0x4   :  { %197 = vmatprep.subr.bf16.mxu0 %v209_v2  ;;  %v188_v19 = vld [vmem:[%s299_s2] ss:$0 sm:$0xff]  ;;  %v163_v31 = vld [vmem:[%s300_s3 + $0x18] sm:$0xff]  ;;  %v161_v36 = vld [vmem:[%s300_s3 + $0x8] sm:$0xff] }
   0x5   :  { %v160_v26 = vld [vmem:[%s300_s3] sm:$0xff] }
   0x7   :  { %198 = vmatpush3.bf16.msra.mxu0 %v209_v2 }
   0x8   :  { %199 = vmatprep.subr.bf16.mxu0 %v210_v3  ;;  %v33_v7 = vld [vmem:[#allocation2 + $0x10] sm:$0xff]  ;;  %v31_v9 = vld [vmem:[#allocation2] sm:$0xff] }
   0x9   :  { %v34_v12 = vld [vmem:[#allocation2 + $0x18] sm:$0xff]  ;;  %v32_v15 = vld [vmem:[#allocation2 + $0x8] sm:$0xff] }
   0xb   :  { %200 = vmatpush3.bf16.msra.mxu0 %v210_v3 }
   0xc   :  { %201 = vmatprep.subr.bf16.mxu0 %v211_v5 }
   0xf   :  { %202 = vmatpush3.bf16.msra.mxu0 %v211_v5 }
  0x12   :  { %204 = vmatmul.mubr.msk.bf16.vlgmr.msra.gmra.mxu0 %vm77_vm1, %v213_v6 }
  0xd2   :  { %v205_v8 = vpop.f32.mrf.mxu0 }
  0xd3   :  { %v135_v10 = vadd.f32 %v205_v8, %v33_v7 }
  0xd4   :  { %v118_v11 = vpop.f32.mrf.mxu0 }
  0xd5   :  { %140 = vst.msk [vmem:[#allocation2 + $0x10] sm:$0xff] %vm22_vm0, %v135_v10  ;;  %v133_v13 = vadd.f32 %v118_v11, %v31_v9 }
  0xd6   :  { %v206_v14 = vpop.f32.mrf.mxu0 }
  0xd7   :  { %138 = vst.msk [vmem:[#allocation2] sm:$0xff] %vm22_vm0, %v133_v13  ;;  %v136_v16 = vadd.f32 %v206_v14, %v34_v12 }
  0xd8   :  { %v121_v17 = vpop.f32.mrf.mxu0 }
  0xd9   :  { %141 = vst.msk [vmem:[#allocation2 + $0x18] sm:$0xff] %vm22_vm0, %v136_v16  ;;  %v134_v18 = vadd.f32 %v121_v17, %v32_v15 }
  0xdb   :  { %139 = vst.msk [vmem:[#allocation2 + $0x8] sm:$0xff] %vm22_vm0, %v134_v18 }
  0xdc   :  { %v147_v20 = vld [vmem:[#allocation2 + $0x10] sm:$0xff] }
  0xdd   :  { %v158_v21 = vadd.f32 %v188_v19, %v147_v20 }
  0xde   :  { %v145_v23 = vld [vmem:[#allocation2] sm:$0xff] }
  0xdf   :  { %v166_v24 = vmul.f32 0.5, %v158_v21  ;;  %v156_v25 = vadd.f32 %v188_v19, %v145_v23 }
  0xe0   :  { %v148_v27 = vld [vmem:[#allocation2 + $0x18] sm:$0xff] }
  0xe1   :  { %v170_v28 = vadd.f32 %v166_v24, %v162_v22  ;;  %v164_v29 = vmul.f32 0.5, %v156_v25  ;;  %v159_v30 = vadd.f32 %v188_v19, %v148_v27 }
  0xe2   :  { %v146_v32 = vld [vmem:[#allocation2 + $0x8] sm:$0xff] }
  0xe3   :  { %174 = vst.msk [vmem:[%s301_s4 + $0x10] sm:$0xff] %vm22_vm0, %v170_v28  ;;  %v168_v33 = vadd.f32 %v164_v29, %v160_v26  ;;  %v167_v34 = vmul.f32 0.5, %v159_v30  ;;  %v157_v35 = vadd.f32 %v188_v19, %v146_v32 }
  0xe5   :  { %172 = vst.msk [vmem:[%s301_s4] sm:$0xff] %vm22_vm0, %v168_v33  ;;  %v171_v37 = vadd.f32 %v167_v34, %v163_v31  ;;  %v165_v38 = vmul.f32 0.5, %v157_v35 }
  0xe7   :  { %175 = vst.msk [vmem:[%s301_s4 + $0x18] sm:$0xff] %vm22_vm0, %v171_v37  ;;  %v169_v39 = vadd.f32 %v165_v38, %v161_v36 }
  0xe9   :  { %173 = vst.msk [vmem:[%s301_s4 + $0x8] sm:$0xff] %vm22_vm0, %v169_v39 }

// kernel: conformer_encoder.23
= control target key start
LH: loop header
LB: loop body
LE: loop exit
PB: predicated region body
PF: predicated region fallthrough
CT: control target
= control target key end

     0   :  { %vm34_vm0 = vcmask 261120   ;;  %vm25_vm1 = vcmask 523264   ;;  %v325_v30 = vmov 0.0   ;;  %vm258_vm2 = vcmask 519168   ;;  %s413_s0 = inlined_call_operand.vmem [shape: f32[32,32], index: 0, kind: input, shape index: {}]   ;;  %s414_s1 = inlined_call_operand.vmem [shape: bf16[32,64], index: 1, kind: input, shape index: {}]   ;;  %s415_s3 = inlined_call_operand.vmem [shape: f32[1,32], index: 3, kind: input, shape index: {}]   ;;  %s416_s4 = inlined_call_operand.vmem [shape: f32[1,32], index: 4, kind: input, shape index: {}]   ;;  %s417_s2 = inlined_call_operand.vmem [shape: f32[1,64], index: 2, kind: input, shape index: {}]   ;;  %s418_s5 = inlined_call_operand.vmem [shape: bf16[32,64], index: 5, kind: output, shape index: {}]  }
   0x1   :  { %v30_v0 = vld [vmem:[%s413_s0] sm:$0xff]  ;;  %v32_v1 = vld [vmem:[%s413_s0 + $0x10] sm:$0xff]  ;;  %v31_v2 = vld [vmem:[%s413_s0 + $0x8] sm:$0xff]  ;;  %28 = vst.msk [vmem:[#allocation2 + $0x10] sm:$0xff] %vm25_vm1, %v325_v30 }
   0x2   :  { %v35_v3 = vsel %vm34_vm0, %v30_v0, 0.0  ;;  %v41_v4 = vsel %vm34_vm0, %v32_v1, 0.0  ;;  %v33_v5 = vld [vmem:[%s413_s0 + $0x18] sm:$0xff]  ;;  %v38_v6 = vsel %vm34_vm0, %v31_v2, 0.0  ;;  %v299_v28 = vld [vmem:[%s414_s1 + $0x8] sm:$0xff]   ;;  %v300_v29 = vld [vmem:[%s414_s1] sm:$0xff]  }
   0x3   :  { %36 = vadd.xlane.f32.xlu0 %v35_v3  ;;  %42 = vadd.xlane.f32.xlu1 %v41_v4  ;;  %v44_v7 = vsel %vm34_vm0, %v33_v5, 0.0  ;;  %26 = vst.msk [vmem:[#allocation2] sm:$0xff] %vm25_vm1, %v325_v30  ;;  %27 = vst.msk [vmem:[#allocation2 + $0x8] sm:$0xff] %vm25_vm1, %v325_v30  ;;  %v267_v45 = vld [vmem:[%s415_s3] ss:$0 sm:$0xff] }
   0x4   :  { %290 = vmatprep.subr.bf16.mxu0 %v299_v28  ;;  %29 = vst.msk [vmem:[#allocation2 + $0x18] sm:$0xff] %vm25_vm1, %v325_v30  ;;  %v268_v50 = vld [vmem:[%s416_s4] ss:$0 sm:$0xff] }
   0x5   :  { %291 = vmatpush3.bf16.msra.mxu0 %v299_v28 }
   0x6   :  { %292 = vmatprep.subr.bf16.mxu0 %v300_v29 }
   0x7   :  { %39 = vadd.xlane.f32.xlu0 %v38_v6  ;;  %45 = vadd.xlane.f32.xlu1 %v44_v7 }
   0x8   :  { %v114_v63 = vld [vmem:[#allocation2 + $0x10] sm:$0xff] }
   0x9   :  { %293 = vmatpush3.bf16.msra.mxu0 %v300_v29 }
   0xa   :  { %v113_v7 = vld [vmem:[#allocation2 + $0x8] sm:$0xff] }
   0xb   :  { %v115_v4 = vld [vmem:[#allocation2 + $0x18] sm:$0xff] }
  0x8c   :  { %v37_v8 = vpop.xlane.xlu0 %36  ;;  %v43_v9 = vpop.xlane.xlu1 %42 }
  0x8d   :  { %v48_v10 = vmul.f32 0.03125, %v37_v8  ;;  %v50_v11 = vmul.f32 0.03125, %v43_v9 }
  0x8f   :  { %v52_v12 = vsub.f32 %v30_v0, %v48_v10  ;;  %v54_v13 = vsub.f32 %v32_v1, %v50_v11  ;;  %v112_v1 = vld [vmem:[#allocation2] sm:$0xff] }
  0x90   :  { %v40_v14 = vpop.xlane.xlu0 %39  ;;  %v46_v15 = vpop.xlane.xlu1 %45  ;;  %v273_v11 = vld [vmem:[%s417_s2] ss:$0 sm:$0xff] }
  0x91   :  { %v49_v16 = vmul.f32 0.03125, %v40_v14  ;;  %v51_v17 = vmul.f32 0.03125, %v46_v15  ;;  %v56_v18 = vmul.f32 %v52_v12, %v52_v12  ;;  %v58_v19 = vmul.f32 %v54_v13, %v54_v13 }
  0x93   :  { %v53_v20 = vsub.f32 %v31_v2, %v49_v16  ;;  %v55_v21 = vsub.f32 %v33_v5, %v51_v17  ;;  %v60_v22 = vsel %vm34_vm0, %v56_v18, 0.0  ;;  %v66_v23 = vsel %vm34_vm0, %v58_v19, 0.0 }
  0x94   :  { %61 = vadd.xlane.f32.xlu0 %v60_v22 }
  0x95   :  { %v57_v24 = vmul.f32 %v53_v20, %v53_v20  ;;  %v59_v25 = vmul.f32 %v55_v21, %v55_v21 }
  0x97   :  { %v63_v26 = vsel %vm34_vm0, %v57_v24, 0.0  ;;  %v69_v27 = vsel %vm34_vm0, %v59_v25, 0.0 }
  0x98   :  { %67 = vadd.xlane.f32.xlu0 %v66_v23  ;;  %64 = vadd.xlane.f32.xlu1 %v63_v26 }
  0x9c   :  { %70 = vadd.xlane.f32.xlu1 %v69_v27 }
 0x11d   :  { %v62_v31 = vpop.xlane.xlu0 %61 }
 0x11e   :  { %v72_v32 = vmul.f32 0.03125, %v62_v31 }
 0x120   :  { %v76_v33 = vadd.f32 1e-05, %v72_v32 }
 0x121   :  { %v65_v34 = vpop.xlane.xlu1 %64  ;;  %v68_v35 = vpop.xlane.xlu0 %67 }
 0x122   :  { %301 = vrsqrt.f32 %v76_v33  ;;  %v73_v36 = vmul.f32 0.03125, %v65_v34  ;;  %v74_v37 = vmul.f32 0.03125, %v68_v35 }
 0x124   :  { %v77_v38 = vadd.f32 1e-05, %v73_v36  ;;  %v78_v39 = vadd.f32 1e-05, %v74_v37 }
 0x125   :  { %v71_v40 = vpop.xlane.xlu1 %70 }
 0x126   :  { %303 = vrsqrt.f32 %v77_v38  ;;  %v75_v41 = vmul.f32 0.03125, %v71_v40 }
 0x127   :  { %305 = vrsqrt.f32 %v78_v39 }
 0x128   :  { %v79_v42 = vadd.f32 1e-05, %v75_v41 }
 0x12a   :  { %307 = vrsqrt.f32 %v79_v42 }
 0x12f   :  { %v302_v43 = vpop.eup %301 }
 0x130   :  { %v84_v44 = vmul.f32 %v302_v43, %v52_v12 }
 0x132   :  { %v95_v49 = vmul.f32 %v267_v45, %v84_v44 }
 0x133   :  { %v304_v46 = vpop.eup %303 }
 0x134   :  { %v306_v47 = vpop.eup %305  ;;  %v85_v48 = vmul.f32 %v304_v46, %v53_v20  ;;  %v106_v54 = vadd.f32 %v268_v50, %v95_v49 }
 0x135   :  { %v86_v51 = vmul.f32 %v306_v47, %v54_v13 }
 0x136   :  { %v96_v52 = vmul.f32 %v267_v45, %v85_v48 }
 0x137   :  { %v308_v53 = vpop.eup %307  ;;  %v97_v57 = vmul.f32 %v267_v45, %v86_v51 }
 0x138   :  { %v107_v55 = vadd.f32 %v268_v50, %v96_v52  ;;  %v87_v56 = vmul.f32 %v308_v53, %v55_v21 }
 0x139   :  { %v108_v60 = vadd.f32 %v268_v50, %v97_v57 }
 0x13a   :  { %v110_v58 = vpack.c.bf16 %v107_v55, %v106_v54  ;;  %v98_v59 = vmul.f32 %v267_v45, %v87_v56 }
 0x13c   :  { %294 = vmatprep.mubr.msk.bf16.mxu0 %vm34_vm0, %v110_v58  ;;  %v109_v61 = vadd.f32 %v268_v50, %v98_v59 }
 0x13e   :  { %v111_v62 = vpack.c.bf16 %v109_v61, %v108_v60 }
 0x140   :  { %295 = vmatmul.mubr.msk.bf16.vlgmr.msra.gmra.mxu0 %vm34_vm0, %v111_v62 }
 0x200   :  { %v296_v0 = vpop.f32.mrf.mxu0 }
 0x201   :  { %v189_v2 = vadd.f32 %v296_v0, %v114_v63 }
 0x202   :  { %v172_v3 = vpop.f32.mrf.mxu0 }
 0x203   :  { %194 = vst.msk [vmem:[#allocation2 + $0x10] sm:$0xff] %vm25_vm1, %v189_v2  ;;  %v187_v5 = vadd.f32 %v172_v3, %v112_v1 }
 0x204   :  { %v297_v6 = vpop.f32.mrf.mxu0 }
 0x205   :  { %192 = vst.msk [vmem:[#allocation2] sm:$0xff] %vm25_vm1, %v187_v5  ;;  %v190_v8 = vadd.f32 %v297_v6, %v115_v4 }
 0x206   :  { %v175_v9 = vpop.f32.mrf.mxu0 }
 0x207   :  { %195 = vst.msk [vmem:[#allocation2 + $0x18] sm:$0xff] %vm25_vm1, %v190_v8  ;;  %v188_v10 = vadd.f32 %v175_v9, %v113_v7 }
 0x209   :  { %193 = vst.msk [vmem:[#allocation2 + $0x8] sm:$0xff] %vm25_vm1, %v188_v10 }
 0x20a   :  { %v201_v12 = vld [vmem:[#allocation2 + $0x10] sm:$0xff] }
 0x20b   :  { %v212_v13 = vadd.f32 %v273_v11, %v201_v12 }
 0x20c   :  { %v199_v14 = vld [vmem:[#allocation2] sm:$0xff] }
 0x20d   :  { %v276_v15 = vmul.f32 -1.442695, %v212_v13  ;;  %v210_v16 = vadd.f32 %v273_v11, %v199_v14 }
 0x20e   :  { %v202_v17 = vld [vmem:[#allocation2 + $0x18] sm:$0xff] }
 0x20f   :  { %309 = vpow2.f32 %v276_v15  ;;  %v274_v18 = vmul.f32 -1.442695, %v210_v16  ;;  %v213_v19 = vadd.f32 %v273_v11, %v202_v17 }
 0x210   :  { %v200_v20 = vld [vmem:[#allocation2 + $0x8] sm:$0xff] }
 0x211   :  { %311 = vpow2.f32 %v274_v18  ;;  %v277_v21 = vmul.f32 -1.442695, %v213_v19  ;;  %v211_v22 = vadd.f32 %v273_v11, %v200_v20 }
 0x213   :  { %313 = vpow2.f32 %v277_v21  ;;  %v275_v23 = vmul.f32 -1.442695, %v211_v22 }
 0x215   :  { %315 = vpow2.f32 %v275_v23 }
 0x21c   :  { %v310_v24 = vpop.eup %309 }
 0x21d   :  { %v228_v25 = vadd.f32 1.0, %v310_v24 }
 0x21e   :  { %v312_v26 = vpop.eup %311 }
 0x21f   :  { %317 = vrcp.f32 %v228_v25  ;;  %v226_v27 = vadd.f32 1.0, %v312_v26 }
 0x220   :  { %v314_v28 = vpop.eup %313 }
 0x221   :  { %319 = vrcp.f32 %v226_v27  ;;  %v229_v29 = vadd.f32 1.0, %v314_v28 }
 0x222   :  { %v316_v30 = vpop.eup %315 }
 0x223   :  { %321 = vrcp.f32 %v229_v29  ;;  %v227_v31 = vadd.f32 1.0, %v316_v30 }
 0x225   :  { %323 = vrcp.f32 %v227_v31 }
 0x22c   :  { %v318_v32 = vpop.eup %317 }
 0x22d   :  { %v240_v33 = vmul.f32 %v318_v32, %v212_v13 }
 0x22e   :  { %v320_v34 = vpop.eup %319 }
 0x22f   :  { %v284_v35 = vpack.c.bf16 %v240_v33, %v240_v33  ;;  %v238_v36 = vmul.f32 %v320_v34, %v210_v16 }
 0x230   :  { %v322_v37 = vpop.eup %321 }
 0x231   :  { %261 = vst.msk [vmem:[%s418_s5 + $0x8] sm:$0xf] %vm258_vm2, %v284_v35  ;;  %v282_v38 = vpack.c.bf16 %v238_v36, %v238_v36  ;;  %v241_v39 = vmul.f32 %v322_v37, %v213_v19 }
 0x232   :  { %v324_v40 = vpop.eup %323 }
 0x233   :  { %259 = vst.msk [vmem:[%s418_s5] sm:$0xf] %vm258_vm2, %v282_v38  ;;  %v285_v41 = vpack.c.bf16 %v241_v39, %v241_v39  ;;  %v239_v42 = vmul.f32 %v324_v40, %v211_v22 }
 0x235   :  { %262 = vst.msk [vmem:[%s418_s5 + $0xc] sm:$0xf] %vm258_vm2, %v285_v41  ;;  %v283_v43 = vpack.c.bf16 %v239_v42, %v239_v42 }
 0x237   :  { %260 = vst.msk [vmem:[%s418_s5 + $0x4] sm:$0xf] %vm258_vm2, %v283_v43 }

// kernel: conformer_encoder.25
= control target key start
LH: loop header
LB: loop body
LE: loop exit
PB: predicated region body
PF: predicated region fallthrough
CT: control target
= control target key end

     0   :  { %s819_s15 = smov 0   ;;  %s821_s16 = smov 0   ;;  %s900_s0 = inlined_call_operand.vmem [shape: f32[32,32], index: 0, kind: input, shape index: {}]   ;;  %s901_s1 = inlined_call_operand.vmem [shape: bf16[4,32,24], index: 1, kind: input, shape index: {}]   ;;  %s902_s2 = inlined_call_operand.vmem [shape: f32[1,32], index: 2, kind: input, shape index: {}]   ;;  %s903_s3 = inlined_call_operand.vmem [shape: f32[1,32], index: 3, kind: input, shape index: {}]   ;;  %s904_s4 = inlined_call_operand.vmem [shape: bf16[4,32,24], index: 4, kind: output, shape index: {}]  }
   0x1   :  { %s823_s17 = smov 0  }
   0x2 LB: > { %s29_s18 = sadd.s32 1, %s787_s16  ;;  %p686_p0 = scmp.ge.s32.totalorder %s791_s17, 1  ;;  %s791_s17 = sphi %s823_s17, %s14_s17   ;;  %s787_s16 = sphi %s821_s16, %s906_s16   ;;  %s783_s15 = sphi %s819_s15, %s905_s15  }
   0x3   : > { %p31_p1 = scmp.ge.s32.totalorder %s29_s18, 4  ;;  %p222_p2 = scmp.lt.s32.totalorder %s791_s17, 5 }
   0x5   : > { %s908_s18 = smov (%p31_p1, %s29_s18), 0  ;;  %p223_p3 = pnand %p686_p0, %p222_p2 }
   0x6   : > { %p280_p4 = scmp.lt.s32.totalorder (!%p223_p3), %s783_s15, 3  ;;  %p691_p5 = scmp.ne.s32.totalorder (!%p223_p3), %s783_s15, 0 }
   0x7   : > { %226 = sbr.rel (%p223_p3) target bundleno = 559 (0x22f), region = 36 }
   0xc   : > { %vm310_vm0 = vcmask 195584   ;;  %v793_v0 = vmov 0.0   ;;  %s281_s19 = scalar_select %p280_p4, %s783_s15, 3 }
   0xd   : > { %311 = vst.msk [vmem:[#allocation2] sm:$0xff] %vm310_vm0, %v793_v0  ;;  %312 = vst.msk [vmem:[#allocation2 + $0x8] sm:$0xff] %vm310_vm0, %v793_v0  ;;  %318 = sbr.rel (%p691_p5) target bundleno = 338 (0x152), region = 44 }
   0xe   : > { %313 = vst.msk [vmem:[#allocation2 + $0x10] sm:$0xff] %vm310_vm0, %v793_v0  ;;  %314 = vst.msk [vmem:[#allocation2 + $0x18] sm:$0xff] %vm310_vm0, %v793_v0  ;;  %s710_s20 = sshll.u32 %s281_s19, 4 }
   0xf   : > { %s844_s23 = scalar_lea.vmem %s901_s1, %s710_s20  ;;  %s849_s26 = scalar_lea.vmem %s904_s4, %s710_s20 }
  0x12   : > { %v319_v1 = vld [vmem:[%s900_s0] sm:$0xff]  ;;  %vm323_vm1 = vcmask 261120   ;;  %v321_v2 = vld [vmem:[%s900_s0 + $0x10] sm:$0xff]  ;;  %v320_v3 = vld [vmem:[%s900_s0 + $0x8] sm:$0xff]  ;;  %vm415_vm2 = vcmask 257024  }
  0x13   : > { %v324_v4 = vsel %vm323_vm1, %v319_v1, 0.0  ;;  %v330_v5 = vsel %vm323_vm1, %v321_v2, 0.0  ;;  %v322_v6 = vld [vmem:[%s900_s0 + $0x18] sm:$0xff]  ;;  %v327_v7 = vsel %vm323_vm1, %v320_v3, 0.0  ;;  %v692_v42 = vld [vmem:[%s902_s2] ss:$0 sm:$0xff] }
  0x14   : > { %325 = vadd.xlane.f32.xlu0 %v324_v4  ;;  %331 = vadd.xlane.f32.xlu1 %v330_v5  ;;  %v333_v8 = vsel %vm323_vm1, %v322_v6, 0.0  ;;  %v693_v44 = vld [vmem:[%s903_s3] ss:$0 sm:$0xff] }
  0x18   : > { %328 = vadd.xlane.f32.xlu0 %v327_v7  ;;  %334 = vadd.xlane.f32.xlu1 %v333_v8 }
  0x9d   : > { %v326_v9 = vpop.xlane.xlu0 %325  ;;  %v332_v10 = vpop.xlane.xlu1 %331 }
  0x9e   : > { %v337_v11 = vmul.f32 0.03125, %v326_v9  ;;  %v339_v12 = vmul.f32 0.03125, %v332_v10 }
  0xa0   : > { %v341_v13 = vsub.f32 %v319_v1, %v337_v11  ;;  %v343_v14 = vsub.f32 %v321_v2, %v339_v12 }
  0xa1   : > { %v329_v15 = vpop.xlane.xlu0 %328  ;;  %v335_v16 = vpop.xlane.xlu1 %334 }
  0xa2   : > { %v338_v17 = vmul.f32 0.03125, %v329_v15  ;;  %v340_v18 = vmul.f32 0.03125, %v335_v16  ;;  %v345_v19 = vmul.f32 %v341_v13, %v341_v13  ;;  %v347_v20 = vmul.f32 %v343_v14, %v343_v14 }
  0xa4   : > { %v342_v21 = vsub.f32 %v320_v3, %v338_v17  ;;  %v344_v22 = vsub.f32 %v322_v6, %v340_v18  ;;  %v349_v23 = vsel %vm323_vm1, %v345_v19, 0.0  ;;  %v355_v24 = vsel %vm323_vm1, %v347_v20, 0.0 }
  0xa5   : > { %350 = vadd.xlane.f32.xlu0 %v349_v23 }
  0xa6   : > { %v346_v25 = vmul.f32 %v342_v21, %v342_v21  ;;  %v348_v26 = vmul.f32 %v344_v22, %v344_v22 }
  0xa8   : > { %v352_v27 = vsel %vm323_vm1, %v346_v25, 0.0  ;;  %v358_v28 = vsel %vm323_vm1, %v348_v26, 0.0 }
  0xa9   : > { %356 = vadd.xlane.f32.xlu0 %v355_v24  ;;  %353 = vadd.xlane.f32.xlu1 %v352_v27 }
  0xad   : > { %359 = vadd.xlane.f32.xlu1 %v358_v28 }
 0x12e   : > { %v351_v29 = vpop.xlane.xlu0 %350 }
 0x12f   : > { %v361_v30 = vmul.f32 0.03125, %v351_v29 }
 0x131   : > { %v365_v31 = vadd.f32 1e-05, %v361_v30 }
 0x132   : > { %v354_v32 = vpop.xlane.xlu1 %353  ;;  %v357_v33 = vpop.xlane.xlu0 %356 }
 0x133   : > { %757 = vrsqrt.f32 %v365_v31  ;;  %v362_v34 = vmul.f32 0.03125, %v354_v32  ;;  %v363_v35 = vmul.f32 0.03125, %v357_v33 }
 0x135   : > { %v366_v36 = vadd.f32 1e-05, %v362_v34  ;;  %v367_v37 = vadd.f32 1e-05, %v363_v35 }
 0x136   : > { %v360_v38 = vpop.xlane.xlu1 %359 }
 0x137   : > { %759 = vrsqrt.f32 %v366_v36  ;;  %v364_v39 = vmul.f32 0.03125, %v360_v38 }
 0x138   : > { %761 = vrsqrt.f32 %v367_v37 }
 0x139   : > { %v368_v40 = vadd.f32 1e-05, %v364_v39 }
 0x13b   : > { %763 = vrsqrt.f32 %v368_v40 }
 0x140   : > { %v758_v41 = vpop.eup %757 }
 0x141   : > { %v373_v43 = vmul.f32 %v758_v41, %v341_v13 }
 0x143   : > { %v384_v45 = vmul.f32 %v692_v42, %v373_v43 }
 0x144   : > { %v760_v46 = vpop.eup %759 }
 0x145   : > { %v762_v47 = vpop.eup %761  ;;  %v395_v48 = vadd.f32 %v693_v44, %v384_v45  ;;  %v374_v49 = vmul.f32 %v760_v46, %v342_v21 }
 0x146   : > { %v375_v50 = vmul.f32 %v762_v47, %v343_v14 }
 0x147   : > { %v712_v51 = vpack.c.bf16 %v395_v48, %v395_v48  ;;  %v385_v52 = vmul.f32 %v692_v42, %v374_v49 }
 0x148   : > { %v764_v53 = vpop.eup %763  ;;  %v386_v54 = vmul.f32 %v692_v42, %v375_v50 }
 0x149   : > { %416 = vst.msk [vmem:[#allocation3] sm:$0xf] %vm415_vm2, %v712_v51  ;;  %v396_v55 = vadd.f32 %v693_v44, %v385_v52  ;;  %v376_v56 = vmul.f32 %v764_v53, %v344_v22 }
 0x14a   : > { %v397_v57 = vadd.f32 %v693_v44, %v386_v54 }
 0x14b   : > { %v713_v58 = vpack.c.bf16 %v396_v55, %v396_v55  ;;  %v387_v59 = vmul.f32 %v692_v42, %v376_v56 }
 0x14c   : > { %v714_v60 = vpack.c.bf16 %v397_v57, %v397_v57 }
 0x14d   : > { %417 = vst.msk [vmem:[#allocation3 + $0x4] sm:$0xf] %vm415_vm2, %v713_v58  ;;  %v398_v61 = vadd.f32 %v693_v44, %v387_v59 }
 0x14e   : > { %418 = vst.msk [vmem:[#allocation3 + $0x8] sm:$0xf] %vm415_vm2, %v714_v60 }
 0x14f   : > { %v715_v62 = vpack.c.bf16 %v398_v61, %v398_v61 }
 0x151   : > { %419 = vst.msk [vmem:[#allocation3 + $0xc] sm:$0xf] %vm415_vm2, %v715_v62 }
 0x152 PF: > { %v765_v63 = vld [vmem:[%s844_s23 + $0x8] sm:$0xff]   ;;  %v766_v0 = vld [vmem:[%s844_s23] sm:$0xff]   ;;  %vm454_vm3 = vcmask 261120   ;;  %vm542_vm4 = vcmask 191488  }
 0x153   : > { %724 = vmatprep.subr.bf16.mxu0 %v765_v63 }
 0x154   : > { %v767_v1 = vld [vmem:[#allocation3] sm:$0xff]   ;;  %725 = vmatpush3.bf16.msra.mxu0 %v765_v63  ;;  %v425_v11 = vld [vmem:[#allocation2 + $0x8] sm:$0xff] }
 0x155   : > { %726 = vmatprep.subr.bf16.mxu0 %v766_v0  ;;  %728 = vmatprep.mubr.msk.bf16.mxu0 %vm454_vm3, %v767_v1  ;;  %v426_v3 = vld [vmem:[#allocation2 + $0x10] sm:$0xff]  ;;  %v424_v5 = vld [vmem:[#allocation2] sm:$0xff]  ;;  %v427_v8 = vld [vmem:[#allocation2 + $0x18] sm:$0xff] }
 0x158   : > { %v768_v2 = vld [vmem:[#allocation3 + $0x8] sm:$0xff]   ;;  %727 = vmatpush3.bf16.msra.mxu0 %v766_v0 }
 0x15b   : > { %729 = vmatmul.mubr.msk.bf16.vlgmr.msra.gmra.mxu0 %vm454_vm3, %v768_v2 }
 0x21b   : > { %v730_v4 = vpop.f32.mrf.mxu0 }
 0x21c   : > { %v512_v6 = vadd.f32 %v730_v4, %v426_v3 }
 0x21d   : > { %v495_v7 = vpop.f32.mrf.mxu0 }
 0x21e   : > { %517 = vst.msk [vmem:[#allocation2 + $0x10] sm:$0xff] %vm310_vm0, %v512_v6  ;;  %v510_v9 = vadd.f32 %v495_v7, %v424_v5 }
 0x21f   : > { %v731_v10 = vpop.f32.mrf.mxu0 }
 0x220   : > { %515 = vst.msk [vmem:[#allocation2] sm:$0xff] %vm310_vm0, %v510_v9  ;;  %v513_v12 = vadd.f32 %v731_v10, %v427_v8 }
 0x221   : > { %v498_v13 = vpop.f32.mrf.mxu0 }
 0x222   : > { %518 = vst.msk [vmem:[#allocation2 + $0x18] sm:$0xff] %vm310_vm0, %v513_v12  ;;  %v511_v14 = vadd.f32 %v498_v13, %v425_v11 }
 0x224   : > { %516 = vst.msk [vmem:[#allocation2 + $0x8] sm:$0xff] %vm310_vm0, %v511_v14 }
 0x225   : > { %v524_v15 = vld [vmem:[#allocation2 + $0x10] sm:$0xff] }
 0x226   : > { %v718_v16 = vpack.c.bf16 %v524_v15, %v524_v15 }
 0x227   : > { %v522_v17 = vld [vmem:[#allocation2] sm:$0xff] }
 0x228   : > { %545 = vst.msk [vmem:[%s849_s26 + $0x8] sm:$0xf] %vm542_vm4, %v718_v16  ;;  %v716_v18 = vpack.c.bf16 %v522_v17, %v522_v17 }
 0x229   : > { %v525_v19 = vld [vmem:[#allocation2 + $0x18] sm:$0xff] }
 0x22a   : > { %543 = vst.msk [vmem:[%s849_s26] sm:$0xf] %vm542_vm4, %v716_v18  ;;  %v719_v20 = vpack.c.bf16 %v525_v19, %v525_v19 }
 0x22b   : > { %v523_v21 = vld [vmem:[#allocation2 + $0x8] sm:$0xff] }
 0x22c   : > { %546 = vst.msk [vmem:[%s849_s26 + $0xc] sm:$0xf] %vm542_vm4, %v719_v20  ;;  %v717_v22 = vpack.c.bf16 %v523_v21, %v523_v21 }
 0x22e   : > { %544 = vst.msk [vmem:[%s849_s26 + $0x4] sm:$0xf] %vm542_vm4, %v717_v22 }
 0x22f PF: > { %s14_s17 = sadd.s32 1, %s791_s17   ;;  %s905_s15 = smov %s787_s16 }
 0x230   : > { %p11_p6 = scmp.ge.s32.totalorder %s14_s17, 6   ;;  %s906_s16 = smov %s908_s18 }
 0x232   :  { %13 = sbr.rel (!%p11_p6) target bundleno = 2 (0x2), region = 87 }

// kernel: conformer_encoder.26
= control target key start
LH: loop header
LB: loop body
LE: loop exit
PB: predicated region body
PF: predicated region fallthrough
CT: control target
= control target key end

     0   :  { %s821_s9 = smov 0   ;;  %s823_s10 = smov 0   ;;  %s980_s0 = inlined_call_operand.vmem [shape: f32[128,32], index: 0, kind: input, shape index: {}]   ;;  %s981_s1 = inlined_call_operand.vmem [shape: bf16[4,32,8], index: 1, kind: input, shape index: {}]   ;;  %s982_s2 = inlined_call_operand.vmem [shape: bf16[4,128,8], index: 2, kind: output, shape index: {}]  }
   0x1   :  { %s825_s11 = smov 0  }
   0x2 LB: > { %s27_s12 = sadd.s32 1, %s799_s10  ;;  %p669_p0 = scmp.ge.s32.totalorder %s803_s11, 1  ;;  %s803_s11 = sphi %s825_s11, %s12_s11   ;;  %s799_s10 = sphi %s823_s10, %s984_s10   ;;  %s795_s9 = sphi %s821_s9, %s983_s9  }
   0x3   : > { %p29_p1 = scmp.ge.s32.totalorder %s27_s12, 4  ;;  %p156_p2 = scmp.lt.s32.totalorder %s803_s11, 5 }
   0x5   : > { %s986_s12 = smov (%p29_p1, %s27_s12), 0  ;;  %p157_p3 = pnand %p669_p0, %p156_p2 }
   0x6   : > { %p204_p4 = scmp.lt.s32.totalorder (!%p157_p3), %s795_s9, 3 }
   0x7   : > { %160 = sbr.rel (%p157_p3) target bundleno = 247 (0xf7), region = 28 }
   0xc   : > { %v245_v0 = vld [vmem:[%s980_s0] sm:$0xff]  ;;  %v246_v1 = vld [vmem:[%s980_s0 + $0x8] sm:$0xff]  ;;  %vm301_vm0 = vcmask 261120   ;;  %vm228_vm1 = vcmask 64512   ;;  %s988_s9 = smov (!%p204_p4, %s795_s9), 3  ;;  %v805_v6 = vmov 0.0  }
   0xd   : > { %v253_v2 = vld [vmem:[%s980_s0 + $0x40] sm:$0xff]  ;;  %v261_v3 = vpack.c.bf16 %v246_v1, %v245_v0  ;;  %v254_v4 = vld [vmem:[%s980_s0 + $0x48] sm:$0xff]  ;;  %231 = vst.msk [vmem:[#allocation2 + $0x10] sm:$0xff] %vm228_vm1, %v805_v6  ;;  %229 = vst.msk [vmem:[#allocation2] sm:$0xff] %vm228_vm1, %v805_v6  ;;  %s702_s21 = sshll.u32 %s988_s9, 4  ;;  %s703_s25 = sshll.u32 %s988_s9, 6 }
   0xe   : > { %v265_v5 = vpack.c.bf16 %v254_v4, %v253_v2  ;;  %230 = vst.msk [vmem:[#allocation2 + $0x8] sm:$0xff] %vm228_vm1, %v805_v6  ;;  %232 = vst.msk [vmem:[#allocation2 + $0x18] sm:$0xff] %vm228_vm1, %v805_v6  ;;  %s211_s24 = scalar_lea.vmem %s981_s1, %s702_s21  ;;  %v247_v9 = vld [vmem:[%s980_s0 + $0x10] sm:$0xff]  ;;  %v248_v10 = vld [vmem:[%s980_s0 + $0x18] sm:$0xff]  ;;  %s929_s9 = scalar_lea.vmem %s982_s2, %s703_s25  ;;  %vm539_vm2 = vcmask 60416  }
   0xf   : > { %233 = vst.msk [vmem:[#allocation2 + $0x20] sm:$0xff] %vm228_vm1, %v805_v6  ;;  %234 = vst.msk [vmem:[#allocation2 + $0x28] sm:$0xff] %vm228_vm1, %v805_v6  ;;  %734 = vmatprep.mubr.msk.bf16.mxu0 %vm301_vm0, %v261_v3  ;;  %v779_v7 = vld [vmem:[%s211_s24 + $0x8] sm:$0xff]   ;;  %v780_v8 = vld [vmem:[%s211_s24] sm:$0xff]   ;;  %v262_v17 = vpack.c.bf16 %v248_v10, %v247_v9 }
  0x10   : > { %235 = vst.msk [vmem:[#allocation2 + $0x30] sm:$0xff] %vm228_vm1, %v805_v6  ;;  %236 = vst.msk [vmem:[#allocation2 + $0x38] sm:$0xff] %vm228_vm1, %v805_v6  ;;  %742 = vmatprep.mubr.msk.bf16.mxu1 %vm301_vm0, %v265_v5  ;;  %730 = vmatprep.subr.bf16.mxu0 %v779_v7  ;;  %v255_v11 = vld [vmem:[%s980_s0 + $0x50] sm:$0xff]  ;;  %v256_v12 = vld [vmem:[%s980_s0 + $0x58] sm:$0xff] }
  0x11   : > { %237 = vst.msk [vmem:[#allocation2 + $0x40] sm:$0xff] %vm228_vm1, %v805_v6  ;;  %238 = vst.msk [vmem:[#allocation2 + $0x48] sm:$0xff] %vm228_vm1, %v805_v6  ;;  %750 = vmatprep.subr.bf16.mxu1 %v779_v7  ;;  %731 = vmatpush3.bf16.msra.mxu0 %v779_v7  ;;  %v249_v13 = vld [vmem:[%s980_s0 + $0x20] sm:$0xff]  ;;  %v250_v14 = vld [vmem:[%s980_s0 + $0x28] sm:$0xff]  ;;  %v266_v18 = vpack.c.bf16 %v256_v12, %v255_v11 }
  0x12   : > { %239 = vst.msk [vmem:[#allocation2 + $0x50] sm:$0xff] %vm228_vm1, %v805_v6  ;;  %240 = vst.msk [vmem:[#allocation2 + $0x58] sm:$0xff] %vm228_vm1, %v805_v6  ;;  %752 = vmatpush3.bf16.msra.mxu1 %v779_v7  ;;  %732 = vmatprep.subr.bf16.mxu0 %v780_v8  ;;  %v257_v15 = vld [vmem:[%s980_s0 + $0x60] sm:$0xff]  ;;  %v258_v16 = vld [vmem:[%s980_s0 + $0x68] sm:$0xff]  ;;  %v263_v19 = vpack.c.bf16 %v250_v14, %v249_v13 }
  0x13   : > { %241 = vst.msk [vmem:[#allocation2 + $0x60] sm:$0xff] %vm228_vm1, %v805_v6  ;;  %242 = vst.msk [vmem:[#allocation2 + $0x68] sm:$0xff] %vm228_vm1, %v805_v6  ;;  %751 = vmatprep.subr.bf16.mxu1 %v780_v8  ;;  %v267_v20 = vpack.c.bf16 %v258_v16, %v257_v15  ;;  %v251_v21 = vld [vmem:[%s980_s0 + $0x30] sm:$0xff]  ;;  %v252_v22 = vld [vmem:[%s980_s0 + $0x38] sm:$0xff] }
  0x14   : > { %243 = vst.msk [vmem:[#allocation2 + $0x70] sm:$0xff] %vm228_vm1, %v805_v6  ;;  %244 = vst.msk [vmem:[#allocation2 + $0x78] sm:$0xff] %vm228_vm1, %v805_v6  ;;  %v259_v23 = vld [vmem:[%s980_s0 + $0x70] sm:$0xff]  ;;  %v260_v24 = vld [vmem:[%s980_s0 + $0x78] sm:$0xff]  ;;  %v264_v25 = vpack.c.bf16 %v252_v22, %v251_v21 }
  0x15   : > { %733 = vmatpush3.bf16.msra.mxu0 %v780_v8  ;;  %v268_v26 = vpack.c.bf16 %v260_v24, %v259_v23  ;;  %v271_v27 = vld [vmem:[#allocation2 + $0x10] sm:$0xff]  ;;  %v269_v31 = vld [vmem:[#allocation2] sm:$0xff]  ;;  %v272_v37 = vld [vmem:[#allocation2 + $0x18] sm:$0xff] }
  0x16   : > { %753 = vmatpush3.bf16.msra.mxu1 %v780_v8  ;;  %v270_v43 = vld [vmem:[#allocation2 + $0x8] sm:$0xff]  ;;  %v273_v55 = vld [vmem:[#allocation2 + $0x20] sm:$0xff] }
  0x17   : > { %v275_v49 = vld [vmem:[#allocation2 + $0x30] sm:$0xff]  ;;  %v276_v59 = vld [vmem:[#allocation2 + $0x38] sm:$0xff]  ;;  %v274_v5 = vld [vmem:[#allocation2 + $0x28] sm:$0xff] }
  0x18   : > { %735 = vmatmul.mubr.msk.bf16.vlgmr.msra.gmra.mxu0 %vm301_vm0, %v262_v17  ;;  %v277_v32 = vld [vmem:[#allocation2 + $0x40] sm:$0xff]  ;;  %v278_v44 = vld [vmem:[#allocation2 + $0x48] sm:$0xff] }
  0x19   : > { %743 = vmatmul.mubr.msk.bf16.vlgmr.msra.gmra.mxu1 %vm301_vm0, %v266_v18  ;;  %738 = vmatprep.mubr.msk.bf16.mxu0 %vm301_vm0, %v263_v19  ;;  %v279_v28 = vld [vmem:[#allocation2 + $0x50] sm:$0xff]  ;;  %v280_v38 = vld [vmem:[#allocation2 + $0x58] sm:$0xff] }
  0x1a   : > { %746 = vmatprep.mubr.msk.bf16.mxu1 %vm301_vm0, %v267_v20  ;;  %v281_v56 = vld [vmem:[#allocation2 + $0x60] sm:$0xff]  ;;  %v282_v10 = vld [vmem:[#allocation2 + $0x68] sm:$0xff] }
  0x1b   : > { %v283_v50 = vld [vmem:[#allocation2 + $0x70] sm:$0xff]  ;;  %v284_v0 = vld [vmem:[#allocation2 + $0x78] sm:$0xff] }
  0x20   : > { %739 = vmatmul.mubr.msk.bf16.gmra.mxu0 %vm301_vm0, %v264_v25 }
  0x21   : > { %747 = vmatmul.mubr.msk.bf16.gmra.mxu1 %vm301_vm0, %v268_v26 }
  0xd8   : > { %v736_v29 = vpop.f32.mrf.mxu0 }
  0xd9   : > { %v744_v30 = vpop.f32.mrf.mxu1  ;;  %v425_v33 = vadd.f32 %v736_v29, %v271_v27 }
  0xda   : > { %v433_v34 = vadd.f32 %v744_v30, %v279_v28  ;;  %v360_v35 = vpop.f32.mrf.mxu0 }
  0xdb   : > { %v392_v36 = vpop.f32.mrf.mxu1  ;;  %442 = vst.msk [vmem:[#allocation2 + $0x10] sm:$0xff] %vm228_vm1, %v425_v33  ;;  %v423_v39 = vadd.f32 %v360_v35, %v269_v31 }
  0xdc   : > { %450 = vst.msk [vmem:[#allocation2 + $0x50] sm:$0xff] %vm228_vm1, %v433_v34  ;;  %v431_v40 = vadd.f32 %v392_v36, %v277_v32  ;;  %v737_v41 = vpop.f32.mrf.mxu0 }
  0xdd   : > { %v745_v42 = vpop.f32.mrf.mxu1  ;;  %440 = vst.msk [vmem:[#allocation2] sm:$0xff] %vm228_vm1, %v423_v39  ;;  %v426_v45 = vadd.f32 %v737_v41, %v272_v37 }
  0xde   : > { %448 = vst.msk [vmem:[#allocation2 + $0x40] sm:$0xff] %vm228_vm1, %v431_v40  ;;  %v434_v46 = vadd.f32 %v745_v42, %v280_v38  ;;  %v363_v47 = vpop.f32.mrf.mxu0 }
  0xdf   : > { %v395_v48 = vpop.f32.mrf.mxu1  ;;  %443 = vst.msk [vmem:[#allocation2 + $0x18] sm:$0xff] %vm228_vm1, %v426_v45  ;;  %v424_v51 = vadd.f32 %v363_v47, %v270_v43 }
  0xe0   : > { %451 = vst.msk [vmem:[#allocation2 + $0x58] sm:$0xff] %vm228_vm1, %v434_v46  ;;  %v432_v52 = vadd.f32 %v395_v48, %v278_v44  ;;  %v740_v53 = vpop.f32.mrf.mxu0 }
  0xe1   : > { %v748_v54 = vpop.f32.mrf.mxu1  ;;  %441 = vst.msk [vmem:[#allocation2 + $0x8] sm:$0xff] %vm228_vm1, %v424_v51  ;;  %v429_v57 = vadd.f32 %v740_v53, %v275_v49 }
  0xe2   : > { %449 = vst.msk [vmem:[#allocation2 + $0x48] sm:$0xff] %vm228_vm1, %v432_v52  ;;  %v437_v58 = vadd.f32 %v748_v54, %v283_v50  ;;  %v461_v60 = vld [vmem:[#allocation2 + $0x10] sm:$0xff]  ;;  %v376_v62 = vpop.f32.mrf.mxu0 }
  0xe3   : > { %v469_v61 = vld [vmem:[#allocation2 + $0x50] sm:$0xff]  ;;  %v408_v63 = vpop.f32.mrf.mxu1  ;;  %v706_v1 = vpack.c.bf16 %v461_v60, %v461_v60  ;;  %446 = vst.msk [vmem:[#allocation2 + $0x30] sm:$0xff] %vm228_vm1, %v429_v57  ;;  %v427_v3 = vadd.f32 %v376_v62, %v273_v55 }
  0xe4   : > { %v714_v2 = vpack.c.bf16 %v469_v61, %v469_v61  ;;  %454 = vst.msk [vmem:[#allocation2 + $0x70] sm:$0xff] %vm228_vm1, %v437_v58  ;;  %v435_v4 = vadd.f32 %v408_v63, %v281_v56  ;;  %v459_v6 = vld [vmem:[#allocation2] sm:$0xff]  ;;  %v741_v8 = vpop.f32.mrf.mxu0 }
  0xe5   : > { %v467_v7 = vld [vmem:[#allocation2 + $0x40] sm:$0xff]  ;;  %v749_v9 = vpop.f32.mrf.mxu1  ;;  %542 = vst.msk [vmem:[%s929_s9 + $0x8] sm:$0xf] %vm539_vm2, %v706_v1  ;;  %v704_v11 = vpack.c.bf16 %v459_v6, %v459_v6  ;;  %v430_v13 = vadd.f32 %v741_v8, %v276_v59 }
  0xe6   : > { %550 = vst.msk [vmem:[%s929_s9 + $0x28] sm:$0xf] %vm539_vm2, %v714_v2  ;;  %v712_v12 = vpack.c.bf16 %v467_v7, %v467_v7  ;;  %v438_v14 = vadd.f32 %v749_v9, %v284_v0  ;;  %v462_v15 = vld [vmem:[#allocation2 + $0x18] sm:$0xff]  ;;  %v379_v17 = vpop.f32.mrf.mxu0 }
  0xe7   : > { %444 = vst.msk [vmem:[#allocation2 + $0x20] sm:$0xff] %vm228_vm1, %v427_v3  ;;  %452 = vst.msk [vmem:[#allocation2 + $0x60] sm:$0xff] %vm228_vm1, %v435_v4  ;;  %v470_v16 = vld [vmem:[#allocation2 + $0x58] sm:$0xff]  ;;  %v411_v18 = vpop.f32.mrf.mxu1  ;;  %v707_v19 = vpack.c.bf16 %v462_v15, %v462_v15  ;;  %v428_v21 = vadd.f32 %v379_v17, %v274_v5 }
  0xe8   : > { %540 = vst.msk [vmem:[%s929_s9] sm:$0xf] %vm539_vm2, %v704_v11  ;;  %548 = vst.msk [vmem:[%s929_s9 + $0x20] sm:$0xf] %vm539_vm2, %v712_v12  ;;  %v715_v20 = vpack.c.bf16 %v470_v16, %v470_v16  ;;  %v436_v22 = vadd.f32 %v411_v18, %v282_v10  ;;  %v460_v23 = vld [vmem:[#allocation2 + $0x8] sm:$0xff] }
  0xe9   : > { %447 = vst.msk [vmem:[#allocation2 + $0x38] sm:$0xff] %vm228_vm1, %v430_v13  ;;  %455 = vst.msk [vmem:[#allocation2 + $0x78] sm:$0xff] %vm228_vm1, %v438_v14  ;;  %v468_v24 = vld [vmem:[#allocation2 + $0x48] sm:$0xff]  ;;  %v705_v25 = vpack.c.bf16 %v460_v23, %v460_v23 }
  0xea   : > { %543 = vst.msk [vmem:[%s929_s9 + $0xc] sm:$0xf] %vm539_vm2, %v707_v19  ;;  %551 = vst.msk [vmem:[%s929_s9 + $0x2c] sm:$0xf] %vm539_vm2, %v715_v20  ;;  %v713_v26 = vpack.c.bf16 %v468_v24, %v468_v24  ;;  %v465_v27 = vld [vmem:[#allocation2 + $0x30] sm:$0xff] }
  0xeb   : > { %445 = vst.msk [vmem:[#allocation2 + $0x28] sm:$0xff] %vm228_vm1, %v428_v21  ;;  %453 = vst.msk [vmem:[#allocation2 + $0x68] sm:$0xff] %vm228_vm1, %v436_v22  ;;  %v473_v28 = vld [vmem:[#allocation2 + $0x70] sm:$0xff]  ;;  %v710_v29 = vpack.c.bf16 %v465_v27, %v465_v27 }
  0xec   : > { %541 = vst.msk [vmem:[%s929_s9 + $0x4] sm:$0xf] %vm539_vm2, %v705_v25  ;;  %549 = vst.msk [vmem:[%s929_s9 + $0x24] sm:$0xf] %vm539_vm2, %v713_v26  ;;  %v718_v30 = vpack.c.bf16 %v473_v28, %v473_v28 }
  0xed   : > { %546 = vst.msk [vmem:[%s929_s9 + $0x18] sm:$0xf] %vm539_vm2, %v710_v29 }
  0xee   : > { %v463_v31 = vld [vmem:[#allocation2 + $0x20] sm:$0xff]  ;;  %554 = vst.msk [vmem:[%s929_s9 + $0x38] sm:$0xf] %vm539_vm2, %v718_v30 }
  0xef   : > { %v471_v32 = vld [vmem:[#allocation2 + $0x60] sm:$0xff]  ;;  %v708_v33 = vpack.c.bf16 %v463_v31, %v463_v31 }
  0xf0   : > { %v716_v34 = vpack.c.bf16 %v471_v32, %v471_v32  ;;  %v466_v35 = vld [vmem:[#allocation2 + $0x38] sm:$0xff] }
  0xf1   : > { %v474_v36 = vld [vmem:[#allocation2 + $0x78] sm:$0xff]  ;;  %544 = vst.msk [vmem:[%s929_s9 + $0x10] sm:$0xf] %vm539_vm2, %v708_v33  ;;  %v711_v37 = vpack.c.bf16 %v466_v35, %v466_v35 }
  0xf2   : > { %552 = vst.msk [vmem:[%s929_s9 + $0x30] sm:$0xf] %vm539_vm2, %v716_v34  ;;  %v719_v38 = vpack.c.bf16 %v474_v36, %v474_v36  ;;  %v464_v39 = vld [vmem:[#allocation2 + $0x28] sm:$0xff] }
  0xf3   : > { %v472_v40 = vld [vmem:[#allocation2 + $0x68] sm:$0xff]  ;;  %547 = vst.msk [vmem:[%s929_s9 + $0x1c] sm:$0xf] %vm539_vm2, %v711_v37  ;;  %v709_v41 = vpack.c.bf16 %v464_v39, %v464_v39 }
  0xf4   : > { %555 = vst.msk [vmem:[%s929_s9 + $0x3c] sm:$0xf] %vm539_vm2, %v719_v38  ;;  %v717_v42 = vpack.c.bf16 %v472_v40, %v472_v40 }
  0xf5   : > { %545 = vst.msk [vmem:[%s929_s9 + $0x14] sm:$0xf] %vm539_vm2, %v709_v41 }
  0xf6   : > { %553 = vst.msk [vmem:[%s929_s9 + $0x34] sm:$0xf] %vm539_vm2, %v717_v42 }
  0xf7 PF: > { %s12_s11 = sadd.s32 1, %s803_s11   ;;  %s983_s9 = smov %s799_s10 }
  0xf8   : > { %p9_p5 = scmp.ge.s32.totalorder %s12_s11, 6   ;;  %s984_s10 = smov %s986_s12 }
  0xfa   :  { %11 = sbr.rel (!%p9_p5) target bundleno = 2 (0x2), region = 69 }

// kernel: conformer_encoder.28
= control target key start
LH: loop header
LB: loop body
LE: loop exit
PB: predicated region body
PF: predicated region fallthrough
CT: control target
= control target key end

     0   :  { %s680_s15 = smov 0   ;;  %s682_s16 = smov 0   ;;  %s754_s0 = inlined_call_operand.vmem [shape: bf16[4,32,8], index: 0, kind: input, shape index: {}]   ;;  %s755_s1 = inlined_call_operand.vmem [shape: bf16[4,8,32], index: 1, kind: input, shape index: {}]   ;;  %s756_s2 = inlined_call_operand.vmem [shape: f32[1,32], index: 2, kind: input, shape index: {}]   ;;  %s757_s3 = inlined_call_operand.vmem [shape: f32[32,32], index: 3, kind: input, shape index: {}]   ;;  %s758_s4 = inlined_call_operand.vmem [shape: f32[32,32], index: 4, kind: output, shape index: {}]  }
   0x1   :  { %s684_s17 = smov 0  }
   0x2 LB: > { %s26_s18 = sadd.s32 1, %s648_s16  ;;  %p577_p0 = scmp.ge.s32.totalorder %s652_s17, 1  ;;  %s652_s17 = sphi %s684_s17, %s14_s17   ;;  %s648_s16 = sphi %s682_s16, %s760_s16   ;;  %s644_s15 = sphi %s680_s15, %s759_s15  }
   0x3   : > { %p27_p1 = scmp.ge.s32.totalorder %s26_s18, 4  ;;  %p228_p2 = scmp.lt.s32.totalorder %s652_s17, 5 }
   0x5   : > { %s762_s18 = smov (%p27_p1, %s26_s18), 0  ;;  %p229_p3 = pnand %p577_p0, %p228_p2 }
   0x6   : > { %p280_p4 = scmp.lt.s32.totalorder (!%p229_p3), %s644_s15, 3  ;;  %p581_p5 = scmp.ne.s32.totalorder (!%p229_p3), %s644_s15, 0 }
   0x7   : > { %232 = sbr.rel (%p229_p3) target bundleno = 240 (0xf0), region = 36 }
   0xc   : > { %s281_s19 = scalar_select %p280_p4, %s644_s15, 3 }
   0xd   : > { %321 = sbr.rel (%p581_p5) target bundleno = 21 (0x15), region = 40 }
   0xe   : > { %s592_s20 = sshll.u32 %s281_s19, 4  ;;  %s580_s21 = sshll.u32 %s281_s19, 2 }
   0xf   : > { %s287_s24 = scalar_lea.vmem %s754_s0, %s592_s20  ;;  %s295_s27 = scalar_lea.vmem %s755_s1, %s580_s21 }
  0x12   : > { %vm322_vm0 = vcmask 261120   ;;  %v654_v0 = vmov 0.0  }
  0x13   : > { %323 = vst.msk [vmem:[#allocation2] sm:$0xff] %vm322_vm0, %v654_v0  ;;  %324 = vst.msk [vmem:[#allocation2 + $0x8] sm:$0xff] %vm322_vm0, %v654_v0 }
  0x14   : > { %325 = vst.msk [vmem:[#allocation2 + $0x10] sm:$0xff] %vm322_vm0, %v654_v0  ;;  %326 = vst.msk [vmem:[#allocation2 + $0x18] sm:$0xff] %vm322_vm0, %v654_v0 }
  0x15 PF: > { %v335_v1 = vld [vmem:[%s295_s27] sm:$0xf]  ;;  %vm353_vm1 = vcmask 1043456   ;;  %vm346_vm2 = vcmask 64512   ;;  %v629_v4 = vld [vmem:[%s287_s24 + $0x8] sm:$0xff]   ;;  %vm410_vm3 = vcmask 261120  }
  0x16   : > { %v628_v2 = vld [vmem:[%s287_s24] sm:$0xff]   ;;  %602 = vmatprep.subr.msk.bf16.mxu0 %vm353_vm1, %v335_v1  ;;  %v355_v3 = vsel %vm353_vm1, %v335_v1, 0  ;;  %p586_p6 = scmp.ne.s32.totalorder %s644_s15, 3 }
  0x17   : > { %597 = vmatpush3.bf16.msra.mxu0 %v355_v3  ;;  %598 = vmatprep.mubr.msk.bf16.mxu0 %vm346_vm2, %v628_v2 }
  0x1a   : > { %599 = vmatmul.mubr.msk.bf16.vlgmr.msra.gmra.mxu0 %vm346_vm2, %v629_v4  ;;  %v331_v7 = vld [vmem:[#allocation2] sm:$0xff]  ;;  %v332_v13 = vld [vmem:[#allocation2 + $0x8] sm:$0xff] }
  0x1b   : > { %v333_v5 = vld [vmem:[#allocation2 + $0x10] sm:$0xff]  ;;  %v334_v10 = vld [vmem:[#allocation2 + $0x18] sm:$0xff] }
  0xda   : > { %v600_v6 = vpop.f32.mrf.mxu0 }
  0xdb   : > { %v408_v8 = vadd.f32 %v600_v6, %v333_v5 }
  0xdc   : > { %v391_v9 = vpop.f32.mrf.mxu0 }
  0xdd   : > { %413 = vst.msk [vmem:[#allocation2 + $0x10] sm:$0xff] %vm410_vm3, %v408_v8  ;;  %v406_v11 = vadd.f32 %v391_v9, %v331_v7 }
  0xde   : > { %v601_v12 = vpop.f32.mrf.mxu0 }
  0xdf   : > { %411 = vst.msk [vmem:[#allocation2] sm:$0xff] %vm410_vm3, %v406_v11  ;;  %v409_v14 = vadd.f32 %v601_v12, %v334_v10  ;;  %418 = sbr.rel (%p586_p6) target bundleno = 240 (0xf0), region = 44 }
  0xe0   : > { %v394_v15 = vpop.f32.mrf.mxu0 }
  0xe1   : > { %414 = vst.msk [vmem:[#allocation2 + $0x18] sm:$0xff] %vm410_vm3, %v409_v14  ;;  %v407_v16 = vadd.f32 %v394_v15, %v332_v13 }
  0xe3   : > { %412 = vst.msk [vmem:[#allocation2 + $0x8] sm:$0xff] %vm410_vm3, %v407_v16 }
  0xe4   : > { %v587_v18 = vld [vmem:[%s756_s2] ss:$0 sm:$0xff]  ;;  %v435_v22 = vld [vmem:[%s757_s3 + $0x8] sm:$0xff]  ;;  %v421_v23 = vld [vmem:[#allocation2 + $0x10] sm:$0xff] }
  0xe5   : > { %v434_v19 = vld [vmem:[%s757_s3] sm:$0xff]  ;;  %v432_v25 = vadd.f32 %v587_v18, %v421_v23  ;;  %v436_v26 = vld [vmem:[%s757_s3 + $0x10] sm:$0xff]  ;;  %v437_v28 = vld [vmem:[%s757_s3 + $0x18] sm:$0xff] }
  0xe6   : > { %v419_v17 = vld [vmem:[#allocation2] sm:$0xff] }
  0xe7   : > { %v430_v20 = vadd.f32 %v587_v18, %v419_v17  ;;  %v440_v32 = vadd.f32 %v436_v26, %v432_v25 }
  0xe8   : > { %v422_v27 = vld [vmem:[#allocation2 + $0x18] sm:$0xff] }
  0xe9   : > { %v438_v29 = vadd.f32 %v434_v19, %v430_v20  ;;  %v433_v30 = vadd.f32 %v587_v18, %v422_v27  ;;  %444 = vst.msk [vmem:[%s758_s4 + $0x10] sm:$0xff] %vm410_vm3, %v440_v32 }
  0xea   : > { %v420_v21 = vld [vmem:[#allocation2 + $0x8] sm:$0xff] }
  0xeb   : > { %v431_v24 = vadd.f32 %v587_v18, %v420_v21  ;;  %442 = vst.msk [vmem:[%s758_s4] sm:$0xff] %vm410_vm3, %v438_v29  ;;  %v441_v33 = vadd.f32 %v437_v28, %v433_v30 }
  0xed   : > { %v439_v31 = vadd.f32 %v435_v22, %v431_v24  ;;  %445 = vst.msk [vmem:[%s758_s4 + $0x18] sm:$0xff] %vm410_vm3, %v441_v33 }
  0xef   : > { %443 = vst.msk [vmem:[%s758_s4 + $0x8] sm:$0xff] %vm410_vm3, %v439_v31 }
  0xf0 PF: > { %s14_s17 = sadd.s32 1, %s652_s17   ;;  %s759_s15 = smov %s648_s16 }
  0xf1   : > { %p11_p7 = scmp.ge.s32.totalorder %s14_s17, 6   ;;  %s760_s16 = smov %s762_s18 }
  0xf3   :  { %13 = sbr.rel (!%p11_p7) target bundleno = 2 (0x2), region = 83 }

// kernel: conformer_encoder.29
= control target key start
LH: loop header
LB: loop body
LE: loop exit
PB: predicated region body
PF: predicated region fallthrough
CT: control target
= control target key end

     0   :  { %vm34_vm0 = vcmask 261120   ;;  %vm25_vm1 = vcmask 523264   ;;  %v342_v30 = vmov 0.0   ;;  %vm274_vm2 = vcmask 257024   ;;  %s431_s0 = inlined_call_operand.vmem [shape: f32[32,32], index: 0, kind: input, shape index: {}]   ;;  %s432_s1 = inlined_call_operand.vmem [shape: bf16[32,64], index: 1, kind: input, shape index: {}]   ;;  %s433_s3 = inlined_call_operand.vmem [shape: f32[1,32], index: 3, kind: input, shape index: {}]   ;;  %s434_s4 = inlined_call_operand.vmem [shape: f32[1,32], index: 4, kind: input, shape index: {}]   ;;  %s435_s2 = inlined_call_operand.vmem [shape: f32[1,64], index: 2, kind: input, shape index: {}]   ;;  %s436_s5 = inlined_call_operand.vmem [shape: bf16[32,32], index: 5, kind: output, shape index: {}]  }
   0x1   :  { %v30_v0 = vld [vmem:[%s431_s0] sm:$0xff]  ;;  %v32_v1 = vld [vmem:[%s431_s0 + $0x10] sm:$0xff]  ;;  %v31_v2 = vld [vmem:[%s431_s0 + $0x8] sm:$0xff]  ;;  %28 = vst.msk [vmem:[#allocation2 + $0x10] sm:$0xff] %vm25_vm1, %v342_v30 }
   0x2   :  { %v35_v3 = vsel %vm34_vm0, %v30_v0, 0.0  ;;  %v41_v4 = vsel %vm34_vm0, %v32_v1, 0.0  ;;  %v33_v5 = vld [vmem:[%s431_s0 + $0x18] sm:$0xff]  ;;  %v38_v6 = vsel %vm34_vm0, %v31_v2, 0.0  ;;  %v316_v28 = vld [vmem:[%s432_s1 + $0x8] sm:$0xff]   ;;  %v317_v29 = vld [vmem:[%s432_s1] sm:$0xff]  }
   0x3   :  { %36 = vadd.xlane.f32.xlu0 %v35_v3  ;;  %42 = vadd.xlane.f32.xlu1 %v41_v4  ;;  %v44_v7 = vsel %vm34_vm0, %v33_v5, 0.0  ;;  %26 = vst.msk [vmem:[#allocation2] sm:$0xff] %vm25_vm1, %v342_v30  ;;  %27 = vst.msk [vmem:[#allocation2 + $0x8] sm:$0xff] %vm25_vm1, %v342_v30  ;;  %v283_v45 = vld [vmem:[%s433_s3] ss:$0 sm:$0xff] }
   0x4   :  { %306 = vmatprep.subr.bf16.mxu0 %v316_v28  ;;  %29 = vst.msk [vmem:[#allocation2 + $0x18] sm:$0xff] %vm25_vm1, %v342_v30  ;;  %v284_v50 = vld [vmem:[%s434_s4] ss:$0 sm:$0xff] }
   0x5   :  { %307 = vmatpush3.bf16.msra.mxu0 %v316_v28 }
   0x6   :  { %308 = vmatprep.subr.bf16.mxu0 %v317_v29 }
   0x7   :  { %39 = vadd.xlane.f32.xlu0 %v38_v6  ;;  %45 = vadd.xlane.f32.xlu1 %v44_v7 }
   0x8   :  { %v114_v63 = vld [vmem:[#allocation2 + $0x10] sm:$0xff] }
   0x9   :  { %309 = vmatpush3.bf16.msra.mxu0 %v317_v29 }
   0xa   :  { %v113_v7 = vld [vmem:[#allocation2 + $0x8] sm:$0xff] }
   0xb   :  { %v115_v4 = vld [vmem:[#allocation2 + $0x18] sm:$0xff] }
  0x8c   :  { %v37_v8 = vpop.xlane.xlu0 %36  ;;  %v43_v9 = vpop.xlane.xlu1 %42 }
  0x8d   :  { %v48_v10 = vmul.f32 0.03125, %v37_v8  ;;  %v50_v11 = vmul.f32 0.03125, %v43_v9 }
  0x8f   :  { %v52_v12 = vsub.f32 %v30_v0, %v48_v10  ;;  %v54_v13 = vsub.f32 %v32_v1, %v50_v11  ;;  %v112_v1 = vld [vmem:[#allocation2] sm:$0xff] }
  0x90   :  { %v40_v14 = vpop.xlane.xlu0 %39  ;;  %v46_v15 = vpop.xlane.xlu1 %45  ;;  %v289_v11 = vld [vmem:[%s435_s2] ss:$0 sm:$0xff]  ;;  %s343_s2 = smov 96  }
  0x91   :  { %v49_v16 = vmul.f32 0.03125, %v40_v14  ;;  %v51_v17 = vmul.f32 0.03125, %v46_v15  ;;  %v56_v18 = vmul.f32 %v52_v12, %v52_v12  ;;  %v58_v19 = vmul.f32 %v54_v13, %v54_v13 }
  0x93   :  { %v53_v20 = vsub.f32 %v31_v2, %v49_v16  ;;  %v55_v21 = vsub.f32 %v33_v5, %v51_v17  ;;  %v60_v22 = vsel %vm34_vm0, %v56_v18, 0.0  ;;  %v66_v23 = vsel %vm34_vm0, %v58_v19, 0.0 }
  0x94   :  { %61 = vadd.xlane.f32.xlu0 %v60_v22 }
  0x95   :  { %v57_v24 = vmul.f32 %v53_v20, %v53_v20  ;;  %v59_v25 = vmul.f32 %v55_v21, %v55_v21 }
  0x97   :  { %v63_v26 = vsel %vm34_vm0, %v57_v24, 0.0  ;;  %v69_v27 = vsel %vm34_vm0, %v59_v25, 0.0 }
  0x98   :  { %67 = vadd.xlane.f32.xlu0 %v66_v23  ;;  %64 = vadd.xlane.f32.xlu1 %v63_v26 }
  0x9c   :  { %70 = vadd.xlane.f32.xlu1 %v69_v27 }
 0x11d   :  { %v62_v31 = vpop.xlane.xlu0 %61 }
 0x11e   :  { %v72_v32 = vmul.f32 0.03125, %v62_v31 }
 0x120   :  { %v76_v33 = vadd.f32 1e-05, %v72_v32 }
 0x121   :  { %v65_v34 = vpop.xlane.xlu1 %64  ;;  %v68_v35 = vpop.xlane.xlu0 %67 }
 0x122   :  { %318 = vrsqrt.f32 %v76_v33  ;;  %v73_v36 = vmul.f32 0.03125, %v65_v34  ;;  %v74_v37 = vmul.f32 0.03125, %v68_v35 }
 0x124   :  { %v77_v38 = vadd.f32 1e-05, %v73_v36  ;;  %v78_v39 = vadd.f32 1e-05, %v74_v37 }
 0x125   :  { %v71_v40 = vpop.xlane.xlu1 %70 }
 0x126   :  { %320 = vrsqrt.f32 %v77_v38  ;;  %v75_v41 = vmul.f32 0.03125, %v71_v40 }
 0x127   :  { %322 = vrsqrt.f32 %v78_v39 }
 0x128   :  { %v79_v42 = vadd.f32 1e-05, %v75_v41 }
 0x12a   :  { %324 = vrsqrt.f32 %v79_v42 }
 0x12f   :  { %v319_v43 = vpop.eup %318 }
 0x130   :  { %v84_v44 = vmul.f32 %v319_v43, %v52_v12 }
 0x132   :  { %v95_v49 = vmul.f32 %v283_v45, %v84_v44 }
 0x133   :  { %v321_v46 = vpop.eup %320 }
 0x134   :  { %v323_v47 = vpop.eup %322  ;;  %v85_v48 = vmul.f32 %v321_v46, %v53_v20  ;;  %v106_v54 = vadd.f32 %v284_v50, %v95_v49 }
 0x135   :  { %v86_v51 = vmul.f32 %v323_v47, %v54_v13 }
 0x136   :  { %v96_v52 = vmul.f32 %v283_v45, %v85_v48 }
 0x137   :  { %v325_v53 = vpop.eup %324  ;;  %v97_v57 = vmul.f32 %v283_v45, %v86_v51 }
 0x138   :  { %v107_v55 = vadd.f32 %v284_v50, %v96_v52  ;;  %v87_v56 = vmul.f32 %v325_v53, %v55_v21 }
 0x139   :  { %v108_v60 = vadd.f32 %v284_v50, %v97_v57 }
 0x13a   :  { %v110_v58 = vpack.c.bf16 %v107_v55, %v106_v54  ;;  %v98_v59 = vmul.f32 %v283_v45, %v87_v56 }
 0x13c   :  { %310 = vmatprep.mubr.msk.bf16.mxu0 %vm34_vm0, %v110_v58  ;;  %v109_v61 = vadd.f32 %v284_v50, %v98_v59 }
 0x13e   :  { %v111_v62 = vpack.c.bf16 %v109_v61, %v108_v60 }
 0x140   :  { %311 = vmatmul.mubr.msk.bf16.vlgmr.msra.gmra.mxu0 %vm34_vm0, %v111_v62 }
 0x200   :  { %v312_v0 = vpop.f32.mrf.mxu0 }
 0x201   :  { %v189_v2 = vadd.f32 %v312_v0, %v114_v63 }
 0x202   :  { %v172_v3 = vpop.f32.mrf.mxu0 }
 0x203   :  { %194 = vst.msk [vmem:[#allocation2 + $0x10] sm:$0xff] %vm25_vm1, %v189_v2  ;;  %v187_v5 = vadd.f32 %v172_v3, %v112_v1 }
 0x204   :  { %v313_v6 = vpop.f32.mrf.mxu0 }
 0x205   :  { %192 = vst.msk [vmem:[#allocation2] sm:$0xff] %vm25_vm1, %v187_v5  ;;  %v190_v8 = vadd.f32 %v313_v6, %v115_v4 }
 0x206   :  { %v175_v9 = vpop.f32.mrf.mxu0 }
 0x207   :  { %195 = vst.msk [vmem:[#allocation2 + $0x18] sm:$0xff] %vm25_vm1, %v190_v8  ;;  %v188_v10 = vadd.f32 %v175_v9, %v113_v7 }
 0x209   :  { %193 = vst.msk [vmem:[#allocation2 + $0x8] sm:$0xff] %vm25_vm1, %v188_v10 }
 0x20a   :  { %v201_v12 = vld [vmem:[#allocation2 + $0x10] sm:$0xff] }
 0x20b   :  { %v212_v13 = vadd.f32 %v289_v11, %v201_v12 }
 0x20c   :  { %v199_v14 = vld [vmem:[#allocation2] sm:$0xff] }
 0x20d   :  { %v292_v15 = vmul.f32 -1.442695, %v212_v13  ;;  %v210_v16 = vadd.f32 %v289_v11, %v199_v14 }
 0x20e   :  { %v202_v17 = vld [vmem:[#allocation2 + $0x18] sm:$0xff] }
 0x20f   :  { %326 = vpow2.f32 %v292_v15  ;;  %v290_v18 = vmul.f32 -1.442695, %v210_v16  ;;  %v213_v19 = vadd.f32 %v289_v11, %v202_v17 }
 0x210   :  { %v200_v20 = vld [vmem:[#allocation2 + $0x8] sm:$0xff] }
 0x211   :  { %328 = vpow2.f32 %v290_v18  ;;  %v211_v21 = vadd.f32 %v289_v11, %v200_v20  ;;  %v293_v22 = vmul.f32 -1.442695, %v213_v19 }
 0x213   :  { %v291_v23 = vmul.f32 -1.442695, %v211_v21  ;;  %330 = vpow2.f32 %v293_v22 }
 0x215   :  { %332 = vpow2.f32 %v291_v23 }
 0x21c   :  { %v327_v24 = vpop.eup %326 }
 0x21d   :  { %v228_v25 = vadd.f32 1.0, %v327_v24 }
 0x21e   :  { %v329_v26 = vpop.eup %328 }
 0x21f   :  { %334 = vrcp.f32 %v228_v25  ;;  %v226_v27 = vadd.f32 1.0, %v329_v26 }
 0x220   :  { %v331_v28 = vpop.eup %330 }
 0x221   :  { %336 = vrcp.f32 %v226_v27  ;;  %v229_v31 = vadd.f32 1.0, %v331_v28 }
 0x222   :  { %v333_v29 = vpop.eup %332 }
 0x223   :  { %v227_v30 = vadd.f32 1.0, %v333_v29 }
 0x225   :  { %338 = vrcp.f32 %v227_v30 }
 0x226   :  { %340 = vrcp.f32 %v229_v31 }
 0x22c   :  { %v335_v32 = vpop.eup %334 }
 0x22d   :  { %246 = vrot.lane.b32.xlu1 %v335_v32, %s343_s2 }
 0x22e   :  { %v337_v33 = vpop.eup %336 }
 0x22f   :  { %242 = vrot.lane.b32.xlu0 %v337_v33, %s343_s2 }
 0x232   :  { %v339_v34 = vpop.eup %338 }
 0x233   :  { %244 = vrot.lane.b32.xlu1 %v339_v34, %s343_s2  ;;  %v341_v35 = vpop.eup %340 }
 0x237   :  { %248 = vrot.lane.b32.xlu1 %v341_v35, %s343_s2 }
 0x29f   :  { %v247_v36 = vpop.permute.xlu1 %246 }
 0x2a0   :  { %v256_v37 = vmul.f32 %v247_v36, %v212_v13 }
 0x2a1   :  { %v243_v38 = vpop.permute.xlu0 %242 }
 0x2a2   :  { %v300_v39 = vpack.c.bf16 %v256_v37, %v256_v37  ;;  %v254_v40 = vmul.f32 %v243_v38, %v210_v16 }
 0x2a4   :  { %277 = vst.msk [vmem:[%s436_s5 + $0x8] sm:$0xf] %vm274_vm2, %v300_v39  ;;  %v298_v41 = vpack.c.bf16 %v254_v40, %v254_v40 }
 0x2a5   :  { %v245_v42 = vpop.permute.xlu1 %244 }
 0x2a6   :  { %275 = vst.msk [vmem:[%s436_s5] sm:$0xf] %vm274_vm2, %v298_v41  ;;  %v255_v43 = vmul.f32 %v245_v42, %v211_v21 }
 0x2a8   :  { %v299_v44 = vpack.c.bf16 %v255_v43, %v255_v43 }
 0x2a9   :  { %v249_v45 = vpop.permute.xlu1 %248 }
 0x2aa   :  { %276 = vst.msk [vmem:[%s436_s5 + $0x4] sm:$0xf] %vm274_vm2, %v299_v44  ;;  %v257_v46 = vmul.f32 %v249_v45, %v213_v19 }
 0x2ac   :  { %v301_v47 = vpack.c.bf16 %v257_v46, %v257_v46 }
 0x2ae   :  { %278 = vst.msk [vmem:[%s436_s5 + $0xc] sm:$0xf] %vm274_vm2, %v301_v47 }

// kernel: conformer_encoder.27
= control target key start
LH: loop header
LB: loop body
LE: loop exit
PB: predicated region body
PF: predicated region fallthrough
CT: control target
= control target key end

     0   :  { %s1426_s0 = inlined_call_operand.vmem [shape: bf16[4,2,16,24], index: 0, kind: input, shape index: {}]   ;;  %s1427_s1 = inlined_call_operand.vmem [shape: bf16[4,128,8], index: 1, kind: input, shape index: {}]   ;;  %s1428_s2 = inlined_call_operand.vmem [shape: f32[4,1,8], index: 2, kind: input, shape index: {}]   ;;  %s1429_s3 = inlined_call_operand.vmem [shape: f32[4,1,8], index: 3, kind: input, shape index: {}]   ;;  %s1430_s4 = inlined_call_operand.vmem [shape: bf16[4,2,16,8], index: 4, kind: output, shape index: {0}]   ;;  %s1431_s5 = inlined_call_operand.hbm [shape: bf16[2,4,16,16], index: 5, kind: output, shape index: {1}]  }
   0x1   :  { %1434 = sst [smem:[#allocation5_spill]] %s1426_s0 }
   0x2   :  { %11 = vsyncpa [#allocation3], 0 }
   0x3   :  { %13 = vsyncpa [#allocation3 + $0x1], 0  ;;  %s1211_s18 = smov 0   ;;  %s1213_s19 = smov 0  }
   0x4   :  { %s1215_s20 = smov 0   ;;  %s1217_s21 = smov 0  }
   0x5   :  { %s1219_s22 = smov 0   ;;  %s1221_s23 = smov 0  }
   0x6   :  { %s1223_s24 = smov 0   ;;  %s1225_s25 = smov 0  }
   0x7 LB: > { %s889_s26 = sadd.s32 4294967295, %s1168_s25   ;;  %s890_s27 = sadd.s32 4294967294, %s1168_s25   ;;  %s1168_s25 = sphi %s1225_s25, %s19_s25   ;;  %s1164_s24 = sphi %s1223_s24, %s1446_s24   ;;  %s1160_s23 = sphi %s1221_s23, %s1445_s23   ;;  %s1156_s22 = sphi %s1219_s22, %s1444_s22   ;;  %s1152_s21 = sphi %s1217_s21, %s1443_s21   ;;  %s1148_s20 = sphi %s1215_s20, %s1442_s20   ;;  %s1144_s19 = sphi %s1213_s19, %s1441_s19   ;;  %s1140_s18 = sphi %s1211_s18, %s1440_s18  }
   0x8   : > { %s28_s28 = sadd.s32 1, %s1160_s23  ;;  %s31_s29 = sadd.s32 1, %s1164_s24 }
   0x9   : > { %p29_p0 = scmp.ge.s32.totalorder %s28_s28, 4  ;;  %p184_p1 = scmp.ne.s32.totalorder %s1148_s20, %s1144_s19 }
   0xa   : > { %p185_p2 = scmp.eq.s32.totalorder %s889_s26, 7  ;;  %p190_p5 = scmp.ne.s32.totalorder %s1144_s19, %s1140_s18 }
   0xb   : > { %s1448_s28 = smov (%p29_p0, %s28_s28), 0  ;;  %s1450_s29 = smov (!%p29_p0, %s31_s29), %s1164_s24 }
   0xc   : > { %s170_s30 = ssub.s32 %s1160_s23, %s1448_s28  ;;  %p1262_p3 = por %p185_p2, %p184_p1 }
   0xd   : > { %p33_p4 = scmp.ge.s32.totalorder %s1450_s29, 2  ;;  %p191_p6 = scmp.eq.s32.totalorder %s890_s27, 7 }
   0xe   : > { %p893_p7 = scmp.ge.s32.totalorder %s1168_s25, 1  ;;  %p241_p9 = scmp.lt.s32.totalorder %s1168_s25, 9 }
   0xf   : > { %s1452_s29 = smov (%p33_p4, %s1450_s29), 0  ;;  %p1271_p8 = por %p191_p6, %p190_p5 }
  0x10   : > { %s169_s8 = ssub.s32 %s1164_s24, %s1452_s29  ;;  %s174_s9 = sadd.s32 1, %s1148_s20 }
  0x11   : > { %s171_s10 = sor.u32 %s170_s30, %s169_s8  ;;  %p242_p10 = pnand %p893_p7, %p241_p9 }
  0x12   : > { %p172_p11 = scmp.eq.s32.totalorder %s171_s10, 0  ;;  %p293_p12 = scmp.lt.s32.totalorder (!%p242_p10), %s1152_s21, 3 }
  0x13   : > { %245 = sbr.rel (%p242_p10) target bundleno = 1386 (0x56a), region = 36  ;;  %p295_p13 = scmp.lt.s32.totalorder (!%p242_p10), %s1156_s22, 1 }
  0x14   : > { %s1280_s11 = scalar_select %p172_p11, %s1148_s20, %s174_s9  }
  0x15   : > { %s1437_s0 = sld [smem:[#allocation5_spill]] (!%p242_p10)  ;;  %s1175_s9 = smov (!%p242_p10), 2  }
  0x16   : > { %s1177_s15 = smov (!%p242_p10), 113   ;;  %s922_s10 = sshll.u32 (!%p242_p10), %s1152_s21, 1 }
  0x18   : > { %v1170_v0 = vmov 0.0   ;;  %vm1171_vm0 = vmmov 0   ;;  %s1287_s12 = scalar_select %p293_p12, %s1152_s21, 3  ;;  %vm403_vm1 = vcmask 64512   ;;  %v472_v28 = vlaneseq }
  0x19   : > { %945 = vmatprep.subr.bf16.mxu0 %v1170_v0  ;;  %961 = vmatprep.mubr.msk.bf16.mxu0 %vm1171_vm0, %v1170_v0  ;;  %s296_s17 = scalar_select %p295_p13, %s1156_s22, 1  ;;  %vm613_vm8 = vcmask 130048   ;;  %vm644_vm9 = vcmask 125952  }
  0x1a   : > { %965 = vmatprep.subr.bf16.mxu1 %v1170_v0  ;;  %967 = vmatprep.mubr.msk.bf16.mxu1 %vm1171_vm0, %v1170_v0  ;;  %s927_s13 = sshll.u32 %s1287_s12, 6  ;;  %s896_s27 = sshll.u32 %s1287_s12, 2  ;;  %v473_v29 = vshrl.u32 %v472_v28, 7 }
  0x1b   : > { %s1296_s16 = scalar_lea.vmem %s1427_s1, %s927_s13  ;;  %s895_s26 = sshll.u32 %s296_s17, 1 }
  0x1c   : > { %v1058_v1 = vld [vmem:[%s1296_s16 + $0x38] sm:$0xff]   ;;  %v1059_v3 = vld [vmem:[%s1296_s16 + $0x30] sm:$0xff]   ;;  %v1060_v5 = vld [vmem:[%s1296_s16 + $0x28] sm:$0xff]   ;;  %s1318_s30 = sadd.s32 %s896_s27, %s895_s26  ;;  %s312_s17 = scalar_lea.vmem %s1429_s3, %s1287_s12  ;;  %v475_v30 = vsub.s32 15, %v473_v29  ;;  %v474_v41 = vadd.s32 8, %v473_v29 }
  0x1d   : > { %v429_v2 = vsel %vm403_vm1, %v1058_v1, 0  ;;  %v426_v4 = vsel %vm403_vm1, %v1059_v3, 0  ;;  %v423_v6 = vsel %vm403_vm1, %v1060_v5, 0  ;;  %v1061_v7 = vld [vmem:[%s1296_s16 + $0x20] sm:$0xff]   ;;  %v1062_v9 = vld [vmem:[%s1296_s16 + $0x18] sm:$0xff]   ;;  %v1063_v11 = vld [vmem:[%s1296_s16 + $0x10] sm:$0xff]   ;;  %s309_s14 = scalar_lea.vmem %s1428_s2, %s1287_s12 }
  0x1e   : > { %946 = vmatpush3.bf16.xpose.msra.mxu0 %v429_v2  ;;  %v420_v8 = vsel %vm403_vm1, %v1061_v7, 0  ;;  %v417_v10 = vsel %vm403_vm1, %v1062_v9, 0  ;;  %v414_v12 = vsel %vm403_vm1, %v1063_v11, 0  ;;  %v1064_v13 = vld [vmem:[%s1296_s16 + $0x8] sm:$0xff]   ;;  %s1432_s8 = sshll.u32 %s1318_s30, 2  ;;  %v1065_v16 = vld [vmem:[%s1296_s16] sm:$0xff]  }
  0x1f   : > { %947 = vmatprep.subr.bf16.mxu0 %v1170_v0  ;;  %v411_v14 = vsel %vm403_vm1, %v1064_v13, 0  ;;  %s301_s13 = scalar_lea.vmem %s1437_s0, %s1432_s8  ;;  %v904_v19 = vld [vmem:[%s312_s17] ss:$0 sm:$0xff]  ;;  %v408_v20 = vsel %vm403_vm1, %v1065_v16, 0  ;;  %s1433_s26 = smov 4   ;;  %v495_v31 = vand.u32 4, %v475_v30 }
  0x20   : > { %v1329_v15 = vld [vmem:[%s301_s13] sm:$0xff]   ;;  %s1173_s16 = smov 8   ;;  %s1174_s27 = smov 120   ;;  %v476_v42 = vsub.s32 15, %v474_v41  ;;  %v513_v43 = vand.u32 2, %v475_v30  ;;  %v531_v51 = vand.u32 1, %v475_v30 }
  0x21   : > { %v325_v17 = vunpack.c.l.bf16 %v1329_v15  ;;  %v326_v18 = vunpack.c.h.bf16 %v1329_v15  ;;  %vm497_vm2 = vcmp.ne.s32.totalorder %v495_v31, 0  ;;  %v903_v35 = vld [vmem:[%s309_s14] ss:$0 sm:$0xff]  ;;  %s1176_s12 = smov 1   ;;  %s1178_s17 = smov 112  }
  0x22   : > { %v496_v44 = vand.u32 4, %v476_v42  ;;  %vm515_vm3 = vcmp.ne.s32.totalorder %v513_v43, 0  ;;  %v514_v54 = vand.u32 2, %v476_v42  ;;  %vm533_vm5 = vcmp.ne.s32.totalorder %v531_v51, 0  ;;  %s923_s13 = sshll.u32 %s1156_s22, 3  ;;  %s1179_s21 = smov [#allocation2]  }
  0x23   : > { %v360_v21 = vadd.f32 %v904_v19, %v325_v17  ;;  %v361_v22 = vadd.f32 %v904_v19, %v326_v18  ;;  %v351_v38 = vadd.f32 %v903_v35, %v325_v17  ;;  %v352_v39 = vadd.f32 %v903_v35, %v326_v18  ;;  %s730_s14 = sadd.s32 %s923_s13, %s922_s10  ;;  %s1080_s22 = sshll.u32 %s1179_s21, 4  ;;  %s1081_s22 = int_to_ptr.vmem [resolvable:$false] %s1080_s22 }
  0x24   : > { %vm498_vm4 = vcmp.ne.s32.totalorder %v496_v44, 0  ;;  %vm516_vm6 = vcmp.ne.s32.totalorder %v514_v54, 0  ;;  %v532_v59 = vand.u32 1, %v476_v42 }
  0x25   : > { %v362_v23 = vpack.c.bf16 %v361_v22, %v360_v21  ;;  %v353_v40 = vpack.c.bf16 %v352_v39, %v351_v38 }
  0x26   : > { %948 = vmatpush3.bf16.xpose.msra.mxu0 %v426_v4  ;;  %vm534_vm7 = vcmp.ne.s32.totalorder %v532_v59, 0 }
  0x27   : > { %949 = vmatprep.subr.bf16.mxu0 %v1170_v0 }
  0x2e   : > { %950 = vmatpush3.bf16.xpose.msra.mxu0 %v423_v6 }
  0x2f   : > { %951 = vmatprep.subr.bf16.mxu0 %v1170_v0 }
  0x36   : > { %952 = vmatpush3.bf16.xpose.msra.mxu0 %v420_v8 }
  0x37   : > { %953 = vmatprep.subr.bf16.mxu0 %v1170_v0 }
  0x3e   : > { %954 = vmatpush3.bf16.xpose.msra.mxu0 %v417_v10 }
  0x3f   : > { %955 = vmatprep.subr.bf16.mxu0 %v1170_v0 }
  0x46   : > { %956 = vmatpush3.bf16.xpose.msra.mxu0 %v414_v12 }
  0x47   : > { %957 = vmatprep.subr.bf16.mxu0 %v1170_v0 }
  0x4e   : > { %958 = vmatpush3.bf16.xpose.msra.mxu0 %v411_v14 }
  0x4f   : > { %959 = vmatprep.subr.bf16.mxu0 %v1170_v0 }
  0x56   : > { %960 = vmatpush3.bf16.xpose.msra.mxu0 %v408_v20 }
  0x5d   : > { %962 = vmatmul.mubr.msk.bf16.vlgmr.msra.gmra.mxu0 %vm403_vm1, %v362_v23 }
 0x11d   : > { %v465_v24 = vpop.f32.mrf.mxu0 }
 0x11e   : > { %505 = vrot.lane.b32.xlu1 %v465_v24, %s1433_s26 }
 0x11f   : > { %v963_v25 = vpop.f32.mrf.mxu0 }
 0x121   : > { %v468_v26 = vpop.f32.mrf.mxu0 }
 0x122   : > { %489 = vrot.lane.b32.xlu0 %v468_v26, %s1173_s16  ;;  %s290_s16 = sand.u32 1, %s1144_s19  }
 0x123   : > { %v964_v27 = vpop.f32.mrf.mxu0 }
 0x126   : > { %554 = vrot.lane.b32.xlu0 %v1329_v15, %s1174_s27  ;;  %s894_s27 = sshll.u32 %s290_s16, 3 }
 0x190   : > { %v506_v32 = vpop.permute.xlu1 %505 }
 0x191   : > { %v511_v33 = vsel %vm497_vm2, %v465_v24, %v506_v32 }
 0x192   : > { %523 = vrot.lane.b32.xlu0 %v511_v33, %s1175_s9 }
 0x194   : > { %v490_v34 = vpop.permute.xlu0 %489 }
 0x195   : > { %507 = vrot.lane.b32.xlu1 %v490_v34, %s1433_s26  ;;  %s1369_s26 = scalar_lea.sflag [#allocation3], %s290_s16 }
 0x198   : > { %v555_v36 = vpop.permute.xlu0 %554 }
 0x199   : > { %v568_v37 = vsel %vm403_vm1, %v555_v36, 0 }
 0x19a   : > { %966 = vmatpush3.bf16.xpose.msra.mxu1 %v568_v37 }
 0x19b   : > { %971 = vmatprep.subr.bf16.mxu1 %v1170_v0 }
 0x1a1   : > { %968 = vmatmul.mubr.msk.bf16.vlgmr.msra.gmra.mxu1 %vm403_vm1, %v353_v40 }
 0x1a2   : > { %973 = vmatprep.mubr.msk.bf16.mxu1 %vm1171_vm0, %v1170_v0 }
 0x204   : > { %v524_v45 = vpop.permute.xlu0 %523 }
 0x205   : > { %v529_v46 = vsel %vm515_vm3, %v511_v33, %v524_v45 }
 0x206   : > { %541 = vrot.lane.b32.xlu0 %v529_v46, %s1176_s12 }
 0x207   : > { %v508_v47 = vpop.permute.xlu1 %507 }
 0x208   : > { %v512_v48 = vsel %vm498_vm4, %v490_v34, %v508_v47 }
 0x209   : > { %525 = vrot.lane.b32.xlu1 %v512_v48, %s1175_s9  ;;  %s292_s9 = scalar_lea.vmem [#allocation2], %s894_s27 }
 0x261   : > { %v604_v49 = vpop.f32.mrf.mxu1 }
 0x263   : > { %v969_v50 = vpop.f32.mrf.mxu1 }
 0x265   : > { %v607_v52 = vpop.f32.mrf.mxu1 }
 0x267   : > { %v970_v53 = vpop.f32.mrf.mxu1 }
 0x278   : > { %v542_v55 = vpop.permute.xlu0 %541 }
 0x279   : > { %v547_v56 = vsel %vm533_vm5, %v529_v46, %v542_v55 }
 0x27a   : > { %558 = vrot.lane.b32.xlu0 %v547_v56, %s1177_s15 }
 0x27b   : > { %v526_v57 = vpop.permute.xlu1 %525 }
 0x27c   : > { %v530_v58 = vsel %vm516_vm6, %v512_v48, %v526_v57 }
 0x27d   : > { %543 = vrot.lane.b32.xlu1 %v530_v58, %s1176_s12  ;;  %s924_s12 = sshll.u32 %s730_s14, 6 }
 0x27e   : > { %s1365_s27 = scalar_lea.hbm %s1431_s5, %s924_s12 }
 0x2ec   : > { %v559_v60 = vpop.permute.xlu0 %558 }
 0x2ed   : > { %v605_v61 = vadd.f32 %v604_v49, %v559_v60 }
 0x2ef   : > { %v611_v62 = vmul.f32 0.17677669, %v605_v61  ;;  %v544_v63 = vpop.permute.xlu1 %543 }
 0x2f0   : > { %v548_v0 = vsel %vm534_vm7, %v530_v58, %v544_v63 }
 0x2f1   : > { %560 = vrot.lane.b32.xlu1 %v548_v0, %s1177_s15  ;;  %v614_v1 = vsel %vm613_vm8, %v611_v62, -inf  ;;  %s733_s15 = sshll.u32 %s292_s9, 4  ;;  %s1367_s15 = int_to_ptr.vmem [resolvable:$true] %s733_s15 }
 0x2f2   : > { %615 = vmax.xlane.f32.xlu0 %v614_v1  ;;  %s1076_s0 = scalar_lea.vmem %s1367_s15, 128  ;;  %p1083_p4 = scmp.lt.s32.totalorder %s1367_s15, %s1081_s22 }
 0x2f3   : > { %p1077_p0 = scmp.ne.s32.totalorder %s1367_s15, %s1076_s0 }
 0x2f5   : > { %p1078_p1 = pnand %p1077_p0, %p1262_p3 }
 0x2f7   : > { %p1079_p2 = pneg %p1078_p1 }
 0x363   : > { %v561_v2 = vpop.permute.xlu1 %560 }
 0x364   : > { %v608_v3 = vadd.f32 %v607_v52, %v561_v2 }
 0x366   : > { %v612_v4 = vmul.f32 0.17677669, %v608_v3 }
 0x368   : > { %v617_v5 = vsel %vm613_vm8, %v612_v4, -inf }
 0x369   : > { %618 = vmax.xlane.f32.xlu1 %v617_v5 }
 0x37a   : > { %647 = vrot.lane.b32.xlu1 %v1329_v15, %s1178_s17 }
 0x37b   : > { %v616_v6 = vpop.xlane.xlu0 %615 }
 0x37c   : > { %v620_v7 = vsub.f32 %v611_v62, %v616_v6 }
 0x37e   : > { %v622_v8 = vmul.f32 1.442695, %v620_v7 }
 0x380   : > { %1068 = vpow2.f32 %v622_v8 }
 0x38d   : > { %v1069_v9 = vpop.eup %1068 }
 0x38e   : > { %v626_v10 = vsel %vm613_vm8, %v1069_v9, 0.0 }
 0x38f   : > { %627 = vadd.xlane.f32.xlu0 %v626_v10 }
 0x3f2   : > { %v619_v11 = vpop.xlane.xlu1 %618 }
 0x3f3   : > { %v621_v12 = vsub.f32 %v612_v4, %v619_v11 }
 0x3f5   : > { %v624_v13 = vmul.f32 1.442695, %v621_v12 }
 0x3f6   : > { %v648_v18 = vpop.permute.xlu1 %647 }
 0x3f7   : > { %1070 = vpow2.f32 %v624_v13  ;;  %972 = vmatpush3.bf16.msra.mxu1 %v648_v18 }
 0x404   : > { %v1071_v14 = vpop.eup %1070 }
 0x405   : > { %v629_v16 = vsel %vm613_vm8, %v1071_v14, 0.0 }
 0x406   : > { %630 = vadd.xlane.f32.xlu0 %v629_v16 }
 0x418   : > { %v628_v17 = vpop.xlane.xlu0 %627 }
 0x419   : > { %1072 = vrcp.f32 %v628_v17 }
 0x426   : > { %v1073_v19 = vpop.eup %1072 }
 0x427   : > { %v634_v20 = vmul.f32 %v1073_v19, %v1069_v9 }
 0x429   : > { %v928_v15 = vpack.c.bf16 %v634_v20, %v634_v20 }
 0x42b   : > { %645 = vst.msk [vmem:[%s292_s9] sm:$0xf] %vm644_vm9, %v928_v15 }
 0x48f   : > { %v631_v21 = vpop.xlane.xlu0 %630 }
 0x490   : > { %1074 = vrcp.f32 %v631_v21 }
 0x49d   : > { %v1075_v22 = vpop.eup %1074 }
 0x49e   : > { %v635_v23 = vmul.f32 %v1075_v22, %v1071_v14 }
 0x4a0   : > { %v929_v24 = vpack.c.bf16 %v635_v23, %v635_v23  ;;  %v636_v25 = vpack.c.bf16 %v635_v23, %v634_v20 }
 0x4a2   : > { %974 = vmatmul.mubr.msk.bf16.vlgmr.msra.gmra.mxu1 %vm613_vm8, %v636_v25  ;;  %646 = vst.msk [vmem:[%s292_s9 + $0x4] sm:$0xf] %vm644_vm9, %v929_v24  ;;  %s1082_s9 = scalar_lea.vmem %s1081_s22, 256 }
 0x4a3   : > { %p1084_p5 = scmp.lt.s32.totalorder %s1082_s9, %s1076_s0 }
 0x4a5   : > { %p1085_p6 = por %p1084_p5, %p1083_p4 }
 0x4a7   : > { %p1086_p7 = pnand %p1085_p6, %p1079_p2 }
 0x4a9   : > { %1089 = shalt.err (!%p1086_p7)
}
 0x4aa   : > { %s1090_s8 = scalar_lea.hbm %s1365_s27, 128  ;;  %s1094_s13 = scalar_lea.hbm %s1431_s5, 1024 }
 0x4ab   : > { %p1091_p9 = scmp.ne.s32.totalorder %s1365_s27, %s1090_s8  ;;  %p1095_p12 = scmp.lt.s32.totalorder %s1365_s27, %s1431_s5 }
 0x4ac   : > { %p1096_p13 = scmp.lt.s32.totalorder %s1094_s13, %s1090_s8 }
 0x4ad   : > { %p1092_p10 = pnand %p1091_p9, %p1262_p3 }
 0x4ae   : > { %p1097_p0 = por %p1096_p13, %p1095_p12 }
 0x4af   : > { %p1093_p11 = pneg %p1092_p10 }
 0x4b1   : > { %p1098_p1 = pnand %p1097_p0, %p1093_p11 }
 0x4b3   : > { %1101 = shalt.err (!%p1098_p1)
}
 0x4b4   : > { %s1180_s0 = smov 64   ;;  %s1438_s17 = smov 4   ;;  %vm702_vm10 = vcmask 60416  }
 0x4b5   : > { %977 = dma.vmem_to_hbm [thread:$0]  (%p1262_p3), %s1367_s15, 128, %s1365_s27, %s1369_s26, %s1180_s0, %s1180_s0, %s1438_s17  }
 0x4b6   : > { %s1439_s21 = sshll.u32 %s1318_s30, 2 }
 0x4b7   : > { %s321_s16 = scalar_lea.vmem %s1430_s4, %s1439_s21 }
 0x562   : > { %v687_v26 = vpop.f32.mrf.mxu1 }
 0x563   : > { %v930_v27 = vpack.c.bf16 %v687_v26, %v687_v26 }
 0x564   : > { %v975_v28 = vpop.f32.mrf.mxu1 }
 0x565   : > { %703 = vst.msk [vmem:[%s321_s16] sm:$0xf] %vm702_vm10, %v930_v27 }
 0x566   : > { %v690_v29 = vpop.f32.mrf.mxu1 }
 0x567   : > { %v931_v30 = vpack.c.bf16 %v690_v29, %v690_v29 }
 0x568   : > { %v976_v31 = vpop.f32.mrf.mxu1 }
 0x569   : > { %704 = vst.msk [vmem:[%s321_s16 + $0x4] sm:$0xf] %vm702_vm10, %v931_v30 }
 0x56a PF: > { %p983_p2 = scmp.ge.s32.totalorder %s1168_s25, 2  ;;  %s760_s6 = sand.u32 1, %s1140_s18  }
 0x56b   : > { %s761_s30 = scalar_lea.sflag [#allocation3], %s760_s6 }
 0x56c   : > { %p980_p3 = pnand %p983_p2, %p1271_p8 }
 0x56e   : > { %p981_p4 = pneg %p980_p3 }
 0x570   : > { %1135 = dma.done.wait (%p981_p4), %s761_s30, 128  }
 0x571   : > { %1137 = vsyncadd (%p981_p4), %s761_s30, 4294967168  ;;  %s19_s25 = sadd.s32 1, %s1168_s25   ;;  %s1440_s18 = smov %s1144_s19 }
 0x572   : > { %p16_p5 = scmp.ge.s32.totalorder %s19_s25, 10   ;;  %s1441_s19 = smov %s1148_s20 }
 0x573   : > { %s1442_s20 = smov %s1280_s11  ;;  %s1443_s21 = smov %s1160_s23 }
 0x574   : > { %s1444_s22 = smov %s1164_s24  ;;  %s1445_s23 = smov %s1448_s28 }
 0x575   : > { %s1446_s24 = smov %s1452_s29  ;;  %18 = sbr.rel (!%p16_p5) target bundleno = 7 (0x7), region = 92 }
 0x57a   :  { %766 = vsyncpa [#allocation3], 1 }
 0x57b   :  { %768 = vsyncpa [#allocation3 + $0x1], 1 }

// kernel: conformer_encoder.30
= control target key start
LH: loop header
LB: loop body
LE: loop exit
PB: predicated region body
PF: predicated region fallthrough
CT: control target
= control target key end

     0   :  { %s603_s18 = smov 0   ;;  %s661_s0 = inlined_call_operand.vmem [shape: bf16[2,22,32], index: 0, kind: input, shape index: {}]   ;;  %s662_s1 = inlined_call_operand.vmem [shape: f32[7,32], index: 1, kind: input, shape index: {}]   ;;  %s663_s2 = inlined_call_operand.vmem [shape: f32[1,32], index: 2, kind: input, shape index: {}]   ;;  %s664_s3 = inlined_call_operand.vmem [shape: bf16[2,16,32], index: 3, kind: output, shape index: {0}]   ;;  %s665_s4 = inlined_call_operand.vmem [shape: f32[2,1,32], index: 4, kind: output, shape index: {1}]   ;;  %s666_s5 = inlined_call_operand.vmem [shape: f32[2,1,32], index: 5, kind: output, shape index: {2}]  }
   0x1 LB: > { %s536_s19 = sadd.s32 4294967295, %s571_s18   ;;  %p540_p0 = scmp.ge.s32.totalorder %s571_s18, 1  ;;  %s571_s18 = sphi %s603_s18, %s16_s18  }
   0x2   : > { %p192_p1 = scmp.lt.s32.totalorder %s571_s18, 3 }
   0x4   : > { %p193_p2 = pnand %p540_p0, %p192_p1 }
   0x5   : > { %p226_p3 = scmp.lt.s32.totalorder (!%p193_p2), %s536_s19, 1 }
   0x6   : > { %196 = sbr.rel (%p193_p2) target bundleno = 64 (0x40), region = 32 }
   0xb   : > { %v247_v0 = vlaneseq  ;;  %s668_s19 = smov (!%p226_p3, %s536_s19), 1  ;;  %v242_v2 = vld [vmem:[%s662_s1] sm:$0x7f]  ;;  %vm267_vm0 = vcmask 1046528   ;;  %vm289_vm1 = vcmask 1045504   ;;  %vm311_vm2 = vcmask 1044480  }
   0xc   : > { %s556_s22 = smul.u32 12, %s668_s19  ;;  %vm333_vm3 = vcmask 1043456   ;;  %vm355_vm4 = vcmask 1042432   ;;  %vm377_vm5 = vcmask 1041408   ;;  %s549_s28 = sshll.u32 %s668_s19, 3  ;;  %vm404_vm6 = vcmask 257024  }
   0xd   : > { %v248_v1 = vshrl.u32 %v247_v0, 7  ;;  %s235_s6 = scalar_lea.vmem %s664_s3, %s549_s28  ;;  %vm407_vm7 = vcmask 261120   ;;  %s238_s9 = scalar_lea.vmem %s665_s4, %s668_s19  ;;  %vm417_vm8 = vcmask 253952  }
   0xe   : > { %s620_s25 = scalar_lea.vmem %s661_s0, %s556_s22  ;;  %s241_s12 = scalar_lea.vmem %s666_s5, %s668_s19 }
   0xf   : > { %v249_v3 = vsub.s32 0, %v248_v1  ;;  %v259_v4 = vsub.s32 1, %v248_v1  ;;  %v281_v5 = vsub.s32 2, %v248_v1  ;;  %v303_v6 = vsub.s32 3, %v248_v1  ;;  %v553_v13 = vld [vmem:[%s620_s25] sm:$0xff]  }
  0x10   : > { %v325_v7 = vsub.s32 4, %v248_v1  ;;  %v347_v8 = vsub.s32 5, %v248_v1  ;;  %v369_v9 = vsub.s32 6, %v248_v1  ;;  %v277_v14 = vld [vmem:[%s620_s25] sm:$0xe]  ;;  %v554_v19 = vunpack.c.l.bf16 %v553_v13 }
  0x11   : > { %v250_v10 = vrot.slane %v242_v2, %v249_v3  ;;  %v260_v11 = vrot.slane %v242_v2, %v259_v4  ;;  %v282_v12 = vrot.slane %v242_v2, %v281_v5  ;;  %v304_v15 = vrot.slane %v242_v2, %v303_v6  ;;  %v321_v16 = vld [vmem:[%s620_s25] sm:$0xc]  ;;  %v255_v24 = vld [vmem:[%s620_s25 + $0x8] sm:$0x1] }
  0x12   : > { %v326_v17 = vrot.slane %v242_v2, %v325_v7  ;;  %v348_v18 = vrot.slane %v242_v2, %v347_v8  ;;  %v555_v20 = vunpack.c.h.bf16 %v553_v13  ;;  %v278_v21 = vunpack.c.l.bf16 %v277_v14  ;;  %v365_v23 = vld [vmem:[%s620_s25] sm:$0x8]  ;;  %v299_v25 = vld [vmem:[%s620_s25 + $0x8] sm:$0x3] }
  0x13   : > { %v322_v22 = vunpack.c.l.bf16 %v321_v16  ;;  %v366_v26 = vunpack.c.l.bf16 %v365_v23  ;;  %v370_v27 = vrot.slane %v242_v2, %v369_v9  ;;  %v256_v28 = vunpack.c.l.bf16 %v255_v24  ;;  %v343_v57 = vld [vmem:[%s620_s25 + $0x8] sm:$0x7] }
  0x14   : > { %v300_v29 = vunpack.c.l.bf16 %v299_v25  ;;  %v251_v30 = vmul.f32 %v554_v19, %v250_v10  ;;  %v261_v31 = vmul.f32 %v554_v19, %v260_v11  ;;  %v262_v32 = vmul.f32 %v555_v20, %v260_v11 }
  0x15   : > { %v283_v33 = vmul.f32 %v282_v12, %v278_v21  ;;  %v284_v34 = vmul.f32 %v555_v20, %v282_v12  ;;  %v305_v35 = vmul.f32 %v304_v15, %v278_v21  ;;  %v306_v36 = vmul.f32 %v555_v20, %v304_v15  ;;  %v544_v21 = vld [vmem:[%s663_s2] ss:$0 sm:$0xff] }
  0x16   : > { %v327_v37 = vmul.f32 %v326_v17, %v322_v22  ;;  %v268_v38 = vrot.slane %v261_v31, 1  ;;  %v269_v39 = vrot.slane %v262_v32, 1  ;;  %v328_v41 = vmul.f32 %v555_v20, %v326_v17 }
  0x17   : > { %v290_v40 = vrot.slane %v283_v33, 2  ;;  %v291_v42 = vrot.slane %v284_v34, 2  ;;  %v312_v43 = vrot.slane %v305_v35, 3  ;;  %v313_v44 = vrot.slane %v306_v36, 3 }
  0x18   : > { %v334_v45 = vrot.slane %v327_v37, 4  ;;  %v270_v46 = vsel %vm267_vm0, %v268_v38, %v269_v39  ;;  %v335_v47 = vrot.slane %v328_v41, 4  ;;  %v349_v48 = vmul.f32 %v348_v18, %v322_v22 }
  0x19   : > { %v350_v49 = vmul.f32 %v555_v20, %v348_v18  ;;  %v275_v50 = vadd.f32 %v270_v46, %v251_v30  ;;  %v292_v51 = vsel %vm289_vm1, %v290_v40, %v291_v42  ;;  %v371_v52 = vmul.f32 %v370_v27, %v366_v26 }
  0x1a   : > { %v314_v53 = vsel %vm311_vm2, %v312_v43, %v313_v44  ;;  %v356_v54 = vrot.slane %v349_v48, 5  ;;  %v372_v56 = vmul.f32 %v555_v20, %v370_v27  ;;  %v336_v59 = vsel %vm333_vm3, %v334_v45, %v335_v47 }
  0x1b   : > { %v357_v55 = vrot.slane %v350_v49, 5  ;;  %v297_v58 = vadd.f32 %v292_v51, %v275_v50  ;;  %v378_v60 = vrot.slane %v371_v52, 6  ;;  %v263_v61 = vmul.f32 %v260_v11, %v256_v28 }
  0x1c   : > { %v379_v62 = vrot.slane %v372_v56, 6  ;;  %v252_v63 = vmul.f32 %v555_v20, %v250_v10  ;;  %v285_v0 = vmul.f32 %v282_v12, %v256_v28  ;;  %v307_v1 = vmul.f32 %v304_v15, %v300_v29 }
  0x1d   : > { %v319_v2 = vadd.f32 %v314_v53, %v297_v58  ;;  %v271_v3 = vrot.slane %v263_v61, 1  ;;  %v329_v4 = vmul.f32 %v326_v17, %v300_v29  ;;  %v344_v5 = vunpack.c.l.bf16 %v343_v57 }
  0x1e   : > { %v358_v6 = vsel %vm355_vm4, %v356_v54, %v357_v55  ;;  %v293_v7 = vrot.slane %v285_v0, 2  ;;  %v315_v8 = vrot.slane %v307_v1, 3  ;;  %v380_v11 = vsel %vm377_vm5, %v378_v60, %v379_v62 }
  0x1f   : > { %v341_v9 = vadd.f32 %v336_v59, %v319_v2  ;;  %v272_v13 = vsel %vm267_vm0, %v269_v39, %v271_v3  ;;  %v337_v14 = vrot.slane %v329_v4, 4  ;;  %v351_v16 = vmul.f32 %v348_v18, %v344_v5 }
  0x20   : > { %v276_v19 = vadd.f32 %v272_v13, %v252_v63  ;;  %v294_v10 = vsel %vm289_vm1, %v291_v42, %v293_v7  ;;  %v373_v12 = vmul.f32 %v370_v27, %v344_v5  ;;  %v316_v17 = vsel %vm311_vm2, %v313_v44, %v315_v8 }
  0x21   : > { %v363_v15 = vadd.f32 %v358_v6, %v341_v9  ;;  %v359_v20 = vrot.slane %v351_v16, 5  ;;  %v338_v24 = vsel %vm333_vm3, %v335_v47, %v337_v14 }
  0x22   : > { %v298_v22 = vadd.f32 %v294_v10, %v276_v19  ;;  %v381_v18 = vrot.slane %v373_v12, 6 }
  0x23   : > { %v385_v23 = vadd.f32 %v380_v11, %v363_v15  ;;  %v360_v28 = vsel %vm355_vm4, %v357_v55, %v359_v20 }
  0x24   : > { %v320_v25 = vadd.f32 %v316_v17, %v298_v22  ;;  %v382_v30 = vsel %vm377_vm5, %v379_v62, %v381_v18 }
  0x25   : > { %v394_v26 = vadd.f32 %v544_v21, %v385_v23 }
  0x26   : > { %v342_v27 = vadd.f32 %v338_v24, %v320_v25 }
  0x27   : > { %v550_v29 = vpack.c.bf16 %v394_v26, %v394_v26  ;;  %v419_v33 = vmul.f32 %v394_v26, %v394_v26  ;;  %v408_v35 = vsel %vm407_vm7, %v394_v26, 0.0 }
  0x28   : > { %v364_v31 = vadd.f32 %v360_v28, %v342_v27 }
  0x29   : > { %405 = vst.msk [vmem:[%s235_s6] sm:$0xf] %vm404_vm6, %v550_v29  ;;  %v421_v39 = vsel %vm407_vm7, %v419_v33, 0.0 }
  0x2a   : > { %v386_v32 = vadd.f32 %v382_v30, %v364_v31 }
  0x2c   : > { %v395_v34 = vadd.f32 %v544_v21, %v386_v32 }
  0x2e   : > { %v551_v36 = vpack.c.bf16 %v395_v34, %v395_v34  ;;  %v409_v37 = vsel %vm407_vm7, %v395_v34, 0.0  ;;  %v420_v38 = vmul.f32 %v395_v34, %v395_v34 }
  0x2f   : > { %v410_v40 = vadd.f32 %v409_v37, %v408_v35 }
  0x30   : > { %406 = vst.msk [vmem:[%s235_s6 + $0x4] sm:$0xf] %vm404_vm6, %v551_v36  ;;  %v422_v41 = vsel %vm407_vm7, %v420_v38, 0.0 }
  0x31   : > { %v411_v42 = vrot.slane %v410_v40, 4  ;;  %v423_v43 = vadd.f32 %v422_v41, %v421_v39 }
  0x33   : > { %v412_v44 = vadd.f32 %v411_v42, %v410_v40  ;;  %v424_v45 = vrot.slane %v423_v43, 4 }
  0x35   : > { %v413_v46 = vrot.slane %v412_v44, 2  ;;  %v425_v47 = vadd.f32 %v424_v45, %v423_v43 }
  0x37   : > { %v414_v48 = vadd.f32 %v413_v46, %v412_v44  ;;  %v426_v49 = vrot.slane %v425_v47, 2 }
  0x39   : > { %v415_v50 = vrot.slane %v414_v48, 1  ;;  %v427_v51 = vadd.f32 %v426_v49, %v425_v47 }
  0x3b   : > { %v416_v52 = vadd.f32 %v415_v50, %v414_v48  ;;  %v428_v53 = vrot.slane %v427_v51, 1 }
  0x3d   : > { %418 = vst.msk [vmem:[%s238_s9] sm:$0x1] %vm417_vm8, %v416_v52  ;;  %v429_v54 = vadd.f32 %v428_v53, %v427_v51 }
  0x3f   : > { %430 = vst.msk [vmem:[%s241_s12] sm:$0x1] %vm417_vm8, %v429_v54 }
  0x40 PF: > { %s16_s18 = sadd.s32 1, %s571_s18  }
  0x41   : > { %p13_p4 = scmp.ge.s32.totalorder %s16_s18, 4  }
  0x43   :  { %15 = sbr.rel (!%p13_p4) target bundleno = 1 (0x1), region = 86 }

// kernel: conformer_encoder.31
= control target key start
LH: loop header
LB: loop body
LE: loop exit
PB: predicated region body
PF: predicated region fallthrough
CT: control target
= control target key end

     0   :  { %vm28_vm0 = vcmask 261120   ;;  %v262_v1 = vmov 0.0   ;;  %s357_s1 = inlined_call_operand.vmem [shape: bf16[32,32], index: 1, kind: input, shape index: {}]   ;;  %s358_s0 = inlined_call_operand.vmem [shape: bf16[32,32], index: 0, kind: input, shape index: {}]   ;;  %s359_s3 = inlined_call_operand.vmem [shape: f32[1,32], index: 3, kind: input, shape index: {}]   ;;  %s360_s4 = inlined_call_operand.vmem [shape: f32[1,32], index: 4, kind: input, shape index: {}]   ;;  %s361_s2 = inlined_call_operand.vmem [shape: f32[1,32], index: 2, kind: input, shape index: {}]   ;;  %s362_s5 = inlined_call_operand.vmem [shape: f32[32,32], index: 5, kind: input, shape index: {}]   ;;  %s363_s6 = inlined_call_operand.vmem [shape: f32[32,32], index: 6, kind: output, shape index: {}]  }
   0x1   :  { %v244_v0 = vld [vmem:[%s357_s1 + $0x8] sm:$0xff]   ;;  %31 = vst.msk [vmem:[#allocation2 + $0x10] sm:$0xff] %vm28_vm0, %v262_v1  ;;  %29 = vst.msk [vmem:[#allocation2] sm:$0xff] %vm28_vm0, %v262_v1  ;;  %v245_v2 = vld [vmem:[%s357_s1] sm:$0xff]  }
   0x2   :  { %30 = vst.msk [vmem:[#allocation2 + $0x8] sm:$0xff] %vm28_vm0, %v262_v1  ;;  %32 = vst.msk [vmem:[#allocation2 + $0x18] sm:$0xff] %vm28_vm0, %v262_v1  ;;  %235 = vmatprep.subr.bf16.mxu0 %v244_v0  ;;  %v223_v3 = vld [vmem:[%s358_s0] sm:$0xff]   ;;  %v230_v4 = vld [vmem:[%s358_s0 + $0x8] sm:$0xff]  }
   0x3   :  { %v211_v5 = vld [vmem:[%s359_s3] ss:$0 sm:$0xff]  ;;  %236 = vmatpush3.bf16.msra.mxu0 %v244_v0  ;;  %v224_v6 = vunpack.c.l.bf16 %v223_v3  ;;  %v225_v7 = vunpack.c.h.bf16 %v223_v3  ;;  %v228_v8 = vunpack.c.l.bf16 %v230_v4  ;;  %v229_v9 = vunpack.c.h.bf16 %v230_v4  ;;  %v197_v55 = vld [vmem:[%s362_s5 + $0x10] sm:$0xff]  ;;  %v198_v62 = vld [vmem:[%s362_s5 + $0x18] sm:$0xff] }
   0x4   :  { %237 = vmatprep.subr.bf16.mxu0 %v245_v2  ;;  %v212_v10 = vld [vmem:[%s360_s4] ss:$0 sm:$0xff] }
   0x5   :  { %v48_v11 = vmul.f32 %v224_v6, %v211_v5  ;;  %v49_v12 = vmul.f32 %v225_v7, %v211_v5  ;;  %v50_v13 = vmul.f32 %v228_v8, %v211_v5  ;;  %v51_v14 = vmul.f32 %v229_v9, %v211_v5  ;;  %v221_v53 = vld [vmem:[%s361_s2] ss:$0 sm:$0xff] }
   0x6   :  { %v195_v58 = vld [vmem:[%s362_s5] sm:$0xff] }
   0x7   :  { %238 = vmatpush3.bf16.msra.mxu0 %v245_v2  ;;  %v59_v15 = vadd.f32 %v212_v10, %v48_v11  ;;  %v60_v16 = vadd.f32 %v212_v10, %v49_v12  ;;  %v61_v17 = vadd.f32 %v212_v10, %v50_v13  ;;  %v62_v18 = vadd.f32 %v212_v10, %v51_v14  ;;  %v196_v2 = vld [vmem:[%s362_s5 + $0x8] sm:$0xff] }
   0x8   :  { %v95_v41 = vld [vmem:[#allocation2 + $0x10] sm:$0xff]  ;;  %v93_v43 = vld [vmem:[#allocation2] sm:$0xff] }
   0x9   :  { %v213_v19 = vmul.f32 -1.442695, %v59_v15  ;;  %v214_v20 = vmul.f32 -1.442695, %v60_v16  ;;  %v215_v21 = vmul.f32 -1.442695, %v61_v17 }
   0xa   :  { %v216_v22 = vmul.f32 -1.442695, %v62_v18  ;;  %v96_v46 = vld [vmem:[#allocation2 + $0x18] sm:$0xff]  ;;  %v94_v49 = vld [vmem:[#allocation2 + $0x8] sm:$0xff] }
   0xb   :  { %246 = vpow2.f32 %v213_v19 }
   0xc   :  { %248 = vpow2.f32 %v214_v20 }
   0xd   :  { %250 = vpow2.f32 %v215_v21 }
   0xe   :  { %252 = vpow2.f32 %v216_v22 }
  0x18   :  { %v247_v23 = vpop.eup %246 }
  0x19   :  { %v249_v24 = vpop.eup %248  ;;  %v75_v25 = vadd.f32 1.0, %v247_v23 }
  0x1a   :  { %v251_v26 = vpop.eup %250  ;;  %v76_v27 = vadd.f32 1.0, %v249_v24 }
  0x1b   :  { %v253_v28 = vpop.eup %252  ;;  %254 = vrcp.f32 %v75_v25  ;;  %v77_v29 = vadd.f32 1.0, %v251_v26 }
  0x1c   :  { %256 = vrcp.f32 %v76_v27  ;;  %v78_v30 = vadd.f32 1.0, %v253_v28 }
  0x1d   :  { %258 = vrcp.f32 %v77_v29 }
  0x1e   :  { %260 = vrcp.f32 %v78_v30 }
  0x28   :  { %v255_v31 = vpop.eup %254 }
  0x29   :  { %v257_v32 = vpop.eup %256  ;;  %v87_v33 = vmul.f32 %v255_v31, %v59_v15 }
  0x2a   :  { %v259_v34 = vpop.eup %258  ;;  %v88_v35 = vmul.f32 %v257_v32, %v60_v16 }
  0x2b   :  { %v261_v36 = vpop.eup %260  ;;  %v89_v37 = vmul.f32 %v259_v34, %v61_v17 }
  0x2c   :  { %v91_v38 = vpack.c.bf16 %v88_v35, %v87_v33  ;;  %v90_v39 = vmul.f32 %v261_v36, %v62_v18 }
  0x2e   :  { %239 = vmatprep.mubr.msk.bf16.mxu0 %vm28_vm0, %v91_v38  ;;  %v92_v40 = vpack.c.bf16 %v90_v39, %v89_v37 }
  0x30   :  { %240 = vmatmul.mubr.msk.bf16.vlgmr.msra.gmra.mxu0 %vm28_vm0, %v92_v40 }
  0xf0   :  { %v241_v42 = vpop.f32.mrf.mxu0 }
  0xf1   :  { %v171_v44 = vadd.f32 %v241_v42, %v95_v41 }
  0xf2   :  { %v154_v45 = vpop.f32.mrf.mxu0 }
  0xf3   :  { %175 = vst.msk [vmem:[#allocation2 + $0x10] sm:$0xff] %vm28_vm0, %v171_v44  ;;  %v169_v47 = vadd.f32 %v154_v45, %v93_v43 }
  0xf4   :  { %v242_v48 = vpop.f32.mrf.mxu0 }
  0xf5   :  { %173 = vst.msk [vmem:[#allocation2] sm:$0xff] %vm28_vm0, %v169_v47  ;;  %v172_v50 = vadd.f32 %v242_v48, %v96_v46 }
  0xf6   :  { %v157_v51 = vpop.f32.mrf.mxu0 }
  0xf7   :  { %176 = vst.msk [vmem:[#allocation2 + $0x18] sm:$0xff] %vm28_vm0, %v172_v50  ;;  %v170_v52 = vadd.f32 %v157_v51, %v94_v49 }
  0xf9   :  { %174 = vst.msk [vmem:[#allocation2 + $0x8] sm:$0xff] %vm28_vm0, %v170_v52 }
  0xfa   :  { %v182_v54 = vld [vmem:[#allocation2 + $0x10] sm:$0xff] }
  0xfb   :  { %v193_v56 = vadd.f32 %v221_v53, %v182_v54 }
  0xfc   :  { %v180_v57 = vld [vmem:[#allocation2] sm:$0xff] }
  0xfd   :  { %v201_v59 = vadd.f32 %v197_v55, %v193_v56  ;;  %v191_v60 = vadd.f32 %v221_v53, %v180_v57 }
  0xfe   :  { %v183_v61 = vld [vmem:[#allocation2 + $0x18] sm:$0xff] }
  0xff   :  { %205 = vst.msk [vmem:[%s363_s6 + $0x10] sm:$0xff] %vm28_vm0, %v201_v59  ;;  %v199_v63 = vadd.f32 %v195_v58, %v191_v60  ;;  %v194_v0 = vadd.f32 %v221_v53, %v183_v61 }
 0x100   :  { %v181_v1 = vld [vmem:[#allocation2 + $0x8] sm:$0xff] }
 0x101   :  { %203 = vst.msk [vmem:[%s363_s6] sm:$0xff] %vm28_vm0, %v199_v63  ;;  %v202_v3 = vadd.f32 %v198_v62, %v194_v0  ;;  %v192_v4 = vadd.f32 %v221_v53, %v181_v1 }
 0x103   :  { %206 = vst.msk [vmem:[%s363_s6 + $0x18] sm:$0xff] %vm28_vm0, %v202_v3  ;;  %v200_v5 = vadd.f32 %v196_v2, %v192_v4 }
 0x105   :  { %204 = vst.msk [vmem:[%s363_s6 + $0x8] sm:$0xff] %vm28_vm0, %v200_v5 }

// kernel: conformer_encoder.33
= control target key start
LH: loop header
LB: loop body
LE: loop exit
PB: predicated region body
PF: predicated region fallthrough
CT: control target
= control target key end

     0   :  { %vm28_vm0 = vcmask 261120   ;;  %v305_v1 = vmov 0.0   ;;  %vm83_vm1 = vcmask 523264   ;;  %s412_s1 = inlined_call_operand.vmem [shape: bf16[64,32], index: 1, kind: input, shape index: {}]   ;;  %s413_s0 = inlined_call_operand.vmem [shape: bf16[32,64], index: 0, kind: input, shape index: {}]   ;;  %s414_s2 = inlined_call_operand.vmem [shape: f32[1,32], index: 2, kind: input, shape index: {}]   ;;  %s415_s3 = inlined_call_operand.vmem [shape: f32[32,32], index: 3, kind: input, shape index: {}]   ;;  %s416_s4 = inlined_call_operand.vmem [shape: f32[1,32], index: 4, kind: input, shape index: {}]   ;;  %s417_s5 = inlined_call_operand.vmem [shape: f32[1,32], index: 5, kind: input, shape index: {}]   ;;  %s418_s6 = inlined_call_operand.vmem [shape: f32[32,32], index: 6, kind: output, shape index: {}]  }
   0x1   :  { %v291_v0 = vld [vmem:[%s412_s1 + $0x18] sm:$0xff]   ;;  %31 = vst.msk [vmem:[#allocation2 + $0x10] sm:$0xff] %vm28_vm0, %v305_v1  ;;  %29 = vst.msk [vmem:[#allocation2] sm:$0xff] %vm28_vm0, %v305_v1  ;;  %v292_v2 = vld [vmem:[%s412_s1 + $0x10] sm:$0xff]  }
   0x2   :  { %30 = vst.msk [vmem:[#allocation2 + $0x8] sm:$0xff] %vm28_vm0, %v305_v1  ;;  %32 = vst.msk [vmem:[#allocation2 + $0x18] sm:$0xff] %vm28_vm0, %v305_v1  ;;  %278 = vmatprep.subr.bf16.mxu0 %v291_v0  ;;  %v293_v3 = vld [vmem:[%s412_s1 + $0x8] sm:$0xff]   ;;  %v295_v4 = vld [vmem:[%s413_s0] sm:$0xff]  }
   0x3   :  { %279 = vmatpush3.bf16.msra.mxu0 %v291_v0  ;;  %286 = vmatprep.mubr.msk.bf16.mxu0 %vm83_vm1, %v295_v4  ;;  %v294_v5 = vld [vmem:[%s412_s1] sm:$0xff]   ;;  %v296_v6 = vld [vmem:[%s413_s0 + $0x8] sm:$0xff]   ;;  %v168_v22 = vld [vmem:[%s415_s3 + $0x10] sm:$0xff] }
   0x4   :  { %280 = vmatprep.subr.bf16.mxu0 %v292_v2  ;;  %v269_v19 = vld [vmem:[%s414_s2] ss:$0 sm:$0xff]  ;;  %v169_v31 = vld [vmem:[%s415_s3 + $0x18] sm:$0xff]  ;;  %v167_v37 = vld [vmem:[%s415_s3 + $0x8] sm:$0xff] }
   0x5   :  { %v166_v26 = vld [vmem:[%s415_s3] sm:$0xff] }
   0x7   :  { %281 = vmatpush3.bf16.msra.mxu0 %v292_v2 }
   0x8   :  { %282 = vmatprep.subr.bf16.mxu0 %v293_v3  ;;  %v39_v7 = vld [vmem:[#allocation2 + $0x10] sm:$0xff]  ;;  %v37_v9 = vld [vmem:[#allocation2] sm:$0xff] }
   0x9   :  { %v40_v12 = vld [vmem:[#allocation2 + $0x18] sm:$0xff]  ;;  %v38_v15 = vld [vmem:[#allocation2 + $0x8] sm:$0xff] }
   0xb   :  { %283 = vmatpush3.bf16.msra.mxu0 %v293_v3 }
   0xc   :  { %284 = vmatprep.subr.bf16.mxu0 %v294_v5 }
   0xf   :  { %285 = vmatpush3.bf16.msra.mxu0 %v294_v5 }
  0x12   :  { %287 = vmatmul.mubr.msk.bf16.vlgmr.msra.gmra.mxu0 %vm83_vm1, %v296_v6 }
  0xd2   :  { %v288_v8 = vpop.f32.mrf.mxu0 }
  0xd3   :  { %v141_v10 = vadd.f32 %v288_v8, %v39_v7 }
  0xd4   :  { %v124_v11 = vpop.f32.mrf.mxu0 }
  0xd5   :  { %146 = vst.msk [vmem:[#allocation2 + $0x10] sm:$0xff] %vm28_vm0, %v141_v10  ;;  %v139_v13 = vadd.f32 %v124_v11, %v37_v9 }
  0xd6   :  { %v289_v14 = vpop.f32.mrf.mxu0 }
  0xd7   :  { %144 = vst.msk [vmem:[#allocation2] sm:$0xff] %vm28_vm0, %v139_v13  ;;  %v142_v16 = vadd.f32 %v289_v14, %v40_v12  ;;  %v270_v13 = vld [vmem:[%s416_s4] ss:$0 sm:$0xff] }
  0xd8   :  { %v127_v17 = vpop.f32.mrf.mxu0 }
  0xd9   :  { %147 = vst.msk [vmem:[#allocation2 + $0x18] sm:$0xff] %vm28_vm0, %v142_v16  ;;  %v140_v18 = vadd.f32 %v127_v17, %v38_v15  ;;  %v271_v15 = vld [vmem:[%s417_s5] ss:$0 sm:$0xff] }
  0xdb   :  { %145 = vst.msk [vmem:[#allocation2 + $0x8] sm:$0xff] %vm28_vm0, %v140_v18 }
  0xdc   :  { %v153_v20 = vld [vmem:[#allocation2 + $0x10] sm:$0xff] }
  0xdd   :  { %v164_v21 = vadd.f32 %v269_v19, %v153_v20 }
  0xde   :  { %v151_v23 = vld [vmem:[#allocation2] sm:$0xff] }
  0xdf   :  { %v172_v24 = vmul.f32 0.5, %v164_v21  ;;  %v162_v25 = vadd.f32 %v269_v19, %v151_v23 }
  0xe0   :  { %v154_v27 = vld [vmem:[#allocation2 + $0x18] sm:$0xff] }
  0xe1   :  { %v176_v28 = vadd.f32 %v172_v24, %v168_v22  ;;  %v170_v29 = vmul.f32 0.5, %v162_v25  ;;  %v165_v30 = vadd.f32 %v269_v19, %v154_v27 }
  0xe2   :  { %v152_v32 = vld [vmem:[#allocation2 + $0x8] sm:$0xff] }
  0xe3   :  { %v184_v33 = vsel %vm28_vm0, %v176_v28, 0.0  ;;  %v174_v34 = vadd.f32 %v170_v29, %v166_v26  ;;  %v173_v35 = vmul.f32 0.5, %v165_v30  ;;  %v163_v36 = vadd.f32 %v269_v19, %v152_v32 }
  0xe4   :  { %185 = vadd.xlane.f32.xlu1 %v184_v33 }
  0xe5   :  { %v178_v38 = vsel %vm28_vm0, %v174_v34, 0.0  ;;  %v177_v39 = vadd.f32 %v173_v35, %v169_v31  ;;  %v171_v40 = vmul.f32 0.5, %v163_v36 }
  0xe6   :  { %179 = vadd.xlane.f32.xlu0 %v178_v38 }
  0xe7   :  { %v187_v41 = vsel %vm28_vm0, %v177_v39, 0.0  ;;  %v175_v42 = vadd.f32 %v171_v40, %v167_v37 }
  0xe8   :  { %188 = vadd.xlane.f32.xlu1 %v187_v41 }
  0xe9   :  { %v181_v43 = vsel %vm28_vm0, %v175_v42, 0.0 }
  0xea   :  { %182 = vadd.xlane.f32.xlu0 %v181_v43 }
 0x16d   :  { %v186_v44 = vpop.xlane.xlu1 %185 }
 0x16e   :  { %v193_v45 = vmul.f32 0.03125, %v186_v44 }
 0x16f   :  { %v180_v46 = vpop.xlane.xlu0 %179 }
 0x170   :  { %v191_v47 = vmul.f32 0.03125, %v180_v46  ;;  %v197_v49 = vsub.f32 %v176_v28, %v193_v45 }
 0x171   :  { %v189_v48 = vpop.xlane.xlu1 %188 }
 0x172   :  { %v195_v50 = vsub.f32 %v174_v34, %v191_v47  ;;  %v194_v51 = vmul.f32 0.03125, %v189_v48  ;;  %v201_v58 = vmul.f32 %v197_v49, %v197_v49 }
 0x173   :  { %v183_v52 = vpop.xlane.xlu0 %182 }
 0x174   :  { %v192_v53 = vmul.f32 0.03125, %v183_v52  ;;  %v199_v54 = vmul.f32 %v195_v50, %v195_v50  ;;  %v198_v55 = vsub.f32 %v177_v39, %v194_v51  ;;  %v209_v60 = vsel %vm28_vm0, %v201_v58, 0.0 }
 0x176   :  { %v196_v56 = vsub.f32 %v175_v42, %v192_v53  ;;  %v203_v57 = vsel %vm28_vm0, %v199_v54, 0.0  ;;  %v202_v62 = vmul.f32 %v198_v55, %v198_v55 }
 0x177   :  { %204 = vadd.xlane.f32.xlu0 %v203_v57 }
 0x178   :  { %v200_v59 = vmul.f32 %v196_v56, %v196_v56  ;;  %v212_v63 = vsel %vm28_vm0, %v202_v62, 0.0 }
 0x17a   :  { %v206_v61 = vsel %vm28_vm0, %v200_v59, 0.0 }
 0x17b   :  { %210 = vadd.xlane.f32.xlu0 %v209_v60  ;;  %207 = vadd.xlane.f32.xlu1 %v206_v61 }
 0x17f   :  { %213 = vadd.xlane.f32.xlu1 %v212_v63 }
 0x200   :  { %v205_v0 = vpop.xlane.xlu0 %204 }
 0x201   :  { %v215_v1 = vmul.f32 0.03125, %v205_v0 }
 0x203   :  { %v219_v2 = vadd.f32 1e-05, %v215_v1 }
 0x204   :  { %v208_v3 = vpop.xlane.xlu1 %207  ;;  %v211_v4 = vpop.xlane.xlu0 %210 }
 0x205   :  { %297 = vrsqrt.f32 %v219_v2  ;;  %v216_v5 = vmul.f32 0.03125, %v208_v3  ;;  %v217_v6 = vmul.f32 0.03125, %v211_v4 }
 0x207   :  { %v220_v7 = vadd.f32 1e-05, %v216_v5  ;;  %v221_v8 = vadd.f32 1e-05, %v217_v6 }
 0x208   :  { %v214_v9 = vpop.xlane.xlu1 %213 }
 0x209   :  { %299 = vrsqrt.f32 %v220_v7  ;;  %v218_v10 = vmul.f32 0.03125, %v214_v9 }
 0x20a   :  { %301 = vrsqrt.f32 %v221_v8 }
 0x20b   :  { %v222_v11 = vadd.f32 1e-05, %v218_v10 }
 0x20d   :  { %303 = vrsqrt.f32 %v222_v11 }
 0x212   :  { %v298_v12 = vpop.eup %297 }
 0x213   :  { %v227_v14 = vmul.f32 %v298_v12, %v195_v50 }
 0x215   :  { %v238_v16 = vmul.f32 %v270_v13, %v227_v14 }
 0x216   :  { %v300_v17 = vpop.eup %299 }
 0x217   :  { %v302_v18 = vpop.eup %301  ;;  %v249_v19 = vadd.f32 %v271_v15, %v238_v16  ;;  %v228_v20 = vmul.f32 %v300_v17, %v196_v56 }
 0x218   :  { %v229_v21 = vmul.f32 %v302_v18, %v197_v49 }
 0x219   :  { %253 = vst.msk [vmem:[%s418_s6] sm:$0xff] %vm28_vm0, %v249_v19  ;;  %v239_v22 = vmul.f32 %v270_v13, %v228_v20 }
 0x21a   :  { %v304_v23 = vpop.eup %303  ;;  %v240_v24 = vmul.f32 %v270_v13, %v229_v21 }
 0x21b   :  { %v250_v25 = vadd.f32 %v271_v15, %v239_v22  ;;  %v230_v26 = vmul.f32 %v304_v23, %v198_v55 }
 0x21c   :  { %v251_v27 = vadd.f32 %v271_v15, %v240_v24 }
 0x21d   :  { %254 = vst.msk [vmem:[%s418_s6 + $0x8] sm:$0xff] %vm28_vm0, %v250_v25  ;;  %v241_v28 = vmul.f32 %v270_v13, %v230_v26 }
 0x21e   :  { %255 = vst.msk [vmem:[%s418_s6 + $0x10] sm:$0xff] %vm28_vm0, %v251_v27 }
 0x21f   :  { %v252_v29 = vadd.f32 %v271_v15, %v241_v28 }
 0x221   :  { %256 = vst.msk [vmem:[%s418_s6 + $0x18] sm:$0xff] %vm28_vm0, %v252_v29 }

// kernel: conformer_encoder.45
= control target key start
LH: loop header
LB: loop body
LE: loop exit
PB: predicated region body
PF: predicated region fallthrough
CT: control target
= control target key end

     0   :  { %vm19_vm0 = vcmask 261120   ;;  %s206_s0 = inlined_call_operand.vmem [shape: f32[32,32], index: 0, kind: input, shape index: {}]   ;;  %s207_s1 = inlined_call_operand.vmem [shape: f32[1,32], index: 1, kind: input, shape index: {}]   ;;  %s208_s2 = inlined_call_operand.vmem [shape: f32[1,32], index: 2, kind: input, shape index: {}]   ;;  %s209_s3 = inlined_call_operand.hbm [shape: f32[32,32], index: 3, kind: output, shape index: {}]  }
   0x1   :  { %v15_v0 = vld [vmem:[%s206_s0] sm:$0xff]  ;;  %v17_v1 = vld [vmem:[%s206_s0 + $0x10] sm:$0xff]  ;;  %v16_v2 = vld [vmem:[%s206_s0 + $0x8] sm:$0xff] }
   0x2   :  { %v20_v3 = vsel %vm19_vm0, %v15_v0, 0.0  ;;  %v26_v4 = vsel %vm19_vm0, %v17_v1, 0.0  ;;  %v18_v5 = vld [vmem:[%s206_s0 + $0x18] sm:$0xff] }
   0x3   :  { %8 = vsyncpa [#allocation3], 0  ;;  %21 = vadd.xlane.f32.xlu0 %v20_v3  ;;  %27 = vadd.xlane.f32.xlu1 %v26_v4  ;;  %v23_v6 = vsel %vm19_vm0, %v16_v2, 0.0  ;;  %v29_v7 = vsel %vm19_vm0, %v18_v5, 0.0  ;;  %v115_v41 = vld [vmem:[%s207_s1] ss:$0 sm:$0xff] }
   0x4   :  { %v116_v43 = vld [vmem:[%s208_s2] ss:$0 sm:$0xff]  ;;  %s150_s1 = smov [#allocation2]  }
   0x5   :  { %s104_s23 = sshll.u32 %s150_s1, 4  ;;  %s105_s23 = int_to_ptr.vmem [resolvable:$true] %s104_s23 }
   0x6   :  { %s128_s2 = scalar_lea.vmem %s105_s23, 512  ;;  %p133_p1 = scmp.lt.s32.totalorder %s105_s23, %s105_s23 }
   0x7   :  { %24 = vadd.xlane.f32.xlu0 %v23_v6  ;;  %30 = vadd.xlane.f32.xlu1 %v29_v7  ;;  %p129_p0 = scmp.ne.s32.totalorder %s105_s23, %s128_s2  ;;  %p134_p2 = scmp.lt.s32.totalorder %s128_s2, %s128_s2 }
   0x9   :  { %p135_p3 = por %p134_p2, %p133_p1 }
   0xb   :  { %p136_p4 = pnand %p135_p3, %p129_p0 }
  0x8c   :  { %v22_v8 = vpop.xlane.xlu0 %21  ;;  %v28_v9 = vpop.xlane.xlu1 %27 }
  0x8d   :  { %v33_v10 = vmul.f32 0.03125, %v22_v8  ;;  %v35_v11 = vmul.f32 0.03125, %v28_v9 }
  0x8f   :  { %v37_v12 = vsub.f32 %v15_v0, %v33_v10  ;;  %v39_v13 = vsub.f32 %v17_v1, %v35_v11 }
  0x90   :  { %v25_v14 = vpop.xlane.xlu0 %24  ;;  %v31_v15 = vpop.xlane.xlu1 %30 }
  0x91   :  { %v34_v16 = vmul.f32 0.03125, %v25_v14  ;;  %v36_v17 = vmul.f32 0.03125, %v31_v15  ;;  %v41_v18 = vmul.f32 %v37_v12, %v37_v12  ;;  %v43_v19 = vmul.f32 %v39_v13, %v39_v13 }
  0x93   :  { %v38_v20 = vsub.f32 %v16_v2, %v34_v16  ;;  %v40_v21 = vsub.f32 %v18_v5, %v36_v17  ;;  %v45_v22 = vsel %vm19_vm0, %v41_v18, 0.0  ;;  %v51_v23 = vsel %vm19_vm0, %v43_v19, 0.0 }
  0x94   :  { %46 = vadd.xlane.f32.xlu0 %v45_v22 }
  0x95   :  { %v42_v24 = vmul.f32 %v38_v20, %v38_v20  ;;  %v44_v25 = vmul.f32 %v40_v21, %v40_v21 }
  0x97   :  { %v48_v26 = vsel %vm19_vm0, %v42_v24, 0.0  ;;  %v54_v27 = vsel %vm19_vm0, %v44_v25, 0.0 }
  0x98   :  { %52 = vadd.xlane.f32.xlu0 %v51_v23  ;;  %49 = vadd.xlane.f32.xlu1 %v48_v26 }
  0x9c   :  { %55 = vadd.xlane.f32.xlu1 %v54_v27 }
 0x11d   :  { %v47_v28 = vpop.xlane.xlu0 %46 }
 0x11e   :  { %v57_v29 = vmul.f32 0.03125, %v47_v28 }
 0x120   :  { %v61_v30 = vadd.f32 1e-06, %v57_v29 }
 0x121   :  { %v50_v31 = vpop.xlane.xlu1 %49  ;;  %v53_v32 = vpop.xlane.xlu0 %52 }
 0x122   :  { %120 = vrsqrt.f32 %v61_v30  ;;  %v58_v33 = vmul.f32 0.03125, %v50_v31  ;;  %v59_v34 = vmul.f32 0.03125, %v53_v32 }
 0x124   :  { %v62_v35 = vadd.f32 1e-06, %v58_v33  ;;  %v63_v36 = vadd.f32 1e-06, %v59_v34 }
 0x125   :  { %v56_v37 = vpop.xlane.xlu1 %55 }
 0x126   :  { %122 = vrsqrt.f32 %v62_v35  ;;  %v60_v38 = vmul.f32 0.03125, %v56_v37 }
 0x127   :  { %124 = vrsqrt.f32 %v63_v36 }
 0x128   :  { %v64_v39 = vadd.f32 1e-06, %v60_v38 }
 0x12a   :  { %126 = vrsqrt.f32 %v64_v39 }
 0x12f   :  { %v121_v40 = vpop.eup %120 }
 0x130   :  { %v69_v42 = vmul.f32 %v121_v40, %v37_v12 }
 0x132   :  { %v80_v44 = vmul.f32 %v115_v41, %v69_v42 }
 0x133   :  { %v123_v45 = vpop.eup %122 }
 0x134   :  { %v125_v46 = vpop.eup %124  ;;  %v70_v47 = vmul.f32 %v123_v45, %v38_v20  ;;  %v91_v48 = vadd.f32 %v116_v43, %v80_v44 }
 0x135   :  { %v71_v49 = vmul.f32 %v125_v46, %v39_v13 }
 0x136   :  { %v81_v50 = vmul.f32 %v115_v41, %v70_v47  ;;  %95 = vst.msk [vmem:[#allocation2] sm:$0xff] %vm19_vm0, %v91_v48 }
 0x137   :  { %v127_v51 = vpop.eup %126  ;;  %v82_v52 = vmul.f32 %v115_v41, %v71_v49 }
 0x138   :  { %v72_v53 = vmul.f32 %v127_v51, %v40_v21  ;;  %v92_v54 = vadd.f32 %v116_v43, %v81_v50 }
 0x139   :  { %v93_v55 = vadd.f32 %v116_v43, %v82_v52 }
 0x13a   :  { %v83_v56 = vmul.f32 %v115_v41, %v72_v53  ;;  %96 = vst.msk [vmem:[#allocation2 + $0x8] sm:$0xff] %vm19_vm0, %v92_v54 }
 0x13b   :  { %97 = vst.msk [vmem:[#allocation2 + $0x10] sm:$0xff] %vm19_vm0, %v93_v55 }
 0x13c   :  { %v94_v57 = vadd.f32 %v116_v43, %v83_v56 }
 0x13e   :  { %98 = vst.msk [vmem:[#allocation2 + $0x18] sm:$0xff] %vm19_vm0, %v94_v57 }
 0x13f   :  { %139 = shalt.err (!%p136_p4)
}
 0x140   :  { %s151_s24 = smov 128   ;;  %s152_s25 = smov 8  }
 0x141   :  { %110 = dma.vmem_to_hbm [thread:$0]  %s105_s23, 512, %s209_s3, [#allocation3], %s151_s24, %s151_s24, %s152_s25  }
 0x142   :  { %148 = dma.done.wait [#allocation3], 512  }
 0x143   :  { %149 = vsyncadd [#allocation3], 4294966784 }
 0x144   :  { %114 = vsyncpa [#allocation3], 1 }

</bundles_post_ra>
